<compile_context>
chip_gen: v7x
topology: tpu7x:2x2x1
jax: 0.10.0
libtpu: 0.0.40
codegen_flags: <defaults>
</compile_context>

<pallas_src>
import functools

import jax
import jax.numpy as jnp
from jax import lax
from jax.experimental import pallas as pl
from jax.experimental.pallas import tpu as pltpu


def _cross_attn_kernel(x_ref, ctx_ref, wq_ref, wk_ref, wv_ref, wp_ref, bp_ref,
                       o_ref, o_slab, *, num_heads, head_dim):
    """One grid step = one (batch, N-tile). All heads fused inside the kernel.

    Shapes seen by the kernel (Cp = C rounded up to a multiple of 128):
      x_ref   : (1, tq, Cp)        ctx_ref : (1, M, Cp)
      wq_ref  : (H, Cp, dh)  (softmax scale folded in)
      wk_ref  : (H, Cp, dh)        wv_ref  : (H, Cp, dh)
      wp_ref  : (C, Cp)            bp_ref  : (1, Cp)
      o_ref   : (1, tq, Cp)        o_slab  : VMEM (tq, C) f32 scratch
    """
    x = x_ref[0]      # (tq, Cp)
    ctx = ctx_ref[0]  # (M,  Cp)

    # Per-head attention, statically unrolled (num_heads is a small constant).
    for h in range(num_heads):
        lo = h * head_dim

        # Head-major projections: full-C contraction depth, lane-dense narrow
        # outputs straight off the MXU (leading-axis ref index, no lane slice).
        q_h = jnp.dot(x, wq_ref[h],
                      preferred_element_type=jnp.float32).astype(jnp.bfloat16)   # (tq, dh)
        k_h = jnp.dot(ctx, wk_ref[h],
                      preferred_element_type=jnp.float32).astype(jnp.bfloat16)   # (M, dh)
        v_h = jnp.dot(ctx, wv_ref[h],
                      preferred_element_type=jnp.float32).astype(jnp.bfloat16)   # (M, dh)

        # Scores: contract the last axes directly (no explicit k_h.T via XLU).
        s = lax.dot_general(q_h, k_h, (((1,), (1,)), ((), ())),
                            preferred_element_type=jnp.float32)                  # (tq, M)
        s = s - jnp.max(s, axis=-1, keepdims=True)
        p = jnp.exp(s)
        p = p * pl.reciprocal(jnp.sum(p, axis=-1, keepdims=True), approx=True)
        # attn_drop is identity (p = 0.0 in the module config).

        # PV in bf16 with f32 accumulation; pack head output into the slab.
        o_h = jnp.dot(p.astype(jnp.bfloat16), v_h,
                      preferred_element_type=jnp.float32)                         # (tq, dh)
        o_slab[:, lo:lo + head_dim] = o_h

    # Single full-depth output projection + bias, then ONE lane-dense store
    # per (batch, N-tile) (last dim Cp is a multiple of 128 -> unmasked vst).
    out = jnp.dot(o_slab[...], wp_ref[...], preferred_element_type=jnp.float32)
    o_ref[0] = (out + bp_ref[...]).astype(o_ref.dtype)
    # proj_drop is identity (p = 0.0 in the module config).


def cross_attention_pallas(x, context, wq, wkv, wproj, bproj, *, num_heads):
    """x: (B, N, C), context: (B, M, C).
    wq: (C, C), wkv: (C, 2C), wproj: (C, C), bproj: (C,). All (in, out) layout."""
    B, N, C = x.shape
    _, M, _ = context.shape
    assert C % num_heads == 0
    head_dim = C // num_heads
    scale = head_dim ** (-0.5)

    # ---- Glue (runs once in XLA, no per-step cost) -------------------------
    Cp = ((C + 127) // 128) * 128           # lane-aligned channel dim
    pad_c = Cp - C

    # Head-major weight layouts: wX_hm[h] is the (C, dh) slice for head h.
    # Softmax scale is folded into Wq (one multiply on the weights).
    wq_hm = (wq * scale).reshape(C, num_heads, head_dim).transpose(1, 0, 2)
    wk_hm = wkv[:, :C].reshape(C, num_heads, head_dim).transpose(1, 0, 2)
    wv_hm = wkv[:, C:].reshape(C, num_heads, head_dim).transpose(1, 0, 2)

    if pad_c:
        x_p = jnp.pad(x, ((0, 0), (0, 0), (0, pad_c)))
        ctx_p = jnp.pad(context, ((0, 0), (0, 0), (0, pad_c)))
        wq_hm = jnp.pad(wq_hm, ((0, 0), (0, pad_c), (0, 0)))
        wk_hm = jnp.pad(wk_hm, ((0, 0), (0, pad_c), (0, 0)))
        wv_hm = jnp.pad(wv_hm, ((0, 0), (0, pad_c), (0, 0)))
        wp_p = jnp.pad(wproj, ((0, 0), (0, pad_c)))              # (C, Cp)
        bp_p = jnp.pad(bproj, (0, pad_c)).reshape(1, Cp)
    else:
        x_p, ctx_p = x, context
        wp_p = wproj
        bp_p = bproj.reshape(1, Cp)

    # N-tiling: many "parallel" steps at production N; single tile at toy size.
    tq = min(N, 128)
    grid = (B, pl.cdiv(N, tq))

    kernel = functools.partial(_cross_attn_kernel,
                               num_heads=num_heads, head_dim=head_dim)

    out_p = pl.pallas_call(
        kernel,
        out_shape=jax.ShapeDtypeStruct((B, N, Cp), x.dtype),
        grid_spec=pltpu.PrefetchScalarGridSpec(
            num_scalar_prefetch=0,
            grid=grid,
            in_specs=[
                pl.BlockSpec((1, tq, Cp), lambda b, i: (b, i, 0)),              # x tile
                pl.BlockSpec((1, M, Cp), lambda b, i: (b, 0, 0)),               # context
                # Weights: full blocks, constant index maps -> VMEM-resident,
                # DMA'd once for the whole grid.
                pl.BlockSpec((num_heads, Cp, head_dim), lambda b, i: (0, 0, 0)),  # Wq (scaled)
                pl.BlockSpec((num_heads, Cp, head_dim), lambda b, i: (0, 0, 0)),  # Wk
                pl.BlockSpec((num_heads, Cp, head_dim), lambda b, i: (0, 0, 0)),  # Wv
                pl.BlockSpec((C, Cp), lambda b, i: (0, 0)),                       # Wproj
                pl.BlockSpec((1, Cp), lambda b, i: (0, 0)),                       # proj bias
            ],
            out_specs=pl.BlockSpec((1, tq, Cp), lambda b, i: (b, i, 0)),
            scratch_shapes=[pltpu.VMEM((tq, C), jnp.float32)],                    # head-output slab
        ),
        compiler_params=pltpu.CompilerParams(
            dimension_semantics=("parallel", "parallel"),
            # > v5e's 16 MiB scoped default; re-derive against 64 MiB physical
            # VMEM on v7x before using production tile sizes.
            vmem_limit_bytes=32 * 1024 * 1024,
        ),
    )(x_p, ctx_p, wq_hm, wk_hm, wv_hm, wp_p, bp_p)

    return out_p[:, :, :C] if pad_c else out_p


def cross_attention_ref(x, context, wq, wkv, wproj, bproj, *, num_heads):
    """Pure-JAX reference mirroring the PyTorch CrossAttention.forward."""
    B, N, C = x.shape
    _, M, _ = context.shape
    dh = C // num_heads
    scale = dh ** (-0.5)
    q = (x @ wq).reshape(B, N, num_heads, dh).transpose(0, 2, 1, 3)          # (B,H,N,dh)
    kv = (context @ wkv)                                                     # (B,M,2C)
    k = kv[..., :C].reshape(B, M, num_heads, dh).transpose(0, 2, 1, 3)       # (B,H,M,dh)
    v = kv[..., C:].reshape(B, M, num_heads, dh).transpose(0, 2, 1, 3)       # (B,H,M,dh)
    attn = jnp.einsum("bhnd,bhmd->bhnm", q, k) * scale
    attn = jax.nn.softmax(attn, axis=-1)
    out = jnp.einsum("bhnm,bhmd->bhnd", attn, v).transpose(0, 2, 1, 3).reshape(B, N, C)
    return out @ wproj + bproj


if __name__ == "__main__":
    B, N, M, C, H = 2, 8, 16, 32, 8
    key = jax.random.PRNGKey(0)
    kx, kc, kq, kkv, kp, kb = jax.random.split(key, 6)

    x = jax.random.normal(kx, (B, N, C), dtype=jnp.float32)
    context = jax.random.normal(kc, (B, M, C), dtype=jnp.float32)

    # Deterministic synthetic parameters (qkv_bias=False; proj has bias).
    wq = jax.random.normal(kq, (C, C), dtype=jnp.float32) * 0.05
    wkv = jax.random.normal(kkv, (C, 2 * C), dtype=jnp.float32) * 0.05
    wproj = jax.random.normal(kp, (C, C), dtype=jnp.float32) * 0.05
    bproj = jax.random.normal(kb, (C,), dtype=jnp.float32) * 0.05

    out = cross_attention_pallas(x, context, wq, wkv, wproj, bproj, num_heads=H)
    out = jax.block_until_ready(out)

    ref = cross_attention_ref(x, context, wq, wkv, wproj, bproj, num_heads=H)
    assert out.shape == (B, N, C)
    # Tolerance sized for bf16 QK^T / PV operands (f32 accumulation) plus the
    # approximate EUP reciprocal in the softmax normalization.
    assert jnp.allclose(out, ref, atol=1e-2, rtol=1e-2), "mismatch vs reference"

    print("KERNEL_OK")
</pallas_src>

<mosaic_0001>
module attributes {stable_mosaic.version = 11 : i64} {
  func.func @_cross_attn_kernel(%arg0: i32, %arg1: i32, %arg2: memref<1x8x128xf32, #tpu.memory_space<vmem>>, %arg3: memref<1x16x128xf32, #tpu.memory_space<vmem>>, %arg4: memref<8x128x4xf32, #tpu.memory_space<vmem>>, %arg5: memref<8x128x4xf32, #tpu.memory_space<vmem>>, %arg6: memref<8x128x4xf32, #tpu.memory_space<vmem>>, %arg7: memref<32x128xf32, #tpu.memory_space<vmem>>, %arg8: memref<1x128xf32, #tpu.memory_space<vmem>>, %arg9: memref<1x8x128xf32, #tpu.memory_space<vmem>>, %arg10: memref<8x32xf32, #tpu.memory_space<vmem>>) attributes {dimension_semantics = [#tpu.dimension_semantics<parallel>, #tpu.dimension_semantics<parallel>], iteration_bounds = array<i64: 2, 1>, scalar_prefetch = 0 : i64, scratch_operands = 1 : i64, tpu.core_type = #tpu.core_type<tc>, window_params = [{transform_indices = @transform_0, window_bounds = array<i64: 1, 8, 128>}, {transform_indices = @transform_1, window_bounds = array<i64: 1, 16, 128>}, {pipeline_mode = #tpu.pipeline_mode<synchronous>, transform_indices = @transform_2, window_bounds = array<i64: 8, 128, 4>}, {pipeline_mode = #tpu.pipeline_mode<synchronous>, transform_indices = @transform_3, window_bounds = array<i64: 8, 128, 4>}, {pipeline_mode = #tpu.pipeline_mode<synchronous>, transform_indices = @transform_4, window_bounds = array<i64: 8, 128, 4>}, {pipeline_mode = #tpu.pipeline_mode<synchronous>, transform_indices = @transform_5, window_bounds = array<i64: 32, 128>}, {pipeline_mode = #tpu.pipeline_mode<synchronous>, transform_indices = @transform_6, window_bounds = array<i64: 1, 128>}, {transform_indices = @transform_7, window_bounds = array<i64: 1, 8, 128>}]} {
    %c0 = arith.constant 0 : index
    %c0_0 = arith.constant 0 : index
    %c0_1 = arith.constant 0 : index
    %0 = vector.load %arg2[%c0, %c0_0, %c0_1] : memref<1x8x128xf32, #tpu.memory_space<vmem>>, vector<1x8x128xf32>
    %1 = vector.shape_cast %0 : vector<1x8x128xf32> to vector<8x128xf32>
    %c0_2 = arith.constant 0 : index
    %c0_3 = arith.constant 0 : index
    %c0_4 = arith.constant 0 : index
    %2 = vector.load %arg3[%c0_2, %c0_3, %c0_4] : memref<1x16x128xf32, #tpu.memory_space<vmem>>, vector<1x16x128xf32>
    %3 = vector.shape_cast %2 : vector<1x16x128xf32> to vector<16x128xf32>
    %c0_5 = arith.constant 0 : index
    %c0_6 = arith.constant 0 : index
    %c0_7 = arith.constant 0 : index
    %4 = vector.load %arg4[%c0_5, %c0_6, %c0_7] : memref<8x128x4xf32, #tpu.memory_space<vmem>>, vector<1x128x4xf32>
    %5 = vector.shape_cast %4 : vector<1x128x4xf32> to vector<128x4xf32>
    %cst = arith.constant dense<0.000000e+00> : vector<8x4xf32>
    %6 = tpu.matmul %1, %5, %cst {dimension_numbers = #tpu.dot_dimension_numbers<[1], [0], [0], [1], [0, 0, 1, 1], [], []>} : vector<8x128xf32>, vector<128x4xf32>, vector<8x4xf32> -> vector<8x4xf32>
    %7 = arith.truncf %6 : vector<8x4xf32> to vector<8x4xbf16>
    %c0_8 = arith.constant 0 : index
    %c0_9 = arith.constant 0 : index
    %c0_10 = arith.constant 0 : index
    %8 = vector.load %arg5[%c0_8, %c0_9, %c0_10] : memref<8x128x4xf32, #tpu.memory_space<vmem>>, vector<1x128x4xf32>
    %9 = vector.shape_cast %8 : vector<1x128x4xf32> to vector<128x4xf32>
    %cst_11 = arith.constant dense<0.000000e+00> : vector<16x4xf32>
    %10 = tpu.matmul %3, %9, %cst_11 {dimension_numbers = #tpu.dot_dimension_numbers<[1], [0], [0], [1], [0, 0, 1, 1], [], []>} : vector<16x128xf32>, vector<128x4xf32>, vector<16x4xf32> -> vector<16x4xf32>
    %11 = arith.truncf %10 : vector<16x4xf32> to vector<16x4xbf16>
    %c0_12 = arith.constant 0 : index
    %c0_13 = arith.constant 0 : index
    %c0_14 = arith.constant 0 : index
    %12 = vector.load %arg6[%c0_12, %c0_13, %c0_14] : memref<8x128x4xf32, #tpu.memory_space<vmem>>, vector<1x128x4xf32>
    %13 = vector.shape_cast %12 : vector<1x128x4xf32> to vector<128x4xf32>
    %cst_15 = arith.constant dense<0.000000e+00> : vector<16x4xf32>
    %14 = tpu.matmul %3, %13, %cst_15 {dimension_numbers = #tpu.dot_dimension_numbers<[1], [0], [0], [1], [0, 0, 1, 1], [], []>} : vector<16x128xf32>, vector<128x4xf32>, vector<16x4xf32> -> vector<16x4xf32>
    %15 = arith.truncf %14 : vector<16x4xf32> to vector<16x4xbf16>
    %cst_16 = arith.constant dense<0.000000e+00> : vector<8x16xf32>
    %16 = tpu.matmul %7, %11, %cst_16 {dimension_numbers = #tpu.dot_dimension_numbers<[1], [1], [0], [0], [0, 0, 1, 0], [], []>} : vector<8x4xbf16>, vector<16x4xbf16>, vector<8x16xf32> -> vector<8x16xf32>
    %cst_17 = arith.constant dense<0xFF800000> : vector<8xf32>
    %17 = vector.multi_reduction <maximumf>, %16, %cst_17 [1] : vector<8x16xf32> to vector<8xf32>
    %18 = vector.shape_cast %17 : vector<8xf32> to vector<8x1xf32>
    %19 = vector.broadcast %18 : vector<8x1xf32> to vector<8x16xf32>
    %20 = arith.subf %16, %19 : vector<8x16xf32>
    %21 = math.exp %20 : vector<8x16xf32>
    %cst_18 = arith.constant dense<0.000000e+00> : vector<8xf32>
    %22 = vector.multi_reduction <add>, %21, %cst_18 [1] : vector<8x16xf32> to vector<8xf32>
    %23 = vector.shape_cast %22 : vector<8xf32> to vector<8x1xf32>
    %24 = tpu.reciprocal %23 {approx = true} : vector<8x1xf32> -> vector<8x1xf32>
    %25 = vector.broadcast %24 : vector<8x1xf32> to vector<8x16xf32>
    %26 = arith.mulf %21, %25 : vector<8x16xf32>
    %27 = arith.truncf %26 : vector<8x16xf32> to vector<8x16xbf16>
    %cst_19 = arith.constant dense<0.000000e+00> : vector<8x4xf32>
    %28 = tpu.matmul %27, %15, %cst_19 {dimension_numbers = #tpu.dot_dimension_numbers<[1], [0], [0], [1], [0, 0, 1, 1], [], []>} : vector<8x16xbf16>, vector<16x4xbf16>, vector<8x4xf32> -> vector<8x4xf32>
    %c0_20 = arith.constant 0 : index
    %c0_21 = arith.constant 0 : index
    %29 = vector.load %arg10[%c0_20, %c0_21] : memref<8x32xf32, #tpu.memory_space<vmem>>, vector<8x4xf32>
    tpu.vector_store %arg10[%c0_20, %c0_21], %28 {strides = array<i32>} : memref<8x32xf32, #tpu.memory_space<vmem>>, vector<8x4xf32>,
    %c1 = arith.constant 1 : index
    %c0_22 = arith.constant 0 : index
    %c0_23 = arith.constant 0 : index
    %30 = vector.load %arg4[%c1, %c0_22, %c0_23] : memref<8x128x4xf32, #tpu.memory_space<vmem>>, vector<1x128x4xf32>
    %31 = vector.shape_cast %30 : vector<1x128x4xf32> to vector<128x4xf32>
    %cst_24 = arith.constant dense<0.000000e+00> : vector<8x4xf32>
    %32 = tpu.matmul %1, %31, %cst_24 {dimension_numbers = #tpu.dot_dimension_numbers<[1], [0], [0], [1], [0, 0, 1, 1], [], []>} : vector<8x128xf32>, vector<128x4xf32>, vector<8x4xf32> -> vector<8x4xf32>
    %33 = arith.truncf %32 : vector<8x4xf32> to vector<8x4xbf16>
    %c1_25 = arith.constant 1 : index
    %c0_26 = arith.constant 0 : index
    %c0_27 = arith.constant 0 : index
    %34 = vector.load %arg5[%c1_25, %c0_26, %c0_27] : memref<8x128x4xf32, #tpu.memory_space<vmem>>, vector<1x128x4xf32>
    %35 = vector.shape_cast %34 : vector<1x128x4xf32> to vector<128x4xf32>
    %cst_28 = arith.constant dense<0.000000e+00> : vector<16x4xf32>
    %36 = tpu.matmul %3, %35, %cst_28 {dimension_numbers = #tpu.dot_dimension_numbers<[1], [0], [0], [1], [0, 0, 1, 1], [], []>} : vector<16x128xf32>, vector<128x4xf32>, vector<16x4xf32> -> vector<16x4xf32>
    %37 = arith.truncf %36 : vector<16x4xf32> to vector<16x4xbf16>
    %c1_29 = arith.constant 1 : index
    %c0_30 = arith.constant 0 : index
    %c0_31 = arith.constant 0 : index
    %38 = vector.load %arg6[%c1_29, %c0_30, %c0_31] : memref<8x128x4xf32, #tpu.memory_space<vmem>>, vector<1x128x4xf32>
    %39 = vector.shape_cast %38 : vector<1x128x4xf32> to vector<128x4xf32>
    %cst_32 = arith.constant dense<0.000000e+00> : vector<16x4xf32>
    %40 = tpu.matmul %3, %39, %cst_32 {dimension_numbers = #tpu.dot_dimension_numbers<[1], [0], [0], [1], [0, 0, 1, 1], [], []>} : vector<16x128xf32>, vector<128x4xf32>, vector<16x4xf32> -> vector<16x4xf32>
    %41 = arith.truncf %40 : vector<16x4xf32> to vector<16x4xbf16>
    %cst_33 = arith.constant dense<0.000000e+00> : vector<8x16xf32>
    %42 = tpu.matmul %33, %37, %cst_33 {dimension_numbers = #tpu.dot_dimension_numbers<[1], [1], [0], [0], [0, 0, 1, 0], [], []>} : vector<8x4xbf16>, vector<16x4xbf16>, vector<8x16xf32> -> vector<8x16xf32>
    %cst_34 = arith.constant dense<0xFF800000> : vector<8xf32>
    %43 = vector.multi_reduction <maximumf>, %42, %cst_34 [1] : vector<8x16xf32> to vector<8xf32>
    %44 = vector.shape_cast %43 : vector<8xf32> to vector<8x1xf32>
    %45 = vector.broadcast %44 : vector<8x1xf32> to vector<8x16xf32>
    %46 = arith.subf %42, %45 : vector<8x16xf32>
    %47 = math.exp %46 : vector<8x16xf32>
    %cst_35 = arith.constant dense<0.000000e+00> : vector<8xf32>
    %48 = vector.multi_reduction <add>, %47, %cst_35 [1] : vector<8x16xf32> to vector<8xf32>
    %49 = vector.shape_cast %48 : vector<8xf32> to vector<8x1xf32>
    %50 = tpu.reciprocal %49 {approx = true} : vector<8x1xf32> -> vector<8x1xf32>
    %51 = vector.broadcast %50 : vector<8x1xf32> to vector<8x16xf32>
    %52 = arith.mulf %47, %51 : vector<8x16xf32>
    %53 = arith.truncf %52 : vector<8x16xf32> to vector<8x16xbf16>
    %cst_36 = arith.constant dense<0.000000e+00> : vector<8x4xf32>
    %54 = tpu.matmul %53, %41, %cst_36 {dimension_numbers = #tpu.dot_dimension_numbers<[1], [0], [0], [1], [0, 0, 1, 1], [], []>} : vector<8x16xbf16>, vector<16x4xbf16>, vector<8x4xf32> -> vector<8x4xf32>
    %c0_37 = arith.constant 0 : index
    %c4 = arith.constant 4 : index
    %55 = vector.load %arg10[%c0_37, %c4] : memref<8x32xf32, #tpu.memory_space<vmem>>, vector<8x4xf32>
    tpu.vector_store %arg10[%c0_37, %c4], %54 {strides = array<i32>} : memref<8x32xf32, #tpu.memory_space<vmem>>, vector<8x4xf32>,
    %c2 = arith.constant 2 : index
    %c0_38 = arith.constant 0 : index
    %c0_39 = arith.constant 0 : index
    %56 = vector.load %arg4[%c2, %c0_38, %c0_39] : memref<8x128x4xf32, #tpu.memory_space<vmem>>, vector<1x128x4xf32>
    %57 = vector.shape_cast %56 : vector<1x128x4xf32> to vector<128x4xf32>
    %cst_40 = arith.constant dense<0.000000e+00> : vector<8x4xf32>
    %58 = tpu.matmul %1, %57, %cst_40 {dimension_numbers = #tpu.dot_dimension_numbers<[1], [0], [0], [1], [0, 0, 1, 1], [], []>} : vector<8x128xf32>, vector<128x4xf32>, vector<8x4xf32> -> vector<8x4xf32>
    %59 = arith.truncf %58 : vector<8x4xf32> to vector<8x4xbf16>
    %c2_41 = arith.constant 2 : index
    %c0_42 = arith.constant 0 : index
    %c0_43 = arith.constant 0 : index
    %60 = vector.load %arg5[%c2_41, %c0_42, %c0_43] : memref<8x128x4xf32, #tpu.memory_space<vmem>>, vector<1x128x4xf32>
    %61 = vector.shape_cast %60 : vector<1x128x4xf32> to vector<128x4xf32>
    %cst_44 = arith.constant dense<0.000000e+00> : vector<16x4xf32>
    %62 = tpu.matmul %3, %61, %cst_44 {dimension_numbers = #tpu.dot_dimension_numbers<[1], [0], [0], [1], [0, 0, 1, 1], [], []>} : vector<16x128xf32>, vector<128x4xf32>, vector<16x4xf32> -> vector<16x4xf32>
    %63 = arith.truncf %62 : vector<16x4xf32> to vector<16x4xbf16>
    %c2_45 = arith.constant 2 : index
    %c0_46 = arith.constant 0 : index
    %c0_47 = arith.constant 0 : index
    %64 = vector.load %arg6[%c2_45, %c0_46, %c0_47] : memref<8x128x4xf32, #tpu.memory_space<vmem>>, vector<1x128x4xf32>
    %65 = vector.shape_cast %64 : vector<1x128x4xf32> to vector<128x4xf32>
    %cst_48 = arith.constant dense<0.000000e+00> : vector<16x4xf32>
    %66 = tpu.matmul %3, %65, %cst_48 {dimension_numbers = #tpu.dot_dimension_numbers<[1], [0], [0], [1], [0, 0, 1, 1], [], []>} : vector<16x128xf32>, vector<128x4xf32>, vector<16x4xf32> -> vector<16x4xf32>
    %67 = arith.truncf %66 : vector<16x4xf32> to vector<16x4xbf16>
    %cst_49 = arith.constant dense<0.000000e+00> : vector<8x16xf32>
    %68 = tpu.matmul %59, %63, %cst_49 {dimension_numbers = #tpu.dot_dimension_numbers<[1], [1], [0], [0], [0, 0, 1, 0], [], []>} : vector<8x4xbf16>, vector<16x4xbf16>, vector<8x16xf32> -> vector<8x16xf32>
    %cst_50 = arith.constant dense<0xFF800000> : vector<8xf32>
    %69 = vector.multi_reduction <maximumf>, %68, %cst_50 [1] : vector<8x16xf32> to vector<8xf32>
    %70 = vector.shape_cast %69 : vector<8xf32> to vector<8x1xf32>
    %71 = vector.broadcast %70 : vector<8x1xf32> to vector<8x16xf32>
    %72 = arith.subf %68, %71 : vector<8x16xf32>
    %73 = math.exp %72 : vector<8x16xf32>
    %cst_51 = arith.constant dense<0.000000e+00> : vector<8xf32>
    %74 = vector.multi_reduction <add>, %73, %cst_51 [1] : vector<8x16xf32> to vector<8xf32>
    %75 = vector.shape_cast %74 : vector<8xf32> to vector<8x1xf32>
    %76 = tpu.reciprocal %75 {approx = true} : vector<8x1xf32> -> vector<8x1xf32>
    %77 = vector.broadcast %76 : vector<8x1xf32> to vector<8x16xf32>
    %78 = arith.mulf %73, %77 : vector<8x16xf32>
    %79 = arith.truncf %78 : vector<8x16xf32> to vector<8x16xbf16>
    %cst_52 = arith.constant dense<0.000000e+00> : vector<8x4xf32>
    %80 = tpu.matmul %79, %67, %cst_52 {dimension_numbers = #tpu.dot_dimension_numbers<[1], [0], [0], [1], [0, 0, 1, 1], [], []>} : vector<8x16xbf16>, vector<16x4xbf16>, vector<8x4xf32> -> vector<8x4xf32>
    %c0_53 = arith.constant 0 : index
    %c8 = arith.constant 8 : index
    %81 = vector.load %arg10[%c0_53, %c8] : memref<8x32xf32, #tpu.memory_space<vmem>>, vector<8x4xf32>
    tpu.vector_store %arg10[%c0_53, %c8], %80 {strides = array<i32>} : memref<8x32xf32, #tpu.memory_space<vmem>>, vector<8x4xf32>,
    %c3 = arith.constant 3 : index
    %c0_54 = arith.constant 0 : index
    %c0_55 = arith.constant 0 : index
    %82 = vector.load %arg4[%c3, %c0_54, %c0_55] : memref<8x128x4xf32, #tpu.memory_space<vmem>>, vector<1x128x4xf32>
    %83 = vector.shape_cast %82 : vector<1x128x4xf32> to vector<128x4xf32>
    %cst_56 = arith.constant dense<0.000000e+00> : vector<8x4xf32>
    %84 = tpu.matmul %1, %83, %cst_56 {dimension_numbers = #tpu.dot_dimension_numbers<[1], [0], [0], [1], [0, 0, 1, 1], [], []>} : vector<8x128xf32>, vector<128x4xf32>, vector<8x4xf32> -> vector<8x4xf32>
    %85 = arith.truncf %84 : vector<8x4xf32> to vector<8x4xbf16>
    %c3_57 = arith.constant 3 : index
    %c0_58 = arith.constant 0 : index
    %c0_59 = arith.constant 0 : index
    %86 = vector.load %arg5[%c3_57, %c0_58, %c0_59] : memref<8x128x4xf32, #tpu.memory_space<vmem>>, vector<1x128x4xf32>
    %87 = vector.shape_cast %86 : vector<1x128x4xf32> to vector<128x4xf32>
    %cst_60 = arith.constant dense<0.000000e+00> : vector<16x4xf32>
    %88 = tpu.matmul %3, %87, %cst_60 {dimension_numbers = #tpu.dot_dimension_numbers<[1], [0], [0], [1], [0, 0, 1, 1], [], []>} : vector<16x128xf32>, vector<128x4xf32>, vector<16x4xf32> -> vector<16x4xf32>
    %89 = arith.truncf %88 : vector<16x4xf32> to vector<16x4xbf16>
    %c3_61 = arith.constant 3 : index
    %c0_62 = arith.constant 0 : index
    %c0_63 = arith.constant 0 : index
    %90 = vector.load %arg6[%c3_61, %c0_62, %c0_63] : memref<8x128x4xf32, #tpu.memory_space<vmem>>, vector<1x128x4xf32>
    %91 = vector.shape_cast %90 : vector<1x128x4xf32> to vector<128x4xf32>
    %cst_64 = arith.constant dense<0.000000e+00> : vector<16x4xf32>
    %92 = tpu.matmul %3, %91, %cst_64 {dimension_numbers = #tpu.dot_dimension_numbers<[1], [0], [0], [1], [0, 0, 1, 1], [], []>} : vector<16x128xf32>, vector<128x4xf32>, vector<16x4xf32> -> vector<16x4xf32>
    %93 = arith.truncf %92 : vector<16x4xf32> to vector<16x4xbf16>
    %cst_65 = arith.constant dense<0.000000e+00> : vector<8x16xf32>
    %94 = tpu.matmul %85, %89, %cst_65 {dimension_numbers = #tpu.dot_dimension_numbers<[1], [1], [0], [0], [0, 0, 1, 0], [], []>} : vector<8x4xbf16>, vector<16x4xbf16>, vector<8x16xf32> -> vector<8x16xf32>
    %cst_66 = arith.constant dense<0xFF800000> : vector<8xf32>
    %95 = vector.multi_reduction <maximumf>, %94, %cst_66 [1] : vector<8x16xf32> to vector<8xf32>
    %96 = vector.shape_cast %95 : vector<8xf32> to vector<8x1xf32>
    %97 = vector.broadcast %96 : vector<8x1xf32> to vector<8x16xf32>
    %98 = arith.subf %94, %97 : vector<8x16xf32>
    %99 = math.exp %98 : vector<8x16xf32>
    %cst_67 = arith.constant dense<0.000000e+00> : vector<8xf32>
    %100 = vector.multi_reduction <add>, %99, %cst_67 [1] : vector<8x16xf32> to vector<8xf32>
    %101 = vector.shape_cast %100 : vector<8xf32> to vector<8x1xf32>
    %102 = tpu.reciprocal %101 {approx = true} : vector<8x1xf32> -> vector<8x1xf32>
    %103 = vector.broadcast %102 : vector<8x1xf32> to vector<8x16xf32>
    %104 = arith.mulf %99, %103 : vector<8x16xf32>
    %105 = arith.truncf %104 : vector<8x16xf32> to vector<8x16xbf16>
    %cst_68 = arith.constant dense<0.000000e+00> : vector<8x4xf32>
    %106 = tpu.matmul %105, %93, %cst_68 {dimension_numbers = #tpu.dot_dimension_numbers<[1], [0], [0], [1], [0, 0, 1, 1], [], []>} : vector<8x16xbf16>, vector<16x4xbf16>, vector<8x4xf32> -> vector<8x4xf32>
    %c0_69 = arith.constant 0 : index
    %c12 = arith.constant 12 : index
    %107 = vector.load %arg10[%c0_69, %c12] : memref<8x32xf32, #tpu.memory_space<vmem>>, vector<8x4xf32>
    tpu.vector_store %arg10[%c0_69, %c12], %106 {strides = array<i32>} : memref<8x32xf32, #tpu.memory_space<vmem>>, vector<8x4xf32>,
    %c4_70 = arith.constant 4 : index
    %c0_71 = arith.constant 0 : index
    %c0_72 = arith.constant 0 : index
    %108 = vector.load %arg4[%c4_70, %c0_71, %c0_72] : memref<8x128x4xf32, #tpu.memory_space<vmem>>, vector<1x128x4xf32>
    %109 = vector.shape_cast %108 : vector<1x128x4xf32> to vector<128x4xf32>
    %cst_73 = arith.constant dense<0.000000e+00> : vector<8x4xf32>
    %110 = tpu.matmul %1, %109, %cst_73 {dimension_numbers = #tpu.dot_dimension_numbers<[1], [0], [0], [1], [0, 0, 1, 1], [], []>} : vector<8x128xf32>, vector<128x4xf32>, vector<8x4xf32> -> vector<8x4xf32>
    %111 = arith.truncf %110 : vector<8x4xf32> to vector<8x4xbf16>
    %c4_74 = arith.constant 4 : index
    %c0_75 = arith.constant 0 : index
    %c0_76 = arith.constant 0 : index
    %112 = vector.load %arg5[%c4_74, %c0_75, %c0_76] : memref<8x128x4xf32, #tpu.memory_space<vmem>>, vector<1x128x4xf32>
    %113 = vector.shape_cast %112 : vector<1x128x4xf32> to vector<128x4xf32>
    %cst_77 = arith.constant dense<0.000000e+00> : vector<16x4xf32>
    %114 = tpu.matmul %3, %113, %cst_77 {dimension_numbers = #tpu.dot_dimension_numbers<[1], [0], [0], [1], [0, 0, 1, 1], [], []>} : vector<16x128xf32>, vector<128x4xf32>, vector<16x4xf32> -> vector<16x4xf32>
    %115 = arith.truncf %114 : vector<16x4xf32> to vector<16x4xbf16>
    %c4_78 = arith.constant 4 : index
    %c0_79 = arith.constant 0 : index
    %c0_80 = arith.constant 0 : index
    %116 = vector.load %arg6[%c4_78, %c0_79, %c0_80] : memref<8x128x4xf32, #tpu.memory_space<vmem>>, vector<1x128x4xf32>
    %117 = vector.shape_cast %116 : vector<1x128x4xf32> to vector<128x4xf32>
    %cst_81 = arith.constant dense<0.000000e+00> : vector<16x4xf32>
    %118 = tpu.matmul %3, %117, %cst_81 {dimension_numbers = #tpu.dot_dimension_numbers<[1], [0], [0], [1], [0, 0, 1, 1], [], []>} : vector<16x128xf32>, vector<128x4xf32>, vector<16x4xf32> -> vector<16x4xf32>
    %119 = arith.truncf %118 : vector<16x4xf32> to vector<16x4xbf16>
    %cst_82 = arith.constant dense<0.000000e+00> : vector<8x16xf32>
    %120 = tpu.matmul %111, %115, %cst_82 {dimension_numbers = #tpu.dot_dimension_numbers<[1], [1], [0], [0], [0, 0, 1, 0], [], []>} : vector<8x4xbf16>, vector<16x4xbf16>, vector<8x16xf32> -> vector<8x16xf32>
    %cst_83 = arith.constant dense<0xFF800000> : vector<8xf32>
    %121 = vector.multi_reduction <maximumf>, %120, %cst_83 [1] : vector<8x16xf32> to vector<8xf32>
    %122 = vector.shape_cast %121 : vector<8xf32> to vector<8x1xf32>
    %123 = vector.broadcast %122 : vector<8x1xf32> to vector<8x16xf32>
    %124 = arith.subf %120, %123 : vector<8x16xf32>
    %125 = math.exp %124 : vector<8x16xf32>
    %cst_84 = arith.constant dense<0.000000e+00> : vector<8xf32>
    %126 = vector.multi_reduction <add>, %125, %cst_84 [1] : vector<8x16xf32> to vector<8xf32>
    %127 = vector.shape_cast %126 : vector<8xf32> to vector<8x1xf32>
    %128 = tpu.reciprocal %127 {approx = true} : vector<8x1xf32> -> vector<8x1xf32>
    %129 = vector.broadcast %128 : vector<8x1xf32> to vector<8x16xf32>
    %130 = arith.mulf %125, %129 : vector<8x16xf32>
    %131 = arith.truncf %130 : vector<8x16xf32> to vector<8x16xbf16>
    %cst_85 = arith.constant dense<0.000000e+00> : vector<8x4xf32>
    %132 = tpu.matmul %131, %119, %cst_85 {dimension_numbers = #tpu.dot_dimension_numbers<[1], [0], [0], [1], [0, 0, 1, 1], [], []>} : vector<8x16xbf16>, vector<16x4xbf16>, vector<8x4xf32> -> vector<8x4xf32>
    %c0_86 = arith.constant 0 : index
    %c16 = arith.constant 16 : index
    %133 = vector.load %arg10[%c0_86, %c16] : memref<8x32xf32, #tpu.memory_space<vmem>>, vector<8x4xf32>
    tpu.vector_store %arg10[%c0_86, %c16], %132 {strides = array<i32>} : memref<8x32xf32, #tpu.memory_space<vmem>>, vector<8x4xf32>,
    %c5 = arith.constant 5 : index
    %c0_87 = arith.constant 0 : index
    %c0_88 = arith.constant 0 : index
    %134 = vector.load %arg4[%c5, %c0_87, %c0_88] : memref<8x128x4xf32, #tpu.memory_space<vmem>>, vector<1x128x4xf32>
    %135 = vector.shape_cast %134 : vector<1x128x4xf32> to vector<128x4xf32>
    %cst_89 = arith.constant dense<0.000000e+00> : vector<8x4xf32>
    %136 = tpu.matmul %1, %135, %cst_89 {dimension_numbers = #tpu.dot_dimension_numbers<[1], [0], [0], [1], [0, 0, 1, 1], [], []>} : vector<8x128xf32>, vector<128x4xf32>, vector<8x4xf32> -> vector<8x4xf32>
    %137 = arith.truncf %136 : vector<8x4xf32> to vector<8x4xbf16>
    %c5_90 = arith.constant 5 : index
    %c0_91 = arith.constant 0 : index
    %c0_92 = arith.constant 0 : index
    %138 = vector.load %arg5[%c5_90, %c0_91, %c0_92] : memref<8x128x4xf32, #tpu.memory_space<vmem>>, vector<1x128x4xf32>
    %139 = vector.shape_cast %138 : vector<1x128x4xf32> to vector<128x4xf32>
    %cst_93 = arith.constant dense<0.000000e+00> : vector<16x4xf32>
    %140 = tpu.matmul %3, %139, %cst_93 {dimension_numbers = #tpu.dot_dimension_numbers<[1], [0], [0], [1], [0, 0, 1, 1], [], []>} : vector<16x128xf32>, vector<128x4xf32>, vector<16x4xf32> -> vector<16x4xf32>
    %141 = arith.truncf %140 : vector<16x4xf32> to vector<16x4xbf16>
    %c5_94 = arith.constant 5 : index
    %c0_95 = arith.constant 0 : index
    %c0_96 = arith.constant 0 : index
    %142 = vector.load %arg6[%c5_94, %c0_95, %c0_96] : memref<8x128x4xf32, #tpu.memory_space<vmem>>, vector<1x128x4xf32>
    %143 = vector.shape_cast %142 : vector<1x128x4xf32> to vector<128x4xf32>
    %cst_97 = arith.constant dense<0.000000e+00> : vector<16x4xf32>
    %144 = tpu.matmul %3, %143, %cst_97 {dimension_numbers = #tpu.dot_dimension_numbers<[1], [0], [0], [1], [0, 0, 1, 1], [], []>} : vector<16x128xf32>, vector<128x4xf32>, vector<16x4xf32> -> vector<16x4xf32>
    %145 = arith.truncf %144 : vector<16x4xf32> to vector<16x4xbf16>
    %cst_98 = arith.constant dense<0.000000e+00> : vector<8x16xf32>
    %146 = tpu.matmul %137, %141, %cst_98 {dimension_numbers = #tpu.dot_dimension_numbers<[1], [1], [0], [0], [0, 0, 1, 0], [], []>} : vector<8x4xbf16>, vector<16x4xbf16>, vector<8x16xf32> -> vector<8x16xf32>
    %cst_99 = arith.constant dense<0xFF800000> : vector<8xf32>
    %147 = vector.multi_reduction <maximumf>, %146, %cst_99 [1] : vector<8x16xf32> to vector<8xf32>
    %148 = vector.shape_cast %147 : vector<8xf32> to vector<8x1xf32>
    %149 = vector.broadcast %148 : vector<8x1xf32> to vector<8x16xf32>
    %150 = arith.subf %146, %149 : vector<8x16xf32>
    %151 = math.exp %150 : vector<8x16xf32>
    %cst_100 = arith.constant dense<0.000000e+00> : vector<8xf32>
    %152 = vector.multi_reduction <add>, %151, %cst_100 [1] : vector<8x16xf32> to vector<8xf32>
    %153 = vector.shape_cast %152 : vector<8xf32> to vector<8x1xf32>
    %154 = tpu.reciprocal %153 {approx = true} : vector<8x1xf32> -> vector<8x1xf32>
    %155 = vector.broadcast %154 : vector<8x1xf32> to vector<8x16xf32>
    %156 = arith.mulf %151, %155 : vector<8x16xf32>
    %157 = arith.truncf %156 : vector<8x16xf32> to vector<8x16xbf16>
    %cst_101 = arith.constant dense<0.000000e+00> : vector<8x4xf32>
    %158 = tpu.matmul %157, %145, %cst_101 {dimension_numbers = #tpu.dot_dimension_numbers<[1], [0], [0], [1], [0, 0, 1, 1], [], []>} : vector<8x16xbf16>, vector<16x4xbf16>, vector<8x4xf32> -> vector<8x4xf32>
    %c0_102 = arith.constant 0 : index
    %c20 = arith.constant 20 : index
    %159 = vector.load %arg10[%c0_102, %c20] : memref<8x32xf32, #tpu.memory_space<vmem>>, vector<8x4xf32>
    tpu.vector_store %arg10[%c0_102, %c20], %158 {strides = array<i32>} : memref<8x32xf32, #tpu.memory_space<vmem>>, vector<8x4xf32>,
    %c6 = arith.constant 6 : index
    %c0_103 = arith.constant 0 : index
    %c0_104 = arith.constant 0 : index
    %160 = vector.load %arg4[%c6, %c0_103, %c0_104] : memref<8x128x4xf32, #tpu.memory_space<vmem>>, vector<1x128x4xf32>
    %161 = vector.shape_cast %160 : vector<1x128x4xf32> to vector<128x4xf32>
    %cst_105 = arith.constant dense<0.000000e+00> : vector<8x4xf32>
    %162 = tpu.matmul %1, %161, %cst_105 {dimension_numbers = #tpu.dot_dimension_numbers<[1], [0], [0], [1], [0, 0, 1, 1], [], []>} : vector<8x128xf32>, vector<128x4xf32>, vector<8x4xf32> -> vector<8x4xf32>
    %163 = arith.truncf %162 : vector<8x4xf32> to vector<8x4xbf16>
    %c6_106 = arith.constant 6 : index
    %c0_107 = arith.constant 0 : index
    %c0_108 = arith.constant 0 : index
    %164 = vector.load %arg5[%c6_106, %c0_107, %c0_108] : memref<8x128x4xf32, #tpu.memory_space<vmem>>, vector<1x128x4xf32>
    %165 = vector.shape_cast %164 : vector<1x128x4xf32> to vector<128x4xf32>
    %cst_109 = arith.constant dense<0.000000e+00> : vector<16x4xf32>
    %166 = tpu.matmul %3, %165, %cst_109 {dimension_numbers = #tpu.dot_dimension_numbers<[1], [0], [0], [1], [0, 0, 1, 1], [], []>} : vector<16x128xf32>, vector<128x4xf32>, vector<16x4xf32> -> vector<16x4xf32>
    %167 = arith.truncf %166 : vector<16x4xf32> to vector<16x4xbf16>
    %c6_110 = arith.constant 6 : index
    %c0_111 = arith.constant 0 : index
    %c0_112 = arith.constant 0 : index
    %168 = vector.load %arg6[%c6_110, %c0_111, %c0_112] : memref<8x128x4xf32, #tpu.memory_space<vmem>>, vector<1x128x4xf32>
    %169 = vector.shape_cast %168 : vector<1x128x4xf32> to vector<128x4xf32>
    %cst_113 = arith.constant dense<0.000000e+00> : vector<16x4xf32>
    %170 = tpu.matmul %3, %169, %cst_113 {dimension_numbers = #tpu.dot_dimension_numbers<[1], [0], [0], [1], [0, 0, 1, 1], [], []>} : vector<16x128xf32>, vector<128x4xf32>, vector<16x4xf32> -> vector<16x4xf32>
    %171 = arith.truncf %170 : vector<16x4xf32> to vector<16x4xbf16>
    %cst_114 = arith.constant dense<0.000000e+00> : vector<8x16xf32>
    %172 = tpu.matmul %163, %167, %cst_114 {dimension_numbers = #tpu.dot_dimension_numbers<[1], [1], [0], [0], [0, 0, 1, 0], [], []>} : vector<8x4xbf16>, vector<16x4xbf16>, vector<8x16xf32> -> vector<8x16xf32>
    %cst_115 = arith.constant dense<0xFF800000> : vector<8xf32>
    %173 = vector.multi_reduction <maximumf>, %172, %cst_115 [1] : vector<8x16xf32> to vector<8xf32>
    %174 = vector.shape_cast %173 : vector<8xf32> to vector<8x1xf32>
    %175 = vector.broadcast %174 : vector<8x1xf32> to vector<8x16xf32>
    %176 = arith.subf %172, %175 : vector<8x16xf32>
    %177 = math.exp %176 : vector<8x16xf32>
    %cst_116 = arith.constant dense<0.000000e+00> : vector<8xf32>
    %178 = vector.multi_reduction <add>, %177, %cst_116 [1] : vector<8x16xf32> to vector<8xf32>
    %179 = vector.shape_cast %178 : vector<8xf32> to vector<8x1xf32>
    %180 = tpu.reciprocal %179 {approx = true} : vector<8x1xf32> -> vector<8x1xf32>
    %181 = vector.broadcast %180 : vector<8x1xf32> to vector<8x16xf32>
    %182 = arith.mulf %177, %181 : vector<8x16xf32>
    %183 = arith.truncf %182 : vector<8x16xf32> to vector<8x16xbf16>
    %cst_117 = arith.constant dense<0.000000e+00> : vector<8x4xf32>
    %184 = tpu.matmul %183, %171, %cst_117 {dimension_numbers = #tpu.dot_dimension_numbers<[1], [0], [0], [1], [0, 0, 1, 1], [], []>} : vector<8x16xbf16>, vector<16x4xbf16>, vector<8x4xf32> -> vector<8x4xf32>
    %c0_118 = arith.constant 0 : index
    %c24 = arith.constant 24 : index
    %185 = vector.load %arg10[%c0_118, %c24] : memref<8x32xf32, #tpu.memory_space<vmem>>, vector<8x4xf32>
    tpu.vector_store %arg10[%c0_118, %c24], %184 {strides = array<i32>} : memref<8x32xf32, #tpu.memory_space<vmem>>, vector<8x4xf32>,
    %c7 = arith.constant 7 : index
    %c0_119 = arith.constant 0 : index
    %c0_120 = arith.constant 0 : index
    %186 = vector.load %arg4[%c7, %c0_119, %c0_120] : memref<8x128x4xf32, #tpu.memory_space<vmem>>, vector<1x128x4xf32>
    %187 = vector.shape_cast %186 : vector<1x128x4xf32> to vector<128x4xf32>
    %cst_121 = arith.constant dense<0.000000e+00> : vector<8x4xf32>
    %188 = tpu.matmul %1, %187, %cst_121 {dimension_numbers = #tpu.dot_dimension_numbers<[1], [0], [0], [1], [0, 0, 1, 1], [], []>} : vector<8x128xf32>, vector<128x4xf32>, vector<8x4xf32> -> vector<8x4xf32>
    %189 = arith.truncf %188 : vector<8x4xf32> to vector<8x4xbf16>
    %c7_122 = arith.constant 7 : index
    %c0_123 = arith.constant 0 : index
    %c0_124 = arith.constant 0 : index
    %190 = vector.load %arg5[%c7_122, %c0_123, %c0_124] : memref<8x128x4xf32, #tpu.memory_space<vmem>>, vector<1x128x4xf32>
    %191 = vector.shape_cast %190 : vector<1x128x4xf32> to vector<128x4xf32>
    %cst_125 = arith.constant dense<0.000000e+00> : vector<16x4xf32>
    %192 = tpu.matmul %3, %191, %cst_125 {dimension_numbers = #tpu.dot_dimension_numbers<[1], [0], [0], [1], [0, 0, 1, 1], [], []>} : vector<16x128xf32>, vector<128x4xf32>, vector<16x4xf32> -> vector<16x4xf32>
    %193 = arith.truncf %192 : vector<16x4xf32> to vector<16x4xbf16>
    %c7_126 = arith.constant 7 : index
    %c0_127 = arith.constant 0 : index
    %c0_128 = arith.constant 0 : index
    %194 = vector.load %arg6[%c7_126, %c0_127, %c0_128] : memref<8x128x4xf32, #tpu.memory_space<vmem>>, vector<1x128x4xf32>
    %195 = vector.shape_cast %194 : vector<1x128x4xf32> to vector<128x4xf32>
    %cst_129 = arith.constant dense<0.000000e+00> : vector<16x4xf32>
    %196 = tpu.matmul %3, %195, %cst_129 {dimension_numbers = #tpu.dot_dimension_numbers<[1], [0], [0], [1], [0, 0, 1, 1], [], []>} : vector<16x128xf32>, vector<128x4xf32>, vector<16x4xf32> -> vector<16x4xf32>
    %197 = arith.truncf %196 : vector<16x4xf32> to vector<16x4xbf16>
    %cst_130 = arith.constant dense<0.000000e+00> : vector<8x16xf32>
    %198 = tpu.matmul %189, %193, %cst_130 {dimension_numbers = #tpu.dot_dimension_numbers<[1], [1], [0], [0], [0, 0, 1, 0], [], []>} : vector<8x4xbf16>, vector<16x4xbf16>, vector<8x16xf32> -> vector<8x16xf32>
    %cst_131 = arith.constant dense<0xFF800000> : vector<8xf32>
    %199 = vector.multi_reduction <maximumf>, %198, %cst_131 [1] : vector<8x16xf32> to vector<8xf32>
    %200 = vector.shape_cast %199 : vector<8xf32> to vector<8x1xf32>
    %201 = vector.broadcast %200 : vector<8x1xf32> to vector<8x16xf32>
    %202 = arith.subf %198, %201 : vector<8x16xf32>
    %203 = math.exp %202 : vector<8x16xf32>
    %cst_132 = arith.constant dense<0.000000e+00> : vector<8xf32>
    %204 = vector.multi_reduction <add>, %203, %cst_132 [1] : vector<8x16xf32> to vector<8xf32>
    %205 = vector.shape_cast %204 : vector<8xf32> to vector<8x1xf32>
    %206 = tpu.reciprocal %205 {approx = true} : vector<8x1xf32> -> vector<8x1xf32>
    %207 = vector.broadcast %206 : vector<8x1xf32> to vector<8x16xf32>
    %208 = arith.mulf %203, %207 : vector<8x16xf32>
    %209 = arith.truncf %208 : vector<8x16xf32> to vector<8x16xbf16>
    %cst_133 = arith.constant dense<0.000000e+00> : vector<8x4xf32>
    %210 = tpu.matmul %209, %197, %cst_133 {dimension_numbers = #tpu.dot_dimension_numbers<[1], [0], [0], [1], [0, 0, 1, 1], [], []>} : vector<8x16xbf16>, vector<16x4xbf16>, vector<8x4xf32> -> vector<8x4xf32>
    %c0_134 = arith.constant 0 : index
    %c28 = arith.constant 28 : index
    %211 = vector.load %arg10[%c0_134, %c28] : memref<8x32xf32, #tpu.memory_space<vmem>>, vector<8x4xf32>
    tpu.vector_store %arg10[%c0_134, %c28], %210 {strides = array<i32>} : memref<8x32xf32, #tpu.memory_space<vmem>>, vector<8x4xf32>,
    %c0_135 = arith.constant 0 : index
    %c0_136 = arith.constant 0 : index
    %212 = vector.load %arg10[%c0_135, %c0_136] : memref<8x32xf32, #tpu.memory_space<vmem>>, vector<8x32xf32>
    %c0_137 = arith.constant 0 : index
    %c0_138 = arith.constant 0 : index
    %213 = vector.load %arg7[%c0_137, %c0_138] : memref<32x128xf32, #tpu.memory_space<vmem>>, vector<32x128xf32>
    %cst_139 = arith.constant dense<0.000000e+00> : vector<8x128xf32>
    %214 = tpu.matmul %212, %213, %cst_139 {dimension_numbers = #tpu.dot_dimension_numbers<[1], [0], [0], [1], [0, 0, 1, 1], [], []>} : vector<8x32xf32>, vector<32x128xf32>, vector<8x128xf32> -> vector<8x128xf32>
    %c0_140 = arith.constant 0 : index
    %c0_141 = arith.constant 0 : index
    %215 = vector.load %arg8[%c0_140, %c0_141] : memref<1x128xf32, #tpu.memory_space<vmem>>, vector<1x128xf32>
    %216 = vector.broadcast %215 : vector<1x128xf32> to vector<8x128xf32>
    %217 = arith.addf %214, %216 : vector<8x128xf32>
    %c0_142 = arith.constant 0 : index
    %c0_143 = arith.constant 0 : index
    %c0_144 = arith.constant 0 : index
    %218 = vector.load %arg9[%c0_142, %c0_143, %c0_144] : memref<1x8x128xf32, #tpu.memory_space<vmem>>, vector<1x8x128xf32>
    %219 = vector.shape_cast %218 : vector<1x8x128xf32> to vector<8x128xf32>
    %220 = vector.shape_cast %217 : vector<8x128xf32> to vector<1x8x128xf32>
    tpu.vector_store %arg9[%c0_142, %c0_143, %c0_144], %220 {strides = array<i32>} : memref<1x8x128xf32, #tpu.memory_space<vmem>>, vector<1x8x128xf32>,
    return
  }
  func.func @transform_0(%arg0: i32, %arg1: i32) -> (i32, i32, i32) {
    %c0_i32 = arith.constant 0 : i32
    %c0_i32_0 = arith.constant 0 : i32
    return %arg0, %arg1, %c0_i32 : i32, i32, i32
  }
  func.func @transform_1(%arg0: i32, %arg1: i32) -> (i32, i32, i32) {
    %c0_i32 = arith.constant 0 : i32
    %c0_i32_0 = arith.constant 0 : i32
    %c0_i32_1 = arith.constant 0 : i32
    return %arg0, %c0_i32, %c0_i32_0 : i32, i32, i32
  }
  func.func @transform_2(%arg0: i32, %arg1: i32) -> (i32, i32, i32) {
    %c0_i32 = arith.constant 0 : i32
    %c0_i32_0 = arith.constant 0 : i32
    %c0_i32_1 = arith.constant 0 : i32
    %c0_i32_2 = arith.constant 0 : i32
    return %c0_i32, %c0_i32_0, %c0_i32_1 : i32, i32, i32
  }
  func.func @transform_3(%arg0: i32, %arg1: i32) -> (i32, i32, i32) {
    %c0_i32 = arith.constant 0 : i32
    %c0_i32_0 = arith.constant 0 : i32
    %c0_i32_1 = arith.constant 0 : i32
    %c0_i32_2 = arith.constant 0 : i32
    return %c0_i32, %c0_i32_0, %c0_i32_1 : i32, i32, i32
  }
  func.func @transform_4(%arg0: i32, %arg1: i32) -> (i32, i32, i32) {
    %c0_i32 = arith.constant 0 : i32
    %c0_i32_0 = arith.constant 0 : i32
    %c0_i32_1 = arith.constant 0 : i32
    %c0_i32_2 = arith.constant 0 : i32
    return %c0_i32, %c0_i32_0, %c0_i32_1 : i32, i32, i32
  }
  func.func @transform_5(%arg0: i32, %arg1: i32) -> (i32, i32) {
    %c0_i32 = arith.constant 0 : i32
    %c0_i32_0 = arith.constant 0 : i32
    %c0_i32_1 = arith.constant 0 : i32
    return %c0_i32, %c0_i32_0 : i32, i32
  }
  func.func @transform_6(%arg0: i32, %arg1: i32) -> (i32, i32) {
    %c0_i32 = arith.constant 0 : i32
    %c0_i32_0 = arith.constant 0 : i32
    %c0_i32_1 = arith.constant 0 : i32
    return %c0_i32, %c0_i32_0 : i32, i32
  }
  func.func @transform_7(%arg0: i32, %arg1: i32) -> (i32, i32, i32) {
    %c0_i32 = arith.constant 0 : i32
    %c0_i32_0 = arith.constant 0 : i32
    return %arg0, %arg1, %c0_i32 : i32, i32, i32
  }
}

</mosaic_0001>

<bundles_post_ra>
// kernel: tpu_custom_call.1
= control target key start
LH: loop header
LB: loop body
LE: loop exit
PB: predicated region body
PF: predicated region fallthrough
CT: control target
= control target key end

     0   :  { %12 = vsyncpa [#allocation4], 0  ;;  %s7814_s0 = inlined_call_operand.vmem [shape: f32[2,8,128], index: 0, kind: input, shape index: {}]   ;;  %s7815_s1 = inlined_call_operand.vmem [shape: f32[2,16,128], index: 1, kind: input, shape index: {}]   ;;  %s7816_s2 = inlined_call_operand.vmem [shape: f32[8,128,4], index: 2, kind: input, shape index: {}]   ;;  %s7817_s3 = inlined_call_operand.vmem [shape: f32[8,128,4], index: 3, kind: input, shape index: {}]   ;;  %s7818_s4 = inlined_call_operand.vmem [shape: f32[8,128,4], index: 4, kind: input, shape index: {}]   ;;  %s7819_s5 = inlined_call_operand.vmem [shape: f32[32,128], index: 5, kind: input, shape index: {}]   ;;  %s7820_s6 = inlined_call_operand.vmem [shape: f32[1,128], index: 6, kind: input, shape index: {}]   ;;  %s7821_s7 = inlined_call_operand.hbm [shape: f32[2,8,128], index: 7, kind: output, shape index: {}]  }
   0x1   :  { %14 = vsyncpa [#allocation4 + $0x1], 0  ;;  %s6269_s24 = smov 0   ;;  %s6271_s25 = smov 0  }
   0x2   :  { %s6273_s26 = smov 0   ;;  %s6275_s27 = smov 0  }
   0x3   :  { %s6277_s28 = smov 0   ;;  %s6279_s29 = smov 0  }
   0x4 LB: > { %s3550_s30 = sadd.s32 4294967295, %s6216_s29   ;;  %s3551_s8 = sadd.s32 4294967294, %s6216_s29   ;;  %s6216_s29 = sphi %s6279_s29, %s20_s29   ;;  %s6212_s28 = sphi %s6277_s28, %s7828_s28   ;;  %s6208_s27 = sphi %s6275_s27, %s7827_s27   ;;  %s6204_s26 = sphi %s6273_s26, %s7826_s26   ;;  %s6200_s25 = sphi %s6271_s25, %s7825_s25   ;;  %s6196_s24 = sphi %s6269_s24, %s7824_s24  }
   0x5   : > { %s32_s9 = sadd.s32 1, %s6212_s28  ;;  %s200_s10 = sadd.s32 1, %s6204_s26 }
   0x6   : > { %p34_p0 = scmp.ge.s32.totalorder %s32_s9, 2  ;;  %p210_p1 = scmp.ne.s32.totalorder %s6204_s26, %s6200_s25 }
   0x7   : > { %p211_p2 = scmp.eq.s32.totalorder %s3550_s30, 1  ;;  %p216_p3 = scmp.ne.s32.totalorder %s6200_s25, %s6196_s24 }
   0x8   : > { %s7830_s9 = smov (%p34_p0, %s32_s9), 0  ;;  %p217_p5 = scmp.eq.s32.totalorder %s3551_s8, 1 }
   0x9   : > { %p6309_p4 = por %p211_p2, %p210_p1  ;;  %s195_s12 = ssub.s32 %s6212_s28, %s7830_s9 }
   0xa   : > { %p3554_p6 = scmp.ge.s32.totalorder %s6216_s29, 1  ;;  %p198_p7 = scmp.eq.s32.totalorder %s195_s12, 0 }
   0xb   : > { %p6316_p8 = por %p217_p5, %p216_p3  ;;  %p268_p9 = scmp.lt.s32.totalorder %s6216_s29, 3 }
   0xc   : > { %s6322_s14 = scalar_select %p198_p7, %s6204_s26, %s200_s10  }
   0xd   : > { %p269_p10 = pnand %p3554_p6, %p268_p9 }
   0xe   : > { %v410_v0 = vld [vmem:[%s7817_s3] sm:$0xff] (!%p269_p10)  ;;  %v411_v1 = vld [vmem:[%s7817_s3 + $0x8] sm:$0xff] (!%p269_p10)  ;;  %v412_v2 = vld [vmem:[%s7817_s3 + $0x10] sm:$0xff] (!%p269_p10)  ;;  %p307_p11 = scmp.lt.s32.totalorder (!%p269_p10), %s6208_s27, 1  ;;  %v6218_v5 = vmov (!%p269_p10), 0.0|0.0   ;;  %vm6219_vm0 = vmmov (!%p269_p10), 0  }
   0xf   : > { %272 = sbr.rel (%p269_p10) target bundleno = 6790 (0x1a86), region = 48  ;;  %v5350_v3 = vpack.c.bf16 (!%p269_p10), %v411_v1, %v410_v0  ;;  %v413_v4 = vld [vmem:[%s7817_s3 + $0x18] sm:$0xff] (!%p269_p10)  ;;  %5326 = vmatprep.subr.bf16.mxu0 (!%p269_p10), %v6218_v5  ;;  %v414_v6 = vld [vmem:[%s7817_s3 + $0x20] sm:$0xff] (!%p269_p10)  ;;  %v415_v8 = vld [vmem:[%s7817_s3 + $0x28] sm:$0xff] (!%p269_p10)  ;;  %v6220_v11 = vmov (!%p269_p10), 0.0   ;;  %vm594_vm1 = vcmask (!%p269_p10), 31744  }
  0x10   : > { %v5354_v7 = vpack.c.bf16 (!%p269_p10), %v413_v4, %v412_v2  ;;  %v323_v9 = vld [vmem:[%s7816_s2] sm:$0xff] (!%p269_p10)  ;;  %v324_v10 = vld [vmem:[%s7816_s2 + $0x8] sm:$0xff] (!%p269_p10)  ;;  %4411 = vmatprep.mubr.msk.f32.mxu0 (!%p269_p10), %vm6219_vm0, %v6220_v11  ;;  %v325_v13 = vld [vmem:[%s7816_s2 + $0x10] sm:$0xff] (!%p269_p10)  ;;  %v5358_v15 = vpack.c.bf16 (!%p269_p10), %v415_v8, %v414_v6  ;;  %vm641_vm2 = vcmask (!%p269_p10), 130048   ;;  %s6221_s17 = smov (!%p269_p10), 4   ;;  %s6222_s19 = smov (!%p269_p10), 20  }
  0x11   : > { %5351 = vmatprep.subr.bf16.mxu1 (!%p269_p10), %v5350_v3  ;;  %v5327_v12 = vpack.c.bf16 (!%p269_p10), %v324_v10, %v323_v9  ;;  %v326_v14 = vld [vmem:[%s7816_s2 + $0x18] sm:$0xff] (!%p269_p10)  ;;  %v416_v16 = vld [vmem:[%s7817_s3 + $0x30] sm:$0xff] (!%p269_p10)  ;;  %v327_v19 = vld [vmem:[%s7816_s2 + $0x20] sm:$0xff] (!%p269_p10)  ;;  %vm1077_vm3 = vcmask (!%p269_p10), 64544   ;;  %s6223_s20 = smov (!%p269_p10), 8   ;;  %s6224_s21 = smov (!%p269_p10), 12  }
  0x12   : > { %5353 = vmatpush3.bf16.msra.mxu1 (!%p269_p10), %v5350_v3  ;;  %v5330_v17 = vpack.c.bf16 (!%p269_p10), %v326_v14, %v325_v13  ;;  %v417_v18 = vld [vmem:[%s7817_s3 + $0x38] sm:$0xff] (!%p269_p10)  ;;  %v328_v20 = vld [vmem:[%s7816_s2 + $0x28] sm:$0xff] (!%p269_p10)  ;;  %v418_v22 = vld [vmem:[%s7817_s3 + $0x40] sm:$0xff] (!%p269_p10)  ;;  %s6225_s30 = smov (!%p269_p10), 16   ;;  %vm1458_vm4 = vcmask (!%p269_p10), 97344   ;;  %vm1839_vm5 = vcmask (!%p269_p10), 130144  }
  0x13   : > { %5355 = vmatprep.subr.bf16.mxu1 (!%p269_p10), %v5354_v7  ;;  %5328 = vmatpush3.bf16.msra.mxu0 (!%p269_p10), %v5327_v12  ;;  %v5362_v21 = vpack.c.bf16 (!%p269_p10), %v417_v18, %v416_v16  ;;  %v5333_v23 = vpack.c.bf16 (!%p269_p10), %v328_v20, %v327_v19  ;;  %v419_v25 = vld [vmem:[%s7817_s3 + $0x48] sm:$0xff] (!%p269_p10)  ;;  %v329_v26 = vld [vmem:[%s7816_s2 + $0x30] sm:$0xff] (!%p269_p10)  ;;  %v330_v27 = vld [vmem:[%s7816_s2 + $0x38] sm:$0xff] (!%p269_p10)  ;;  %vm2220_vm6 = vcmask (!%p269_p10), 162944   ;;  %vm2601_vm7 = vcmask (!%p269_p10), 195744   ;;  %s3914_s8 = sshll.u32 (!%p269_p10), %s6208_s27, 7 }
  0x14   : > { %5329 = vmatprep.subr.bf16.mxu0 (!%p269_p10), %v6218_v5  ;;  %v5366_v28 = vpack.c.bf16 (!%p269_p10), %v419_v25, %v418_v22  ;;  %v420_v29 = vld [vmem:[%s7817_s3 + $0x50] sm:$0xff] (!%p269_p10)  ;;  %v5336_v30 = vpack.c.bf16 (!%p269_p10), %v330_v27, %v329_v26  ;;  %v421_v31 = vld [vmem:[%s7817_s3 + $0x58] sm:$0xff] (!%p269_p10)  ;;  %v331_v32 = vld [vmem:[%s7816_s2 + $0x40] sm:$0xff] (!%p269_p10)  ;;  %vm2982_vm8 = vcmask (!%p269_p10), 228544   ;;  %vm3363_vm9 = vcmask (!%p269_p10), 261344   ;;  %s7767_s15 = scalar_lea.hbm (!%p269_p10), %s7821_s7, %s3914_s8 }
  0x15   : > { %v332_v33 = vld [vmem:[%s7816_s2 + $0x48] sm:$0xff] (!%p269_p10)  ;;  %v5370_v34 = vpack.c.bf16 (!%p269_p10), %v421_v31, %v420_v29  ;;  %v422_v35 = vld [vmem:[%s7817_s3 + $0x60] sm:$0xff] (!%p269_p10)  ;;  %v333_v38 = vld [vmem:[%s7816_s2 + $0x50] sm:$0xff] (!%p269_p10)  ;;  %vm3377_vm10 = vcmask (!%p269_p10), 261120  }
  0x16   : > { %s6351_s18 = scalar_select %p307_p11, %s6208_s27, 1  ;;  %5357 = vmatpush3.bf16.msra.mxu1 %v5354_v7  ;;  %v5339_v36 = vpack.c.bf16 %v332_v33, %v331_v32  ;;  %v423_v37 = vld [vmem:[%s7817_s3 + $0x68] sm:$0xff]  ;;  %v334_v39 = vld [vmem:[%s7816_s2 + $0x58] sm:$0xff]  ;;  %v424_v41 = vld [vmem:[%s7817_s3 + $0x70] sm:$0xff] }
  0x17   : > { %5359 = vmatprep.subr.bf16.mxu1 %v5358_v15  ;;  %5331 = vmatpush3.bf16.msra.mxu0 %v5330_v17  ;;  %v5374_v40 = vpack.c.bf16 %v423_v37, %v422_v35  ;;  %v5342_v42 = vpack.c.bf16 %v334_v39, %v333_v38  ;;  %v425_v43 = vld [vmem:[%s7817_s3 + $0x78] sm:$0xff]  ;;  %v335_v44 = vld [vmem:[%s7816_s2 + $0x60] sm:$0xff]  ;;  %v336_v45 = vld [vmem:[%s7816_s2 + $0x68] sm:$0xff]  ;;  %s6228_s27 = smov [#allocation3]  }
  0x18   : > { %s3917_s23 = sshll.u32 %s6351_s18, 4  ;;  %5332 = vmatprep.subr.bf16.mxu0 %v6218_v5  ;;  %v5378_v46 = vpack.c.bf16 %v425_v43, %v424_v41  ;;  %v5345_v47 = vpack.c.bf16 %v336_v45, %v335_v44  ;;  %v337_v48 = vld [vmem:[%s7816_s2 + $0x70] sm:$0xff]  ;;  %v338_v49 = vld [vmem:[%s7816_s2 + $0x78] sm:$0xff]  ;;  %s3556_s12 = sshll.u32 %s6351_s18, 3  ;;  %v502_v60 = vld [vmem:[%s7818_s4] sm:$0xff] }
  0x19   : > { %s6378_s22 = scalar_lea.vmem %s7815_s1, %s3917_s23  ;;  %v5348_v50 = vpack.c.bf16 %v338_v49, %v337_v48  ;;  %s6448_s16 = scalar_lea.vmem %s7814_s0, %s3556_s12  ;;  %v503_v61 = vld [vmem:[%s7818_s4 + $0x8] sm:$0xff]  ;;  %v504_v62 = vld [vmem:[%s7818_s4 + $0x10] sm:$0xff]  ;;  %v505_v0 = vld [vmem:[%s7818_s4 + $0x18] sm:$0xff] }
  0x1a   : > { %v6384_v24 = vld [vmem:[%s6378_s22] sm:$0xff]  ;;  %5361 = vmatpush3.bf16.msra.mxu1 %v5358_v15  ;;  %v6451_v51 = vld [vmem:[%s6378_s22 + $0x8] sm:$0xff]  ;;  %v5382_v63 = vpack.c.bf16 %v503_v61, %v502_v60  ;;  %v5386_v1 = vpack.c.bf16 %v505_v0, %v504_v62  ;;  %v508_v6 = vld [vmem:[%s7818_s4 + $0x30] sm:$0xff] }
  0x1b   : > { %4446 = vmatprep.mubr.f32.mxu1 %v6384_v24  ;;  %5363 = vmatprep.subr.bf16.mxu1 %v5362_v21  ;;  %v6454_v52 = vld [vmem:[%s6448_s16] sm:$0xff]  ;;  %v507_v3 = vld [vmem:[%s7818_s4 + $0x28] sm:$0xff]  ;;  %v509_v7 = vld [vmem:[%s7818_s4 + $0x38] sm:$0xff] }
  0x1c   : > { %5334 = vmatpush3.bf16.msra.mxu0 %v5333_v23  ;;  %v506_v2 = vld [vmem:[%s7818_s4 + $0x20] sm:$0xff]  ;;  %v5394_v8 = vpack.c.bf16 %v509_v7, %v508_v6  ;;  %v511_v10 = vld [vmem:[%s7818_s4 + $0x48] sm:$0xff]  ;;  %v512_v13 = vld [vmem:[%s7818_s4 + $0x50] sm:$0xff] }
  0x1d   : > { %5335 = vmatprep.subr.bf16.mxu0 %v6218_v5  ;;  %v5390_v4 = vpack.c.bf16 %v507_v3, %v506_v2  ;;  %v510_v9 = vld [vmem:[%s7818_s4 + $0x40] sm:$0xff]  ;;  %v513_v14 = vld [vmem:[%s7818_s4 + $0x58] sm:$0xff]  ;;  %v515_v17 = vld [vmem:[%s7818_s4 + $0x68] sm:$0xff] }
  0x1e   : > { %5365 = vmatpush3.bf16.msra.mxu1 %v5362_v21  ;;  %v5398_v12 = vpack.c.bf16 %v511_v10, %v510_v9  ;;  %v5402_v15 = vpack.c.bf16 %v513_v14, %v512_v13  ;;  %v514_v16 = vld [vmem:[%s7818_s4 + $0x60] sm:$0xff]  ;;  %v516_v19 = vld [vmem:[%s7818_s4 + $0x70] sm:$0xff]  ;;  %v517_v20 = vld [vmem:[%s7818_s4 + $0x78] sm:$0xff] }
  0x1f   : > { %5367 = vmatprep.subr.bf16.mxu1 %v5366_v28  ;;  %v5406_v18 = vpack.c.bf16 %v515_v17, %v514_v16  ;;  %v5410_v21 = vpack.c.bf16 %v517_v20, %v516_v19  ;;  %v3577_v33 = vld [vmem:[%s7817_s3 + $0x80] sm:$0xff]  ;;  %v3580_v37 = vld [vmem:[%s7817_s3 + $0x98] sm:$0xff]  ;;  %v3582_v43 = vld [vmem:[%s7817_s3 + $0xa8] sm:$0xff] }
  0x20   : > { %5337 = vmatpush3.bf16.msra.mxu0 %v5336_v30  ;;  %v3583_v45 = vld [vmem:[%s7817_s3 + $0xb0] sm:$0xff]  ;;  %v3585_v48 = vld [vmem:[%s7817_s3 + $0xc0] sm:$0xff]  ;;  %v3586_v49 = vld [vmem:[%s7817_s3 + $0xc8] sm:$0xff] }
  0x21   : > { %5338 = vmatprep.subr.bf16.mxu0 %v6218_v5  ;;  %v3592_v60 = vld [vmem:[%s7817_s3 + $0xf8] sm:$0xff]  ;;  %v3562_v0 = vld [vmem:[%s7816_s2 + $0x88] sm:$0xff]  ;;  %v3563_v6 = vld [vmem:[%s7816_s2 + $0x90] sm:$0xff] }
  0x22   : > { %5369 = vmatpush3.bf16.msra.mxu1 %v5366_v28  ;;  %v3564_v7 = vld [vmem:[%s7816_s2 + $0x98] sm:$0xff]  ;;  %v3565_v9 = vld [vmem:[%s7816_s2 + $0xa0] sm:$0xff]  ;;  %v3566_v10 = vld [vmem:[%s7816_s2 + $0xa8] sm:$0xff] }
  0x23   : > { %5371 = vmatprep.subr.bf16.mxu1 %v5370_v34  ;;  %v3567_v13 = vld [vmem:[%s7816_s2 + $0xb0] sm:$0xff]  ;;  %v3568_v14 = vld [vmem:[%s7816_s2 + $0xb8] sm:$0xff]  ;;  %v3569_v16 = vld [vmem:[%s7816_s2 + $0xc0] sm:$0xff] }
  0x24   : > { %5340 = vmatpush3.bf16.msra.mxu0 %v5339_v36  ;;  %v3579_v36 = vld [vmem:[%s7817_s3 + $0x90] sm:$0xff]  ;;  %v3570_v17 = vld [vmem:[%s7816_s2 + $0xc8] sm:$0xff]  ;;  %v3572_v20 = vld [vmem:[%s7816_s2 + $0xd8] sm:$0xff] }
  0x25   : > { %5341 = vmatprep.subr.bf16.mxu0 %v6218_v5  ;;  %v5442_v39 = vpack.c.bf16 %v3580_v37, %v3579_v36  ;;  %v3571_v19 = vld [vmem:[%s7816_s2 + $0xd0] sm:$0xff] }
  0x26   : > { %5373 = vmatpush3.bf16.msra.mxu1 %v5370_v34  ;;  %v3578_v34 = vld [vmem:[%s7817_s3 + $0x88] sm:$0xff] }
  0x27   : > { %5375 = vmatprep.subr.bf16.mxu1 %v5374_v40  ;;  %v5438_v35 = vpack.c.bf16 %v3578_v34, %v3577_v33 }
  0x28   : > { %5343 = vmatpush3.bf16.msra.mxu0 %v5342_v42  ;;  %v3581_v42 = vld [vmem:[%s7817_s3 + $0xa0] sm:$0xff] }
  0x29   : > { %5344 = vmatprep.subr.bf16.mxu0 %v6218_v5  ;;  %v5446_v44 = vpack.c.bf16 %v3582_v43, %v3581_v42  ;;  %v3595_v42 = vld [vmem:[%s7818_s4 + $0x90] sm:$0xff] }
  0x2a   : > { %5377 = vmatpush3.bf16.msra.mxu1 %v5374_v40 }
  0x2b   : > { %5379 = vmatprep.subr.bf16.mxu1 %v5378_v46 }
  0x2c   : > { %5346 = vmatpush3.bf16.msra.mxu0 %v5345_v47 }
  0x2d   : > { %5347 = vmatprep.subr.bf16.mxu0 %v6218_v5 }
  0x2e   : > { %5381 = vmatpush3.bf16.msra.mxu1 %v5378_v46  ;;  %v3584_v46 = vld [vmem:[%s7817_s3 + $0xb8] sm:$0xff] }
  0x2f   : > { %4484 = vmatprep.subr.bf16.mxu1 %v6220_v11  ;;  %v5450_v47 = vpack.c.bf16 %v3584_v46, %v3583_v45  ;;  %v3597_v46 = vld [vmem:[%s7818_s4 + $0xa0] sm:$0xff] }
  0x30   : > { %5349 = vmatpush3.bf16.msra.mxu0 %v5348_v50  ;;  %v5454_v50 = vpack.c.bf16 %v3586_v49, %v3585_v48  ;;  %v3599_v49 = vld [vmem:[%s7818_s4 + $0xb0] sm:$0xff] }
  0x31   : > { %4447 = vmatmul.mubr.f32.vlgmr.msra.gmra.mrb[0].mxu1 %v6451_v51  ;;  %5383 = vmatprep.subr.bf16.mxu0 %v5382_v63 }
  0x32   : > { %4486 = vmatprep.mubr.msk.bf16.mxu1 %vm6219_vm0, %v6220_v11 }
  0x33   : > { %4412 = vmatmul.mubr.f32.vlgmr.msra.gmra.mrb[0].mxu0 %v6454_v52 }
  0x34   : > { %4481 = vmatprep.mubr.f32.mxu0 %v6384_v24  ;;  %5385 = vmatpush3.bf16.msra.mxu0 %v5382_v63  ;;  %v3561_v63 = vld [vmem:[%s7816_s2 + $0x80] sm:$0xff] }
  0x35   : > { %5387 = vmatprep.subr.bf16.mxu0 %v5386_v1  ;;  %v5415_v3 = vpack.c.bf16 %v3562_v0, %v3561_v63  ;;  %v3607_v63 = vld [vmem:[%s7818_s4 + $0xf0] sm:$0xff]  ;;  %v3608_v0 = vld [vmem:[%s7818_s4 + $0xf8] sm:$0xff] }
  0x38   : > { %5389 = vmatpush3.bf16.msra.mxu0 %v5386_v1 }
  0x39   : > { %5391 = vmatprep.subr.bf16.mxu0 %v5390_v4 }
  0x3c   : > { %5393 = vmatpush3.bf16.msra.mxu0 %v5390_v4 }
  0x3d   : > { %5395 = vmatprep.subr.bf16.mxu0 %v5394_v8 }
  0x40   : > { %5397 = vmatpush3.bf16.msra.mxu0 %v5394_v8  ;;  %v5418_v8 = vpack.c.bf16 %v3564_v7, %v3563_v6 }
  0x41   : > { %5399 = vmatprep.subr.bf16.mxu0 %v5398_v12 }
  0x44   : > { %5401 = vmatpush3.bf16.msra.mxu0 %v5398_v12  ;;  %v5421_v12 = vpack.c.bf16 %v3566_v10, %v3565_v9 }
  0x45   : > { %5403 = vmatprep.subr.bf16.mxu0 %v5402_v15 }
  0x48   : > { %5405 = vmatpush3.bf16.msra.mxu0 %v5402_v15  ;;  %v5424_v15 = vpack.c.bf16 %v3568_v14, %v3567_v13 }
  0x49   : > { %5407 = vmatprep.subr.bf16.mxu0 %v5406_v18 }
  0x4c   : > { %5409 = vmatpush3.bf16.msra.mxu0 %v5406_v18  ;;  %v5427_v18 = vpack.c.bf16 %v3570_v17, %v3569_v16  ;;  %v3627_v17 = vld [vmem:[%s7817_s3 + $0x100] sm:$0xff] }
  0x4d   : > { %5411 = vmatprep.subr.bf16.mxu0 %v5410_v21 }
  0x50   : > { %5413 = vmatpush3.bf16.msra.mxu0 %v5410_v21  ;;  %v5430_v21 = vpack.c.bf16 %v3572_v20, %v3571_v19  ;;  %v3611_v20 = vld [vmem:[%s7816_s2 + $0x100] sm:$0xff] }
  0x51   : > { %5439 = vmatprep.subr.bf16.mxu0 %v5438_v35 }
  0x53   : > { %4482 = vmatmul.mubr.f32.vlgmr.msra.gmra.mrb[2].mxu0 %v6451_v51 }
  0x54   : > { %4563 = vmatprep.mubr.f32.mxu0 %v6384_v24  ;;  %5441 = vmatpush3.bf16.msra.mxu0 %v5438_v35 }
  0x55   : > { %5443 = vmatprep.subr.bf16.mxu0 %v5442_v39 }
  0x58   : > { %5445 = vmatpush3.bf16.msra.mxu0 %v5442_v39 }
  0x59   : > { %5447 = vmatprep.subr.bf16.mxu0 %v5446_v44 }
  0x5c   : > { %5449 = vmatpush3.bf16.msra.mxu0 %v5446_v44  ;;  %v3596_v44 = vld [vmem:[%s7818_s4 + $0x98] sm:$0xff] }
  0x5d   : > { %5451 = vmatprep.subr.bf16.mxu0 %v5450_v47  ;;  %v5474_v45 = vpack.c.bf16 %v3596_v44, %v3595_v42  ;;  %v3625_v42 = vld [vmem:[%s7816_s2 + $0x170] sm:$0xff] }
  0x60   : > { %5453 = vmatpush3.bf16.msra.mxu0 %v5450_v47  ;;  %v3598_v47 = vld [vmem:[%s7818_s4 + $0xa8] sm:$0xff] }
  0x61   : > { %5455 = vmatprep.subr.bf16.mxu0 %v5454_v50  ;;  %v5478_v48 = vpack.c.bf16 %v3598_v47, %v3597_v46  ;;  %v3629_v47 = vld [vmem:[%s7817_s3 + $0x110] sm:$0xff] }
  0x64   : > { %5457 = vmatpush3.bf16.msra.mxu0 %v5454_v50  ;;  %v3600_v50 = vld [vmem:[%s7818_s4 + $0xb8] sm:$0xff] }
 0x104   : > { %v4448_v53 = vpop.f32.mrb[0].mxu1 }
 0x105   : > { %v492_v54 = vpop.f32.mrb[1].mxu1 }
 0x106   : > { %v405_v55 = vpop.f32.mrb[0].mxu0  ;;  %v501_v56 = vpack.c.bf16 %v4448_v53, %v492_v54  ;;  %v3587_v53 = vld [vmem:[%s7817_s3 + $0xd0] sm:$0xff]  ;;  %v3588_v54 = vld [vmem:[%s7817_s3 + $0xd8] sm:$0xff] }
 0x107   : > { %v4413_v57 = vpop.f32.mrb[1].mxu0  ;;  %v409_v59 = vpack.c.bf16 %v405_v55, %v405_v55  ;;  %v5458_v55 = vpack.c.bf16 %v3588_v54, %v3587_v53  ;;  %v5482_v53 = vpack.c.bf16 %v3600_v50, %v3599_v49  ;;  %v3601_v54 = vld [vmem:[%s7818_s4 + $0xc0] sm:$0xff] }
 0x108   : > { %v599_v58 = vsel %vm594_vm1, %v501_v56, 0  ;;  %v3589_v56 = vld [vmem:[%s7817_s3 + $0xe0] sm:$0xff]  ;;  %v3590_v57 = vld [vmem:[%s7817_s3 + $0xe8] sm:$0xff] }
 0x109   : > { %4485 = vmatpush3.bf16.xpose.msra.mxu1 %v599_v58  ;;  %5459 = vmatprep.subr.bf16.mxu0 %v5458_v55  ;;  %v5462_v58 = vpack.c.bf16 %v3590_v57, %v3589_v56  ;;  %v3603_v57 = vld [vmem:[%s7818_s4 + $0xd0] sm:$0xff] }
 0x10a   : > { %4490 = vmatprep.subr.bf16.mxu1 %v6220_v11  ;;  %5461 = vmatpush3.bf16.msra.mxu0 %v5458_v55  ;;  %v3602_v55 = vld [vmem:[%s7818_s4 + $0xc8] sm:$0xff] }
 0x10b   : > { %5463 = vmatprep.subr.bf16.mxu0 %v5462_v58  ;;  %v5486_v56 = vpack.c.bf16 %v3602_v55, %v3601_v54  ;;  %v3631_v54 = vld [vmem:[%s7817_s3 + $0x120] sm:$0xff]  ;;  %v3632_v55 = vld [vmem:[%s7817_s3 + $0x128] sm:$0xff] }
 0x10e   : > { %5465 = vmatpush3.bf16.msra.mxu0 %v5462_v58  ;;  %v3604_v58 = vld [vmem:[%s7818_s4 + $0xd8] sm:$0xff] }
 0x110   : > { %4487 = vmatmul.mubr.msk.bf16.vlgmr.msra.gmra.mrb[4].mxu1 %vm594_vm1, %v409_v59  ;;  %v3591_v59 = vld [vmem:[%s7817_s3 + $0xf0] sm:$0xff] }
 0x111   : > { %4492 = vmatprep.mubr.msk.bf16.mxu1 %vm6219_vm0, %v6220_v11  ;;  %v5466_v61 = vpack.c.bf16 %v3592_v60, %v3591_v59  ;;  %v5490_v59 = vpack.c.bf16 %v3604_v58, %v3603_v57  ;;  %v3605_v60 = vld [vmem:[%s7818_s4 + $0xe0] sm:$0xff]  ;;  %v3633_v57 = vld [vmem:[%s7817_s3 + $0x130] sm:$0xff]  ;;  %v3634_v58 = vld [vmem:[%s7817_s3 + $0x138] sm:$0xff] }
 0x113   : > { %5467 = vmatprep.subr.bf16.mxu0 %v5466_v61 }
 0x114   : > { %5469 = vmatpush3.bf16.msra.mxu0 %v5466_v61  ;;  %v3606_v61 = vld [vmem:[%s7818_s4 + $0xe8] sm:$0xff] }
 0x115   : > { %4601 = vmatprep.subr.bf16.mxu0 %v6220_v11 }
 0x117   : > { %4564 = vmatmul.mubr.f32.vlgmr.msra.gmra.mrb[4].mxu0 %v6451_v51 }
 0x118   : > { %4603 = vmatprep.mubr.msk.bf16.mxu0 %vm6219_vm0, %v6220_v11 }
 0x126   : > { %v4483_v38 = vpop.f32.mrb[2].mxu0 }
 0x127   : > { %v584_v40 = vpop.f32.mrb[3].mxu0 }
 0x128   : > { %v593_v41 = vpack.c.bf16 %v4483_v38, %v584_v40  ;;  %v3593_v40 = vld [vmem:[%s7818_s4 + $0x80] sm:$0xff] }
 0x12a   : > { %4491 = vmatpush3.bf16.msra.mxu1 %v593_v41  ;;  %v3594_v41 = vld [vmem:[%s7818_s4 + $0x88] sm:$0xff] }
 0x12b   : > { %5414 = vmatprep.subr.bf16.mxu1 %v6218_v5  ;;  %v5470_v43 = vpack.c.bf16 %v3594_v41, %v3593_v40  ;;  %v3624_v40 = vld [vmem:[%s7816_s2 + $0x168] sm:$0xff] }
 0x1e3   : > { %v635_v22 = vpop.f32.mrb[4].mxu1 }
 0x1e4   : > { %v4488_v23 = vpop.f32.mrb[5].mxu1  ;;  %v642_v25 = vsel %vm641_vm2, %v635_v22, -inf }
 0x1e5   : > { %643 = vmax.xlane.f32.xlu0 %v642_v25  ;;  %v638_v26 = vpop.f32.mrb[6].mxu1  ;;  %v3574_v23 = vld [vmem:[%s7816_s2 + $0xe8] sm:$0xff] }
 0x1e6   : > { %v4489_v27 = vpop.f32.mrb[7].mxu1  ;;  %v3575_v26 = vld [vmem:[%s7816_s2 + $0xf0] sm:$0xff] }
 0x1e7   : > { %v3576_v27 = vld [vmem:[%s7816_s2 + $0xf8] sm:$0xff] }
 0x272   : > { %v644_v28 = vpop.xlane.xlu0 %643 }
 0x273   : > { %v645_v29 = vsub.f32 %v635_v22, %v644_v28  ;;  %v3573_v22 = vld [vmem:[%s7816_s2 + $0xe0] sm:$0xff]  ;;  %v5436_v28 = vpack.c.bf16 %v3576_v27, %v3575_v26 }
 0x274   : > { %v5433_v25 = vpack.c.bf16 %v3574_v23, %v3573_v22  ;;  %v3613_v23 = vld [vmem:[%s7816_s2 + $0x110] sm:$0xff]  ;;  %v3615_v27 = vld [vmem:[%s7816_s2 + $0x120] sm:$0xff] }
 0x275   : > { %v646_v30 = vmul.f32 1.442695, %v645_v29  ;;  %v4565_v29 = vpop.f32.mrb[4].mxu0 }
 0x277   : > { %6101 = vpow2.f32 %v646_v30  ;;  %v869_v30 = vpop.f32.mrb[5].mxu0 }
 0x281   : > { %v6102_v31 = vpop.eup %6101 }
 0x282   : > { %v648_v32 = vsel %vm641_vm2, %v6102_v31, 0.0 }
 0x283   : > { %649 = vadd.xlane.f32.xlu0 %v648_v32 }
 0x310   : > { %v650_v62 = vpop.xlane.xlu0 %649 }
 0x311   : > { %6103 = vrcp.f32 %v650_v62  ;;  %v5494_v62 = vpack.c.bf16 %v3606_v61, %v3605_v60  ;;  %v3635_v60 = vld [vmem:[%s7817_s3 + $0x140] sm:$0xff]  ;;  %v3636_v61 = vld [vmem:[%s7817_s3 + $0x148] sm:$0xff] }
 0x31b   : > { %v6104_v1 = vpop.eup %6103 }
 0x31c   : > { %v652_v2 = vmul.f32 %v6104_v1, %v6102_v31  ;;  %v878_v31 = vpack.c.bf16 %v4565_v29, %v869_v30  ;;  %v5498_v1 = vpack.c.bf16 %v3608_v0, %v3607_v63  ;;  %v3617_v30 = vld [vmem:[%s7816_s2 + $0x130] sm:$0xff]  ;;  %v3638_v0 = vld [vmem:[%s7817_s3 + $0x158] sm:$0xff] }
 0x31d   : > { %v3637_v63 = vld [vmem:[%s7817_s3 + $0x150] sm:$0xff] }
 0x31e   : > { %v653_v4 = vpack.c.bf16 %v652_v2, %v652_v2  ;;  %v976_v32 = vsel %vm594_vm1, %v878_v31, 0  ;;  %v3618_v31 = vld [vmem:[%s7816_s2 + $0x138] sm:$0xff] }
 0x31f   : > { %4602 = vmatpush3.bf16.xpose.msra.mxu0 %v976_v32  ;;  %v5512_v32 = vpack.c.bf16 %v3618_v31, %v3617_v30  ;;  %v3649_v31 = vld [vmem:[%s7818_s4 + $0x130] sm:$0xff] }
 0x320   : > { %4493 = vmatmul.mubr.msk.bf16.vlgmr.msra.gmra.mrb[8].mxu1 %vm641_vm2, %v653_v4  ;;  %5502 = vmatprep.subr.bf16.mxu0 %v6218_v5 }
 0x321   : > { %5416 = vmatpush3.bf16.msra.mxu1 %v5415_v3  ;;  %4528 = vmatprep.mubr.msk.f32.mxu1 %vm6219_vm0, %v6220_v11 }
 0x322   : > { %5417 = vmatprep.subr.bf16.mxu1 %v6218_v5 }
 0x325   : > { %5419 = vmatpush3.bf16.msra.mxu1 %v5418_v8 }
 0x326   : > { %5420 = vmatprep.subr.bf16.mxu1 %v6218_v5 }
 0x329   : > { %5422 = vmatpush3.bf16.msra.mxu1 %v5421_v12 }
 0x32a   : > { %5423 = vmatprep.subr.bf16.mxu1 %v6218_v5 }
 0x32d   : > { %5425 = vmatpush3.bf16.msra.mxu1 %v5424_v15 }
 0x32e   : > { %5426 = vmatprep.subr.bf16.mxu1 %v6218_v5 }
 0x331   : > { %5428 = vmatpush3.bf16.msra.mxu1 %v5427_v18  ;;  %v3628_v18 = vld [vmem:[%s7817_s3 + $0x108] sm:$0xff] }
 0x332   : > { %5429 = vmatprep.subr.bf16.mxu1 %v6218_v5  ;;  %v5526_v19 = vpack.c.bf16 %v3628_v18, %v3627_v17 }
 0x335   : > { %5431 = vmatpush3.bf16.msra.mxu1 %v5430_v21  ;;  %v3612_v21 = vld [vmem:[%s7816_s2 + $0x108] sm:$0xff] }
 0x336   : > { %5432 = vmatprep.subr.bf16.mxu1 %v6218_v5  ;;  %v5503_v22 = vpack.c.bf16 %v3612_v21, %v3611_v20  ;;  %v3643_v21 = vld [vmem:[%s7818_s4 + $0x100] sm:$0xff] }
 0x339   : > { %5434 = vmatpush3.bf16.msra.mxu1 %v5433_v25  ;;  %v3614_v25 = vld [vmem:[%s7816_s2 + $0x118] sm:$0xff] }
 0x33a   : > { %5435 = vmatprep.subr.bf16.mxu1 %v6218_v5  ;;  %v5506_v26 = vpack.c.bf16 %v3614_v25, %v3613_v23  ;;  %v3645_v23 = vld [vmem:[%s7818_s4 + $0x110] sm:$0xff] }
 0x33d   : > { %5437 = vmatpush3.bf16.msra.mxu1 %v5436_v28  ;;  %v3616_v28 = vld [vmem:[%s7816_s2 + $0x128] sm:$0xff] }
 0x33e   : > { %5471 = vmatprep.subr.bf16.mxu1 %v5470_v43  ;;  %v5509_v29 = vpack.c.bf16 %v3616_v28, %v3615_v27  ;;  %v3647_v28 = vld [vmem:[%s7818_s4 + $0x120] sm:$0xff] }
 0x340   : > { %4529 = vmatmul.mubr.f32.vlgmr.msra.gmra.mrb[2].mxu1 %v6454_v52 }
 0x341   : > { %4598 = vmatprep.mubr.f32.mxu1 %v6384_v24  ;;  %5473 = vmatpush3.bf16.msra.mxu1 %v5470_v43  ;;  %v3626_v43 = vld [vmem:[%s7816_s2 + $0x178] sm:$0xff] }
 0x342   : > { %5475 = vmatprep.subr.bf16.mxu1 %v5474_v45  ;;  %v5524_v44 = vpack.c.bf16 %v3626_v43, %v3625_v42  ;;  %v3657_v43 = vld [vmem:[%s7818_s4 + $0x170] sm:$0xff] }
 0x345   : > { %5477 = vmatpush3.bf16.msra.mxu1 %v5474_v45 }
 0x346   : > { %5479 = vmatprep.subr.bf16.mxu1 %v5478_v48 }
 0x349   : > { %5481 = vmatpush3.bf16.msra.mxu1 %v5478_v48  ;;  %v3630_v48 = vld [vmem:[%s7817_s3 + $0x118] sm:$0xff] }
 0x34a   : > { %5483 = vmatprep.subr.bf16.mxu1 %v5482_v53 }
 0x34d   : > { %5485 = vmatpush3.bf16.msra.mxu1 %v5482_v53  ;;  %v5530_v53 = vpack.c.bf16 %v3630_v48, %v3629_v47 }
 0x34e   : > { %5487 = vmatprep.subr.bf16.mxu1 %v5486_v56 }
 0x351   : > { %5489 = vmatpush3.bf16.msra.mxu1 %v5486_v56  ;;  %v5534_v56 = vpack.c.bf16 %v3632_v55, %v3631_v54 }
 0x352   : > { %5491 = vmatprep.subr.bf16.mxu1 %v5490_v59 }
 0x355   : > { %5493 = vmatpush3.bf16.msra.mxu1 %v5490_v59  ;;  %v5538_v59 = vpack.c.bf16 %v3634_v58, %v3633_v57  ;;  %v3677_v58 = vld [vmem:[%s7817_s3 + $0x180] sm:$0xff] }
 0x356   : > { %5495 = vmatprep.subr.bf16.mxu1 %v5494_v62 }
 0x359   : > { %5497 = vmatpush3.bf16.msra.mxu1 %v5494_v62  ;;  %v5542_v62 = vpack.c.bf16 %v3636_v61, %v3635_v60  ;;  %v3679_v60 = vld [vmem:[%s7817_s3 + $0x190] sm:$0xff]  ;;  %v3680_v61 = vld [vmem:[%s7817_s3 + $0x198] sm:$0xff] }
 0x35a   : > { %5499 = vmatprep.subr.bf16.mxu1 %v5498_v1 }
 0x35d   : > { %5501 = vmatpush3.bf16.msra.mxu1 %v5498_v1  ;;  %v5546_v1 = vpack.c.bf16 %v3638_v0, %v3637_v63  ;;  %v5618_v63 = vpack.c.bf16 %v3680_v61, %v3679_v60 }
 0x35e   : > { %4607 = vmatprep.subr.bf16.mxu1 %v6220_v11 }
 0x360   : > { %4599 = vmatmul.mubr.f32.vlgmr.msra.gmra.mrb[12].mxu1 %v6451_v51 }
 0x361   : > { %4609 = vmatprep.mubr.msk.bf16.mxu1 %vm6219_vm0, %v6220_v11 }
 0x3f3   : > { %v691_v33 = vpop.f32.mrb[8].mxu1 }
 0x3f4   : > { %697 = vst.msk [vmem:[#allocation2] sm:$0xff] %vm594_vm1, %v691_v33  ;;  %v4494_v34 = vpop.f32.mrb[9].mxu1  ;;  %v3619_v33 = vld [vmem:[%s7816_s2 + $0x140] sm:$0xff] }
 0x3f5   : > { %v694_v35 = vpop.f32.mrb[10].mxu1  ;;  %v3620_v34 = vld [vmem:[%s7816_s2 + $0x148] sm:$0xff] }
 0x3f6   : > { %v4495_v36 = vpop.f32.mrb[11].mxu1  ;;  %v5515_v35 = vpack.c.bf16 %v3620_v34, %v3619_v33  ;;  %v3651_v34 = vld [vmem:[%s7818_s4 + $0x140] sm:$0xff] }
 0x3f7   : > { %v3621_v36 = vld [vmem:[%s7816_s2 + $0x150] sm:$0xff] }
 0x413   : > { %v781_v37 = vpop.f32.mrb[2].mxu1 }
 0x414   : > { %v785_v38 = vpack.c.bf16 %v781_v37, %v781_v37  ;;  %v4530_v39 = vpop.f32.mrb[3].mxu1  ;;  %v3622_v37 = vld [vmem:[%s7816_s2 + $0x158] sm:$0xff] }
 0x415   : > { %v3623_v39 = vld [vmem:[%s7816_s2 + $0x160] sm:$0xff] }
 0x416   : > { %4604 = vmatmul.mubr.msk.bf16.vlgmr.msra.gmra.mrb[8].mxu0 %vm594_vm1, %v785_v38  ;;  %v5518_v38 = vpack.c.bf16 %v3622_v37, %v3621_v36  ;;  %v5521_v41 = vpack.c.bf16 %v3624_v40, %v3623_v39  ;;  %v3653_v37 = vld [vmem:[%s7818_s4 + $0x150] sm:$0xff]  ;;  %v3655_v40 = vld [vmem:[%s7818_s4 + $0x160] sm:$0xff] }
 0x417   : > { %4645 = vmatprep.mubr.msk.f32.mxu0 %vm6219_vm0, %v6220_v11  ;;  %5504 = vmatpush3.bf16.msra.mxu0 %v5503_v22  ;;  %v3644_v22 = vld [vmem:[%s7818_s4 + $0x108] sm:$0xff] }
 0x418   : > { %5505 = vmatprep.subr.bf16.mxu0 %v6218_v5  ;;  %v5558_v25 = vpack.c.bf16 %v3644_v22, %v3643_v21  ;;  %v3692_v21 = vld [vmem:[%s7817_s3 + $0x1f8] sm:$0xff] }
 0x41b   : > { %5507 = vmatpush3.bf16.msra.mxu0 %v5506_v26  ;;  %v3646_v26 = vld [vmem:[%s7818_s4 + $0x118] sm:$0xff] }
 0x41c   : > { %5508 = vmatprep.subr.bf16.mxu0 %v6218_v5  ;;  %v5562_v27 = vpack.c.bf16 %v3646_v26, %v3645_v23  ;;  %v3662_v26 = vld [vmem:[%s7816_s2 + $0x188] sm:$0xff] }
 0x41f   : > { %5510 = vmatpush3.bf16.msra.mxu0 %v5509_v29  ;;  %v3648_v29 = vld [vmem:[%s7818_s4 + $0x128] sm:$0xff] }
 0x420   : > { %5511 = vmatprep.subr.bf16.mxu0 %v6218_v5  ;;  %v5566_v30 = vpack.c.bf16 %v3648_v29, %v3647_v28 }
 0x423   : > { %5513 = vmatpush3.bf16.msra.mxu0 %v5512_v32  ;;  %v3650_v32 = vld [vmem:[%s7818_s4 + $0x138] sm:$0xff] }
 0x424   : > { %5514 = vmatprep.subr.bf16.mxu0 %v6218_v5  ;;  %v5570_v33 = vpack.c.bf16 %v3650_v32, %v3649_v31  ;;  %v3664_v31 = vld [vmem:[%s7816_s2 + $0x198] sm:$0xff] }
 0x427   : > { %5516 = vmatpush3.bf16.msra.mxu0 %v5515_v35  ;;  %v3652_v35 = vld [vmem:[%s7818_s4 + $0x148] sm:$0xff] }
 0x428   : > { %5517 = vmatprep.subr.bf16.mxu0 %v6218_v5  ;;  %v5574_v36 = vpack.c.bf16 %v3652_v35, %v3651_v34  ;;  %v3666_v34 = vld [vmem:[%s7816_s2 + $0x1a8] sm:$0xff] }
 0x42b   : > { %5519 = vmatpush3.bf16.msra.mxu0 %v5518_v38  ;;  %v3654_v38 = vld [vmem:[%s7818_s4 + $0x158] sm:$0xff] }
 0x42c   : > { %5520 = vmatprep.subr.bf16.mxu0 %v6218_v5  ;;  %v5578_v39 = vpack.c.bf16 %v3654_v38, %v3653_v37  ;;  %v3668_v37 = vld [vmem:[%s7816_s2 + $0x1b8] sm:$0xff] }
 0x42f   : > { %5522 = vmatpush3.bf16.msra.mxu0 %v5521_v41  ;;  %v3656_v41 = vld [vmem:[%s7818_s4 + $0x168] sm:$0xff] }
 0x430   : > { %5523 = vmatprep.subr.bf16.mxu0 %v6218_v5  ;;  %v5582_v42 = vpack.c.bf16 %v3656_v41, %v3655_v40  ;;  %v3670_v40 = vld [vmem:[%s7816_s2 + $0x1c8] sm:$0xff] }
 0x433   : > { %v4600_v14 = vpop.f32.mrb[12].mxu1  ;;  %5525 = vmatpush3.bf16.msra.mxu0 %v5524_v44  ;;  %v3658_v44 = vld [vmem:[%s7818_s4 + $0x178] sm:$0xff] }
 0x434   : > { %v962_v15 = vpop.f32.mrb[13].mxu1  ;;  %5559 = vmatprep.subr.bf16.mxu0 %v5558_v25 }
 0x435   : > { %v971_v16 = vpack.c.bf16 %v4600_v14, %v962_v15 }
 0x436   : > { %4646 = vmatmul.mubr.f32.vlgmr.msra.gmra.mrb[6].mxu0 %v6454_v52 }
 0x437   : > { %4608 = vmatpush3.bf16.msra.mxu1 %v971_v16  ;;  %4715 = vmatprep.mubr.f32.mxu0 %v6384_v24 }
 0x438   : > { %5527 = vmatprep.subr.bf16.mxu1 %v5526_v19  ;;  %5561 = vmatpush3.bf16.msra.mxu0 %v5558_v25  ;;  %v3661_v25 = vld [vmem:[%s7816_s2 + $0x180] sm:$0xff] }
 0x439   : > { %5563 = vmatprep.subr.bf16.mxu0 %v5562_v27  ;;  %v5591_v29 = vpack.c.bf16 %v3662_v26, %v3661_v25  ;;  %v3708_v25 = vld [vmem:[%s7818_s4 + $0x1f8] sm:$0xff] }
 0x43c   : > { %5565 = vmatpush3.bf16.msra.mxu0 %v5562_v27 }
 0x43d   : > { %5567 = vmatprep.subr.bf16.mxu0 %v5566_v30 }
 0x440   : > { %5569 = vmatpush3.bf16.msra.mxu0 %v5566_v30 }
 0x441   : > { %5571 = vmatprep.subr.bf16.mxu0 %v5570_v33 }
 0x444   : > { %5573 = vmatpush3.bf16.msra.mxu0 %v5570_v33  ;;  %v3665_v33 = vld [vmem:[%s7816_s2 + $0x1a0] sm:$0xff] }
 0x445   : > { %5575 = vmatprep.subr.bf16.mxu0 %v5574_v36  ;;  %v5597_v35 = vpack.c.bf16 %v3666_v34, %v3665_v33 }
 0x448   : > { %5577 = vmatpush3.bf16.msra.mxu0 %v5574_v36  ;;  %v3667_v36 = vld [vmem:[%s7816_s2 + $0x1b0] sm:$0xff] }
 0x449   : > { %5579 = vmatprep.subr.bf16.mxu0 %v5578_v39  ;;  %v5600_v38 = vpack.c.bf16 %v3668_v37, %v3667_v36  ;;  %v3727_v37 = vld [vmem:[%s7817_s3 + $0x200] sm:$0xff] }
 0x44c   : > { %5581 = vmatpush3.bf16.msra.mxu0 %v5578_v39  ;;  %v3669_v39 = vld [vmem:[%s7816_s2 + $0x1c0] sm:$0xff] }
 0x44d   : > { %5583 = vmatprep.subr.bf16.mxu0 %v5582_v42  ;;  %v5603_v41 = vpack.c.bf16 %v3670_v40, %v3669_v39  ;;  %v3729_v40 = vld [vmem:[%s7817_s3 + $0x210] sm:$0xff] }
 0x450   : > { %5585 = vmatpush3.bf16.msra.mxu0 %v5582_v42  ;;  %v3671_v42 = vld [vmem:[%s7816_s2 + $0x1d0] sm:$0xff] }
 0x4e9   : > { %v1012_v2 = vpop.f32.mrb[8].mxu0 }
 0x4ea   : > { %v4605_v3 = vpop.f32.mrb[9].mxu0  ;;  %v1018_v4 = vsel %vm641_vm2, %v1012_v2, -inf }
 0x4eb   : > { %1019 = vmax.xlane.f32.xlu1 %v1018_v4  ;;  %v1015_v6 = vpop.f32.mrb[10].mxu0  ;;  %v3640_v3 = vld [vmem:[%s7817_s3 + $0x168] sm:$0xff] }
 0x4ec   : > { %v4606_v7 = vpop.f32.mrb[11].mxu0  ;;  %v3641_v6 = vld [vmem:[%s7817_s3 + $0x170] sm:$0xff] }
 0x4ed   : > { %v3642_v7 = vld [vmem:[%s7817_s3 + $0x178] sm:$0xff] }
 0x578   : > { %v1020_v8 = vpop.xlane.xlu1 %1019 }
 0x579   : > { %v1021_v9 = vsub.f32 %v1012_v2, %v1020_v8  ;;  %v3639_v2 = vld [vmem:[%s7817_s3 + $0x160] sm:$0xff]  ;;  %v5554_v8 = vpack.c.bf16 %v3642_v7, %v3641_v6  ;;  %v3683_v6 = vld [vmem:[%s7817_s3 + $0x1b0] sm:$0xff]  ;;  %v3684_v7 = vld [vmem:[%s7817_s3 + $0x1b8] sm:$0xff] }
 0x57a   : > { %v5550_v4 = vpack.c.bf16 %v3640_v3, %v3639_v2  ;;  %v3681_v2 = vld [vmem:[%s7817_s3 + $0x1a0] sm:$0xff]  ;;  %v3682_v3 = vld [vmem:[%s7817_s3 + $0x1a8] sm:$0xff] }
 0x57b   : > { %v1022_v10 = vmul.f32 1.442695, %v1021_v9  ;;  %v1162_v9 = vpop.f32.mrb[6].mxu0 }
 0x57c   : > { %v1166_v20 = vpack.c.bf16 %v1162_v9, %v1162_v9  ;;  %v3685_v9 = vld [vmem:[%s7817_s3 + $0x1c0] sm:$0xff] }
 0x57d   : > { %6105 = vpow2.f32 %v1022_v10  ;;  %v4647_v10 = vpop.f32.mrb[7].mxu0 }
 0x57e   : > { %v3686_v10 = vld [vmem:[%s7817_s3 + $0x1c8] sm:$0xff] }
 0x587   : > { %v6106_v12 = vpop.eup %6105 }
 0x588   : > { %v1024_v13 = vsel %vm641_vm2, %v6106_v12, 0.0 }
 0x589   : > { %1025 = vadd.xlane.f32.xlu1 %v1024_v13 }
 0x616   : > { %v1026_v45 = vpop.xlane.xlu1 %1025 }
 0x617   : > { %6107 = vrcp.f32 %v1026_v45  ;;  %v5586_v45 = vpack.c.bf16 %v3658_v44, %v3657_v43  ;;  %v3672_v43 = vld [vmem:[%s7816_s2 + $0x1d8] sm:$0xff] }
 0x618   : > { %v5606_v44 = vpack.c.bf16 %v3672_v43, %v3671_v42 }
 0x619   : > { %5587 = vmatprep.subr.bf16.mxu0 %v5586_v45 }
 0x61a   : > { %5589 = vmatpush3.bf16.msra.mxu0 %v5586_v45  ;;  %v3673_v45 = vld [vmem:[%s7816_s2 + $0x1e0] sm:$0xff] }
 0x61d   : > { %4716 = vmatmul.mubr.f32.vlgmr.msra.gmra.mrb[12].mxu0 %v6451_v51 }
 0x61e   : > { %4797 = vmatprep.mubr.f32.mxu0 %v6384_v24 }
 0x621   : > { %v6108_v46 = vpop.eup %6107 }
 0x622   : > { %v1028_v49 = vmul.f32 %v6108_v46, %v6106_v12 }
 0x624   : > { %v1029_v50 = vpack.c.bf16 %v1028_v49, %v1028_v49 }
 0x626   : > { %4610 = vmatmul.mubr.msk.bf16.vlgmr.msra.gmra.mrb[16].mxu1 %vm641_vm2, %v1029_v50 }
 0x627   : > { %5529 = vmatpush3.bf16.msra.mxu1 %v5526_v19  ;;  %4680 = vmatprep.mubr.f32.mxu1 %v6384_v24  ;;  %v3678_v24 = vld [vmem:[%s7817_s3 + $0x188] sm:$0xff] }
 0x628   : > { %5531 = vmatprep.subr.bf16.mxu1 %v5530_v53 }
 0x62b   : > { %5533 = vmatpush3.bf16.msra.mxu1 %v5530_v53 }
 0x62c   : > { %5535 = vmatprep.subr.bf16.mxu1 %v5534_v56 }
 0x62f   : > { %5537 = vmatpush3.bf16.msra.mxu1 %v5534_v56 }
 0x630   : > { %5539 = vmatprep.subr.bf16.mxu1 %v5538_v59 }
 0x633   : > { %5541 = vmatpush3.bf16.msra.mxu1 %v5538_v59  ;;  %v5614_v59 = vpack.c.bf16 %v3678_v24, %v3677_v58 }
 0x634   : > { %5543 = vmatprep.subr.bf16.mxu1 %v5542_v62 }
 0x635   : > { %5615 = vmatprep.subr.bf16.mxu0 %v5614_v59 }
 0x636   : > { %5617 = vmatpush3.bf16.msra.mxu0 %v5614_v59 }
 0x637   : > { %5545 = vmatpush3.bf16.msra.mxu1 %v5542_v62  ;;  %5619 = vmatprep.subr.bf16.mxu0 %v5618_v63 }
 0x638   : > { %5547 = vmatprep.subr.bf16.mxu1 %v5546_v1 }
 0x63a   : > { %5621 = vmatpush3.bf16.msra.mxu0 %v5618_v63  ;;  %v3693_v63 = vld [vmem:[%s7818_s4 + $0x180] sm:$0xff] }
 0x63b   : > { %5549 = vmatpush3.bf16.msra.mxu1 %v5546_v1 }
 0x63c   : > { %5551 = vmatprep.subr.bf16.mxu1 %v5550_v4 }
 0x63f   : > { %5553 = vmatpush3.bf16.msra.mxu1 %v5550_v4  ;;  %v5622_v4 = vpack.c.bf16 %v3682_v3, %v3681_v2  ;;  %v3696_v3 = vld [vmem:[%s7818_s4 + $0x198] sm:$0xff] }
 0x640   : > { %5555 = vmatprep.subr.bf16.mxu1 %v5554_v8 }
 0x641   : > { %5623 = vmatprep.subr.bf16.mxu0 %v5622_v4 }
 0x642   : > { %5625 = vmatpush3.bf16.msra.mxu0 %v5622_v4 }
 0x643   : > { %5557 = vmatpush3.bf16.msra.mxu1 %v5554_v8  ;;  %v5626_v8 = vpack.c.bf16 %v3684_v7, %v3683_v6  ;;  %v3697_v6 = vld [vmem:[%s7818_s4 + $0x1a0] sm:$0xff]  ;;  %v3698_v7 = vld [vmem:[%s7818_s4 + $0x1a8] sm:$0xff] }
 0x644   : > { %4718 = vmatprep.subr.bf16.mxu1 %v6220_v11 }
 0x645   : > { %5627 = vmatprep.subr.bf16.mxu0 %v5626_v8 }
 0x646   : > { %4681 = vmatmul.mubr.f32.vlgmr.msra.gmra.mrb[14].mxu1 %v6451_v51  ;;  %5629 = vmatpush3.bf16.msra.mxu0 %v5626_v8  ;;  %v5654_v8 = vpack.c.bf16 %v3698_v7, %v3697_v6 }
 0x647   : > { %4720 = vmatprep.mubr.msk.bf16.mxu1 %vm6219_vm0, %v6220_v11 }
 0x6f0   : > { %v4717_v62 = vpop.f32.mrb[12].mxu0 }
 0x6f1   : > { %v1343_v0 = vpop.f32.mrb[13].mxu0 }
 0x6f2   : > { %v1352_v1 = vpack.c.bf16 %v4717_v62, %v1343_v0  ;;  %v3694_v0 = vld [vmem:[%s7818_s4 + $0x188] sm:$0xff] }
 0x6f3   : > { %v5646_v2 = vpack.c.bf16 %v3694_v0, %v3693_v63  ;;  %v3741_v63 = vld [vmem:[%s7817_s3 + $0x270] sm:$0xff]  ;;  %v3742_v0 = vld [vmem:[%s7817_s3 + $0x278] sm:$0xff] }
 0x6f9   : > { %v6803_v12 = vpop.f32.mrb[16].mxu1 }
 0x6fa   : > { %v4611_v13 = vpop.f32.mrb[17].mxu1 }
 0x6fb   : > { %v1070_v14 = vpop.f32.mrb[18].mxu1  ;;  %v5630_v13 = vpack.c.bf16 %v3686_v10, %v3685_v9  ;;  %v3699_v9 = vld [vmem:[%s7818_s4 + $0x1b0] sm:$0xff]  ;;  %v3700_v10 = vld [vmem:[%s7818_s4 + $0x1b8] sm:$0xff] }
 0x6fc   : > { %v4612_v15 = vpop.f32.mrb[19].mxu1  ;;  %v3687_v14 = vld [vmem:[%s7817_s3 + $0x1d0] sm:$0xff] }
 0x6fd   : > { %5631 = vmatprep.subr.bf16.mxu0 %v5630_v13  ;;  %v3688_v15 = vld [vmem:[%s7817_s3 + $0x1d8] sm:$0xff] }
 0x6fe   : > { %5633 = vmatpush3.bf16.msra.mxu0 %v5630_v13  ;;  %v5658_v13 = vpack.c.bf16 %v3700_v10, %v3699_v9  ;;  %v3713_v10 = vld [vmem:[%s7816_s2 + $0x210] sm:$0xff] }
 0x719   : > { %v4682_v16 = vpop.f32.mrb[14].mxu1 }
 0x71a   : > { %v1250_v17 = vpop.f32.mrb[15].mxu1 }
 0x71b   : > { %v1259_v18 = vpack.c.bf16 %v4682_v16, %v1250_v17  ;;  %v5634_v16 = vpack.c.bf16 %v3688_v15, %v3687_v14  ;;  %v3689_v17 = vld [vmem:[%s7817_s3 + $0x1e0] sm:$0xff]  ;;  %v3702_v15 = vld [vmem:[%s7818_s4 + $0x1c8] sm:$0xff] }
 0x71c   : > { %v3701_v14 = vld [vmem:[%s7818_s4 + $0x1c0] sm:$0xff] }
 0x71d   : > { %v1357_v19 = vsel %vm594_vm1, %v1259_v18, 0  ;;  %5635 = vmatprep.subr.bf16.mxu0 %v5634_v16  ;;  %v3690_v18 = vld [vmem:[%s7817_s3 + $0x1e8] sm:$0xff] }
 0x71e   : > { %4719 = vmatpush3.bf16.xpose.msra.mxu1 %v1357_v19  ;;  %5637 = vmatpush3.bf16.msra.mxu0 %v5634_v16  ;;  %v5638_v19 = vpack.c.bf16 %v3690_v18, %v3689_v17  ;;  %v5662_v16 = vpack.c.bf16 %v3702_v15, %v3701_v14  ;;  %v3703_v17 = vld [vmem:[%s7818_s4 + $0x1d0] sm:$0xff]  ;;  %v3704_v18 = vld [vmem:[%s7818_s4 + $0x1d8] sm:$0xff]  ;;  %v3715_v15 = vld [vmem:[%s7816_s2 + $0x220] sm:$0xff] }
 0x71f   : > { %4724 = vmatprep.subr.bf16.mxu1 %v6220_v11 }
 0x720   : > { %5639 = vmatprep.subr.bf16.mxu0 %v5638_v19 }
 0x722   : > { %5641 = vmatpush3.bf16.msra.mxu0 %v5638_v19  ;;  %v5666_v19 = vpack.c.bf16 %v3704_v18, %v3703_v17  ;;  %v3717_v18 = vld [vmem:[%s7816_s2 + $0x230] sm:$0xff] }
 0x725   : > { %4721 = vmatmul.mubr.msk.bf16.vlgmr.msra.gmra.mrb[20].mxu1 %vm594_vm1, %v1166_v20  ;;  %v3691_v20 = vld [vmem:[%s7817_s3 + $0x1f0] sm:$0xff] }
 0x726   : > { %4726 = vmatprep.mubr.msk.bf16.mxu1 %vm6219_vm0, %v6220_v11  ;;  %4725 = vmatpush3.bf16.msra.mxu1 %v1352_v1  ;;  %v5642_v22 = vpack.c.bf16 %v3692_v21, %v3691_v20  ;;  %v3695_v1 = vld [vmem:[%s7818_s4 + $0x190] sm:$0xff]  ;;  %v3705_v20 = vld [vmem:[%s7818_s4 + $0x1e0] sm:$0xff]  ;;  %v3706_v21 = vld [vmem:[%s7818_s4 + $0x1e8] sm:$0xff] }
 0x727   : > { %5590 = vmatprep.subr.bf16.mxu1 %v6218_v5  ;;  %v5650_v4 = vpack.c.bf16 %v3696_v3, %v3695_v1  ;;  %v5730_v1 = vpack.c.bf16 %v3742_v0, %v3741_v63  ;;  %v3711_v3 = vld [vmem:[%s7816_s2 + $0x200] sm:$0xff]  ;;  %v3753_v63 = vld [vmem:[%s7818_s4 + $0x250] sm:$0xff]  ;;  %v3754_v0 = vld [vmem:[%s7818_s4 + $0x258] sm:$0xff] }
 0x728   : > { %5643 = vmatprep.subr.bf16.mxu0 %v5642_v22 }
 0x729   : > { %5645 = vmatpush3.bf16.msra.mxu0 %v5642_v22  ;;  %v5670_v22 = vpack.c.bf16 %v3706_v21, %v3705_v20  ;;  %v3719_v21 = vld [vmem:[%s7816_s2 + $0x240] sm:$0xff] }
 0x72a   : > { %4835 = vmatprep.subr.bf16.mxu0 %v6220_v11 }
 0x72c   : > { %4798 = vmatmul.mubr.f32.vlgmr.msra.gmra.mrb[14].mxu0 %v6451_v51  ;;  %v3663_v51 = vld [vmem:[%s7816_s2 + $0x190] sm:$0xff] }
 0x72d   : > { %4837 = vmatprep.mubr.msk.bf16.mxu0 %vm6219_vm0, %v6220_v11  ;;  %v5594_v32 = vpack.c.bf16 %v3664_v31, %v3663_v51 }
 0x7f8   : > { %v1393_v46 = vpop.f32.mrb[20].mxu1 }
 0x7f9   : > { %v4722_v47 = vpop.f32.mrb[21].mxu1  ;;  %v1399_v48 = vsel %vm641_vm2, %v1393_v46, -inf }
 0x7fa   : > { %1400 = vmax.xlane.f32.xlu0 %v1399_v48  ;;  %v1396_v49 = vpop.f32.mrb[22].mxu1  ;;  %v3675_v48 = vld [vmem:[%s7816_s2 + $0x1f0] sm:$0xff] }
 0x7fb   : > { %v4723_v50 = vpop.f32.mrb[23].mxu1  ;;  %v3676_v49 = vld [vmem:[%s7816_s2 + $0x1f8] sm:$0xff] }
 0x7fc   : > { %v5612_v50 = vpack.c.bf16 %v3676_v49, %v3675_v48  ;;  %v3733_v49 = vld [vmem:[%s7817_s3 + $0x230] sm:$0xff] }
 0x887   : > { %v1401_v53 = vpop.xlane.xlu0 %1400 }
 0x888   : > { %v1402_v54 = vsub.f32 %v1393_v46, %v1401_v53  ;;  %v3674_v46 = vld [vmem:[%s7816_s2 + $0x1e8] sm:$0xff]  ;;  %v6975_v53 = vld [vmem:[%s6378_s22] sm:$0xff] }
 0x889   : > { %v5609_v47 = vpack.c.bf16 %v3674_v46, %v3673_v45  ;;  %v3731_v46 = vld [vmem:[%s7817_s3 + $0x220] sm:$0xff] }
 0x88a   : > { %v1403_v55 = vmul.f32 1.442695, %v1402_v54  ;;  %v4799_v54 = vpop.f32.mrb[14].mxu0 }
 0x88c   : > { %6109 = vpow2.f32 %v1403_v55  ;;  %v1631_v55 = vpop.f32.mrb[15].mxu0 }
 0x896   : > { %v6110_v56 = vpop.eup %6109 }
 0x897   : > { %v1405_v57 = vsel %vm641_vm2, %v6110_v56, 0.0 }
 0x898   : > { %1406 = vadd.xlane.f32.xlu1 %v1405_v57 }
 0x925   : > { %v1407_v23 = vpop.xlane.xlu1 %1406 }
 0x926   : > { %6111 = vrcp.f32 %v1407_v23  ;;  %v3707_v23 = vld [vmem:[%s7818_s4 + $0x1f0] sm:$0xff] }
 0x927   : > { %v5674_v26 = vpack.c.bf16 %v3708_v25, %v3707_v23  ;;  %v3721_v25 = vld [vmem:[%s7816_s2 + $0x250] sm:$0xff] }
 0x930   : > { %v6112_v27 = vpop.eup %6111 }
 0x931   : > { %v1409_v28 = vmul.f32 %v6112_v27, %v6110_v56  ;;  %v1640_v56 = vpack.c.bf16 %v4799_v54, %v1631_v55  ;;  %v7034_v27 = vld [vmem:[%s6378_s22 + $0x8] sm:$0xff]  ;;  %v3735_v55 = vld [vmem:[%s7817_s3 + $0x240] sm:$0xff] }
 0x933   : > { %v1410_v30 = vpack.c.bf16 %v1409_v28, %v1409_v28  ;;  %v1738_v57 = vsel %vm594_vm1, %v1640_v56, 0  ;;  %v3736_v56 = vld [vmem:[%s7817_s3 + $0x248] sm:$0xff] }
 0x934   : > { %4836 = vmatpush3.bf16.xpose.msra.mxu0 %v1738_v57  ;;  %v5718_v57 = vpack.c.bf16 %v3736_v56, %v3735_v55  ;;  %v3747_v55 = vld [vmem:[%s7818_s4 + $0x220] sm:$0xff]  ;;  %v3748_v56 = vld [vmem:[%s7818_s4 + $0x228] sm:$0xff] }
 0x935   : > { %4727 = vmatmul.mubr.msk.bf16.vlgmr.msra.gmra.mrb[24].mxu1 %vm641_vm2, %v1410_v30  ;;  %4841 = vmatprep.subr.bf16.mxu0 %v6220_v11 }
 0x936   : > { %5592 = vmatpush3.bf16.msra.mxu1 %v5591_v29  ;;  %4762 = vmatprep.mubr.msk.f32.mxu1 %vm6219_vm0, %v6220_v11 }
 0x937   : > { %5593 = vmatprep.subr.bf16.mxu1 %v6218_v5 }
 0x93a   : > { %5595 = vmatpush3.bf16.msra.mxu1 %v5594_v32 }
 0x93b   : > { %5596 = vmatprep.subr.bf16.mxu1 %v6218_v5 }
 0x93e   : > { %5598 = vmatpush3.bf16.msra.mxu1 %v5597_v35 }
 0x93f   : > { %5599 = vmatprep.subr.bf16.mxu1 %v6218_v5 }
 0x942   : > { %5601 = vmatpush3.bf16.msra.mxu1 %v5600_v38  ;;  %v3728_v38 = vld [vmem:[%s7817_s3 + $0x208] sm:$0xff] }
 0x943   : > { %5602 = vmatprep.subr.bf16.mxu1 %v6218_v5  ;;  %v5702_v39 = vpack.c.bf16 %v3728_v38, %v3727_v37 }
 0x946   : > { %5604 = vmatpush3.bf16.msra.mxu1 %v5603_v41  ;;  %v3730_v41 = vld [vmem:[%s7817_s3 + $0x218] sm:$0xff] }
 0x947   : > { %5605 = vmatprep.subr.bf16.mxu1 %v6218_v5  ;;  %v5706_v43 = vpack.c.bf16 %v3730_v41, %v3729_v40 }
 0x94a   : > { %5607 = vmatpush3.bf16.msra.mxu1 %v5606_v44 }
 0x94b   : > { %5608 = vmatprep.subr.bf16.mxu1 %v6218_v5 }
 0x94e   : > { %5610 = vmatpush3.bf16.msra.mxu1 %v5609_v47  ;;  %v3732_v47 = vld [vmem:[%s7817_s3 + $0x228] sm:$0xff] }
 0x94f   : > { %5611 = vmatprep.subr.bf16.mxu1 %v6218_v5  ;;  %v5710_v48 = vpack.c.bf16 %v3732_v47, %v3731_v46  ;;  %v3743_v46 = vld [vmem:[%s7818_s4 + $0x200] sm:$0xff]  ;;  %v3744_v47 = vld [vmem:[%s7818_s4 + $0x208] sm:$0xff] }
 0x952   : > { %5613 = vmatpush3.bf16.msra.mxu1 %v5612_v50  ;;  %v3734_v50 = vld [vmem:[%s7817_s3 + $0x238] sm:$0xff] }
 0x953   : > { %5647 = vmatprep.subr.bf16.mxu1 %v5646_v2  ;;  %v5714_v54 = vpack.c.bf16 %v3734_v50, %v3733_v49  ;;  %v5734_v49 = vpack.c.bf16 %v3744_v47, %v3743_v46  ;;  %v3746_v50 = vld [vmem:[%s7818_s4 + $0x218] sm:$0xff]  ;;  %v3790_v46 = vld [vmem:[%s7817_s3 + $0x2e8] sm:$0xff] }
 0x955   : > { %4763 = vmatmul.mubr.f32.vlgmr.msra.gmra.mrb[28].mxu1 %v6454_v52 }
 0x956   : > { %4832 = vmatprep.mubr.f32.mxu1 %v6975_v53  ;;  %5649 = vmatpush3.bf16.msra.mxu1 %v5646_v2 }
 0x957   : > { %5651 = vmatprep.subr.bf16.mxu1 %v5650_v4 }
 0x95a   : > { %5653 = vmatpush3.bf16.msra.mxu1 %v5650_v4  ;;  %v3712_v4 = vld [vmem:[%s7816_s2 + $0x208] sm:$0xff] }
 0x95b   : > { %5655 = vmatprep.subr.bf16.mxu1 %v5654_v8 }
 0x95e   : > { %5657 = vmatpush3.bf16.msra.mxu1 %v5654_v8  ;;  %v5679_v8 = vpack.c.bf16 %v3712_v4, %v3711_v3  ;;  %v3756_v3 = vld [vmem:[%s7818_s4 + $0x268] sm:$0xff] }
 0x95f   : > { %5659 = vmatprep.subr.bf16.mxu1 %v5658_v13 }
 0x962   : > { %5661 = vmatpush3.bf16.msra.mxu1 %v5658_v13  ;;  %v3714_v13 = vld [vmem:[%s7816_s2 + $0x218] sm:$0xff] }
 0x963   : > { %5663 = vmatprep.subr.bf16.mxu1 %v5662_v16  ;;  %v5682_v14 = vpack.c.bf16 %v3714_v13, %v3713_v10 }
 0x966   : > { %5665 = vmatpush3.bf16.msra.mxu1 %v5662_v16  ;;  %v3716_v16 = vld [vmem:[%s7816_s2 + $0x228] sm:$0xff] }
 0x967   : > { %5667 = vmatprep.subr.bf16.mxu1 %v5666_v19  ;;  %v5685_v17 = vpack.c.bf16 %v3716_v16, %v3715_v15 }
 0x96a   : > { %5669 = vmatpush3.bf16.msra.mxu1 %v5666_v19  ;;  %v3718_v19 = vld [vmem:[%s7816_s2 + $0x238] sm:$0xff] }
 0x96b   : > { %5671 = vmatprep.subr.bf16.mxu1 %v5670_v22  ;;  %v5688_v20 = vpack.c.bf16 %v3718_v19, %v3717_v18 }
 0x96e   : > { %5673 = vmatpush3.bf16.msra.mxu1 %v5670_v22  ;;  %v3720_v22 = vld [vmem:[%s7816_s2 + $0x248] sm:$0xff] }
 0x96f   : > { %5675 = vmatprep.subr.bf16.mxu1 %v5674_v26  ;;  %v5691_v23 = vpack.c.bf16 %v3720_v22, %v3719_v21  ;;  %v3777_v21 = vld [vmem:[%s7817_s3 + $0x280] sm:$0xff]  ;;  %v3778_v22 = vld [vmem:[%s7817_s3 + $0x288] sm:$0xff] }
 0x972   : > { %5677 = vmatpush3.bf16.msra.mxu1 %v5674_v26  ;;  %v3722_v26 = vld [vmem:[%s7816_s2 + $0x258] sm:$0xff] }
 0x973   : > { %5703 = vmatprep.subr.bf16.mxu1 %v5702_v39 }
 0x975   : > { %4833 = vmatmul.mubr.f32.vlgmr.msra.gmra.mrb[30].mxu1 %v7034_v27 }
 0x976   : > { %4914 = vmatprep.mubr.f32.mxu1 %v6975_v53  ;;  %5705 = vmatpush3.bf16.msra.mxu1 %v5702_v39 }
 0x977   : > { %5707 = vmatprep.subr.bf16.mxu1 %v5706_v43 }
 0x97a   : > { %5709 = vmatpush3.bf16.msra.mxu1 %v5706_v43 }
 0x97b   : > { %5711 = vmatprep.subr.bf16.mxu1 %v5710_v48 }
 0x97e   : > { %5713 = vmatpush3.bf16.msra.mxu1 %v5710_v48  ;;  %v3745_v48 = vld [vmem:[%s7818_s4 + $0x210] sm:$0xff] }
 0x97f   : > { %5715 = vmatprep.subr.bf16.mxu1 %v5714_v54 }
 0x982   : > { %5717 = vmatpush3.bf16.msra.mxu1 %v5714_v54  ;;  %v5738_v54 = vpack.c.bf16 %v3746_v50, %v3745_v48  ;;  %v3791_v48 = vld [vmem:[%s7817_s3 + $0x2f0] sm:$0xff] }
 0x983   : > { %5719 = vmatprep.subr.bf16.mxu1 %v5718_v57 }
 0x986   : > { %5721 = vmatpush3.bf16.msra.mxu1 %v5718_v57  ;;  %v5742_v57 = vpack.c.bf16 %v3748_v56, %v3747_v55  ;;  %v3761_v55 = vld [vmem:[%s7816_s2 + $0x280] sm:$0xff]  ;;  %v3762_v56 = vld [vmem:[%s7816_s2 + $0x288] sm:$0xff] }
 0xa08   : > { %v6980_v58 = vpop.f32.mrb[24].mxu1 }
 0xa09   : > { %v4728_v24 = vpop.f32.mrb[25].mxu1 }
 0xa0a   : > { %v1451_v59 = vpop.f32.mrb[26].mxu1  ;;  %v3737_v24 = vld [vmem:[%s7817_s3 + $0x250] sm:$0xff] }
 0xa0b   : > { %v4729_v60 = vpop.f32.mrb[27].mxu1  ;;  %v3738_v59 = vld [vmem:[%s7817_s3 + $0x258] sm:$0xff] }
 0xa0c   : > { %v5722_v60 = vpack.c.bf16 %v3738_v59, %v3737_v24  ;;  %v3749_v24 = vld [vmem:[%s7818_s4 + $0x230] sm:$0xff]  ;;  %v3750_v59 = vld [vmem:[%s7818_s4 + $0x238] sm:$0xff] }
 0xa0e   : > { %5723 = vmatprep.subr.bf16.mxu1 %v5722_v60 }
 0xa0f   : > { %5725 = vmatpush3.bf16.msra.mxu1 %v5722_v60  ;;  %v5746_v60 = vpack.c.bf16 %v3750_v59, %v3749_v24  ;;  %v5767_v59 = vpack.c.bf16 %v3762_v56, %v3761_v55  ;;  %v3805_v55 = vld [vmem:[%s7818_s4 + $0x2e0] sm:$0xff]  ;;  %v3806_v56 = vld [vmem:[%s7818_s4 + $0x2e8] sm:$0xff] }
 0xa28   : > { %v1543_v61 = vpop.f32.mrb[28].mxu1 }
 0xa29   : > { %v1547_v62 = vpack.c.bf16 %v1543_v61, %v1543_v61  ;;  %v4764_v52 = vpop.f32.mrb[29].mxu1  ;;  %v3739_v61 = vld [vmem:[%s7817_s3 + $0x260] sm:$0xff] }
 0xa2b   : > { %4838 = vmatmul.mubr.msk.bf16.vlgmr.msra.gmra.mrb[16].mxu0 %vm594_vm1, %v1547_v62  ;;  %v3740_v62 = vld [vmem:[%s7817_s3 + $0x268] sm:$0xff] }
 0xa2c   : > { %4843 = vmatprep.mubr.msk.bf16.mxu0 %vm6219_vm0, %v6220_v11  ;;  %v5726_v52 = vpack.c.bf16 %v3740_v62, %v3739_v61  ;;  %v3751_v61 = vld [vmem:[%s7818_s4 + $0x240] sm:$0xff]  ;;  %v3752_v62 = vld [vmem:[%s7818_s4 + $0x248] sm:$0xff] }
 0xa2e   : > { %5727 = vmatprep.subr.bf16.mxu1 %v5726_v52 }
 0xa2f   : > { %5729 = vmatpush3.bf16.msra.mxu1 %v5726_v52  ;;  %v5750_v52 = vpack.c.bf16 %v3752_v62, %v3751_v61  ;;  %v3763_v61 = vld [vmem:[%s7816_s2 + $0x290] sm:$0xff]  ;;  %v3764_v62 = vld [vmem:[%s7816_s2 + $0x298] sm:$0xff] }
 0xa30   : > { %5731 = vmatprep.subr.bf16.mxu1 %v5730_v1 }
 0xa33   : > { %5733 = vmatpush3.bf16.msra.mxu1 %v5730_v1  ;;  %v5754_v1 = vpack.c.bf16 %v3754_v0, %v3753_v63  ;;  %v3765_v63 = vld [vmem:[%s7816_s2 + $0x2a0] sm:$0xff]  ;;  %v3766_v0 = vld [vmem:[%s7816_s2 + $0x2a8] sm:$0xff] }
 0xa34   : > { %4952 = vmatprep.subr.bf16.mxu1 %v6220_v11 }
 0xa36   : > { %4915 = vmatmul.mubr.f32.vlgmr.msra.gmra.mrb[32].mxu1 %v7034_v27 }
 0xa37   : > { %4954 = vmatprep.mubr.msk.bf16.mxu1 %vm6219_vm0, %v6220_v11 }
 0xa48   : > { %v4834_v42 = vpop.f32.mrb[30].mxu1 }
 0xa49   : > { %v1724_v44 = vpop.f32.mrb[31].mxu1 }
 0xa4a   : > { %v1733_v45 = vpack.c.bf16 %v4834_v42, %v1724_v44 }
 0xa4c   : > { %4842 = vmatpush3.bf16.msra.mxu0 %v1733_v45 }
 0xa4d   : > { %5678 = vmatprep.subr.bf16.mxu0 %v6218_v5 }
 0xafe   : > { %v1774_v28 = vpop.f32.mrb[16].mxu0 }
 0xaff   : > { %v4839_v29 = vpop.f32.mrb[17].mxu0  ;;  %v1780_v30 = vsel %vm641_vm2, %v1774_v28, -inf }
 0xb00   : > { %1781 = vmax.xlane.f32.xlu0 %v1780_v30  ;;  %v1777_v51 = vpop.f32.mrb[18].mxu0  ;;  %v3723_v29 = vld [vmem:[%s7816_s2 + $0x260] sm:$0xff]  ;;  %v3724_v30 = vld [vmem:[%s7816_s2 + $0x268] sm:$0xff] }
 0xb01   : > { %v4840_v31 = vpop.f32.mrb[19].mxu0  ;;  %v5697_v51 = vpack.c.bf16 %v3724_v30, %v3723_v29 }
 0xb02   : > { %v3725_v31 = vld [vmem:[%s7816_s2 + $0x270] sm:$0xff] }
 0xb8d   : > { %v1782_v32 = vpop.xlane.xlu0 %1781 }
 0xb8e   : > { %v1783_v33 = vsub.f32 %v1774_v28, %v1782_v32  ;;  %v5694_v28 = vpack.c.bf16 %v3722_v26, %v3721_v25  ;;  %v3726_v32 = vld [vmem:[%s7816_s2 + $0x278] sm:$0xff]  ;;  %v3779_v25 = vld [vmem:[%s7817_s3 + $0x290] sm:$0xff] }
 0xb8f   : > { %v3780_v26 = vld [vmem:[%s7817_s3 + $0x298] sm:$0xff] }
 0xb90   : > { %v1784_v34 = vmul.f32 1.442695, %v1783_v33  ;;  %v5700_v33 = vpack.c.bf16 %v3726_v32, %v3725_v31  ;;  %v5794_v29 = vpack.c.bf16 %v3780_v26, %v3779_v25  ;;  %v3781_v31 = vld [vmem:[%s7817_s3 + $0x2a0] sm:$0xff]  ;;  %v3782_v32 = vld [vmem:[%s7817_s3 + $0x2a8] sm:$0xff] }
 0xb92   : > { %6113 = vpow2.f32 %v1784_v34  ;;  %v7152_v34 = vld [vmem:[%s6448_s16] sm:$0xff] }
 0xb9c   : > { %v6114_v35 = vpop.eup %6113 }
 0xb9d   : > { %v1786_v36 = vsel %vm641_vm2, %v6114_v35, 0.0 }
 0xb9e   : > { %1787 = vadd.xlane.f32.xlu1 %v1786_v36 }
 0xc2b   : > { %v1788_v2 = vpop.xlane.xlu1 %1787 }
 0xc2c   : > { %6115 = vrcp.f32 %v1788_v2  ;;  %v3755_v2 = vld [vmem:[%s7818_s4 + $0x260] sm:$0xff] }
 0xc2d   : > { %v5758_v4 = vpack.c.bf16 %v3756_v3, %v3755_v2  ;;  %v3767_v2 = vld [vmem:[%s7816_s2 + $0x2b0] sm:$0xff]  ;;  %v3768_v3 = vld [vmem:[%s7816_s2 + $0x2b8] sm:$0xff] }
 0xc36   : > { %v6116_v6 = vpop.eup %6115 }
 0xc37   : > { %v1790_v7 = vmul.f32 %v6116_v6, %v6114_v35  ;;  %v4916_v35 = vpop.f32.mrb[32].mxu1  ;;  %v3757_v6 = vld [vmem:[%s7818_s4 + $0x270] sm:$0xff] }
 0xc38   : > { %v2012_v36 = vpop.f32.mrb[33].mxu1 }
 0xc39   : > { %v1791_v9 = vpack.c.bf16 %v1790_v7, %v1790_v7  ;;  %v2021_v37 = vpack.c.bf16 %v4916_v35, %v2012_v36  ;;  %v3758_v7 = vld [vmem:[%s7818_s4 + $0x278] sm:$0xff]  ;;  %v3783_v35 = vld [vmem:[%s7817_s3 + $0x2b0] sm:$0xff] }
 0xc3a   : > { %v3784_v36 = vld [vmem:[%s7817_s3 + $0x2b8] sm:$0xff] }
 0xc3b   : > { %4844 = vmatmul.mubr.msk.bf16.vlgmr.msra.gmra.mrb[20].mxu0 %vm641_vm2, %v1791_v9  ;;  %v2119_v38 = vsel %vm594_vm1, %v2021_v37, 0  ;;  %v5802_v37 = vpack.c.bf16 %v3784_v36, %v3783_v35  ;;  %v3795_v35 = vld [vmem:[%s7818_s4 + $0x290] sm:$0xff] }
 0xc3c   : > { %5680 = vmatpush3.bf16.msra.mxu0 %v5679_v8  ;;  %4879 = vmatprep.mubr.msk.f32.mxu0 %vm6219_vm0, %v6220_v11  ;;  %v5762_v8 = vpack.c.bf16 %v3758_v7, %v3757_v6  ;;  %v3769_v6 = vld [vmem:[%s7816_s2 + $0x2c0] sm:$0xff]  ;;  %v3770_v7 = vld [vmem:[%s7816_s2 + $0x2c8] sm:$0xff] }
 0xc3d   : > { %5681 = vmatprep.subr.bf16.mxu0 %v6218_v5  ;;  %4953 = vmatpush3.bf16.xpose.msra.mxu1 %v2119_v38  ;;  %v3785_v38 = vld [vmem:[%s7817_s3 + $0x2c0] sm:$0xff] }
 0xc3e   : > { %4958 = vmatprep.subr.bf16.mxu1 %v6220_v11 }
 0xc40   : > { %5683 = vmatpush3.bf16.msra.mxu0 %v5682_v14 }
 0xc41   : > { %5684 = vmatprep.subr.bf16.mxu0 %v6218_v5 }
 0xc44   : > { %5686 = vmatpush3.bf16.msra.mxu0 %v5685_v17 }
 0xc45   : > { %5687 = vmatprep.subr.bf16.mxu0 %v6218_v5 }
 0xc48   : > { %5689 = vmatpush3.bf16.msra.mxu0 %v5688_v20 }
 0xc49   : > { %5690 = vmatprep.subr.bf16.mxu0 %v6218_v5 }
 0xc4c   : > { %5692 = vmatpush3.bf16.msra.mxu0 %v5691_v23  ;;  %v5790_v23 = vpack.c.bf16 %v3778_v22, %v3777_v21 }
 0xc4d   : > { %5693 = vmatprep.subr.bf16.mxu0 %v6218_v5 }
 0xc50   : > { %5695 = vmatpush3.bf16.msra.mxu0 %v5694_v28 }
 0xc51   : > { %5696 = vmatprep.subr.bf16.mxu0 %v6218_v5 }
 0xc54   : > { %5698 = vmatpush3.bf16.msra.mxu0 %v5697_v51 }
 0xc55   : > { %5699 = vmatprep.subr.bf16.mxu0 %v6218_v5 }
 0xc58   : > { %5701 = vmatpush3.bf16.msra.mxu0 %v5700_v33  ;;  %v5798_v33 = vpack.c.bf16 %v3782_v32, %v3781_v31  ;;  %v3793_v32 = vld [vmem:[%s7818_s4 + $0x280] sm:$0xff] }
 0xc59   : > { %5735 = vmatprep.subr.bf16.mxu0 %v5734_v49 }
 0xc5b   : > { %4880 = vmatmul.mubr.f32.vlgmr.msra.gmra.mrb[24].mxu0 %v7152_v34 }
 0xc5c   : > { %4949 = vmatprep.mubr.f32.mxu0 %v6975_v53  ;;  %5737 = vmatpush3.bf16.msra.mxu0 %v5734_v49  ;;  %v3792_v49 = vld [vmem:[%s7817_s3 + $0x2f8] sm:$0xff] }
 0xc5d   : > { %5739 = vmatprep.subr.bf16.mxu0 %v5738_v54  ;;  %v5818_v50 = vpack.c.bf16 %v3792_v49, %v3791_v48  ;;  %v3803_v49 = vld [vmem:[%s7818_s4 + $0x2d0] sm:$0xff] }
 0xc60   : > { %5741 = vmatpush3.bf16.msra.mxu0 %v5738_v54 }
 0xc61   : > { %5743 = vmatprep.subr.bf16.mxu0 %v5742_v57 }
 0xc64   : > { %5745 = vmatpush3.bf16.msra.mxu0 %v5742_v57 }
 0xc65   : > { %5747 = vmatprep.subr.bf16.mxu0 %v5746_v60 }
 0xc68   : > { %5749 = vmatpush3.bf16.msra.mxu0 %v5746_v60 }
 0xc69   : > { %5751 = vmatprep.subr.bf16.mxu0 %v5750_v52 }
 0xc6c   : > { %5753 = vmatpush3.bf16.msra.mxu0 %v5750_v52  ;;  %v5770_v52 = vpack.c.bf16 %v3764_v62, %v3763_v61 }
 0xc6d   : > { %5755 = vmatprep.subr.bf16.mxu0 %v5754_v1 }
 0xc70   : > { %5757 = vmatpush3.bf16.msra.mxu0 %v5754_v1  ;;  %v5773_v1 = vpack.c.bf16 %v3766_v0, %v3765_v63 }
 0xc71   : > { %5759 = vmatprep.subr.bf16.mxu0 %v5758_v4 }
 0xc74   : > { %5761 = vmatpush3.bf16.msra.mxu0 %v5758_v4  ;;  %v5776_v4 = vpack.c.bf16 %v3768_v3, %v3767_v2 }
 0xc75   : > { %5763 = vmatprep.subr.bf16.mxu0 %v5762_v8 }
 0xc78   : > { %5765 = vmatpush3.bf16.msra.mxu0 %v5762_v8  ;;  %v5779_v8 = vpack.c.bf16 %v3770_v7, %v3769_v6  ;;  %v3827_v7 = vld [vmem:[%s7817_s3 + $0x300] sm:$0xff] }
 0xc79   : > { %5791 = vmatprep.subr.bf16.mxu0 %v5790_v23 }
 0xc7b   : > { %4950 = vmatmul.mubr.f32.vlgmr.msra.gmra.mrb[26].mxu0 %v7034_v27 }
 0xc7c   : > { %5031 = vmatprep.mubr.f32.mxu0 %v6975_v53  ;;  %5793 = vmatpush3.bf16.msra.mxu0 %v5790_v23 }
 0xc7d   : > { %5795 = vmatprep.subr.bf16.mxu0 %v5794_v29 }
 0xc80   : > { %5797 = vmatpush3.bf16.msra.mxu0 %v5794_v29 }
 0xc81   : > { %5799 = vmatprep.subr.bf16.mxu0 %v5798_v33 }
 0xc84   : > { %5801 = vmatpush3.bf16.msra.mxu0 %v5798_v33  ;;  %v3794_v33 = vld [vmem:[%s7818_s4 + $0x288] sm:$0xff] }
 0xc85   : > { %5803 = vmatprep.subr.bf16.mxu0 %v5802_v37  ;;  %v5822_v36 = vpack.c.bf16 %v3794_v33, %v3793_v32  ;;  %v3839_v32 = vld [vmem:[%s7817_s3 + $0x360] sm:$0xff]  ;;  %v3840_v33 = vld [vmem:[%s7817_s3 + $0x368] sm:$0xff] }
 0xc88   : > { %5805 = vmatpush3.bf16.msra.mxu0 %v5802_v37  ;;  %v3796_v37 = vld [vmem:[%s7818_s4 + $0x298] sm:$0xff] }
 0xd0e   : > { %v7158_v39 = vpop.f32.mrb[20].mxu0 }
 0xd0f   : > { %v4845_v40 = vpop.f32.mrb[21].mxu0 }
 0xd10   : > { %v1832_v41 = vpop.f32.mrb[22].mxu0  ;;  %v3786_v40 = vld [vmem:[%s7817_s3 + $0x2c8] sm:$0xff] }
 0xd11   : > { %v4846_v42 = vpop.f32.mrb[23].mxu0  ;;  %v5806_v41 = vpack.c.bf16 %v3786_v40, %v3785_v38  ;;  %v5826_v38 = vpack.c.bf16 %v3796_v37, %v3795_v35  ;;  %v3797_v40 = vld [vmem:[%s7818_s4 + $0x2a0] sm:$0xff]  ;;  %v5902_v35 = vpack.c.bf16 %v3840_v33, %v3839_v32  ;;  %v3842_v37 = vld [vmem:[%s7817_s3 + $0x378] sm:$0xff] }
 0xd12   : > { %v3787_v42 = vld [vmem:[%s7817_s3 + $0x2d0] sm:$0xff]  ;;  %v3851_v33 = vld [vmem:[%s7818_s4 + $0x340] sm:$0xff] }
 0xd13   : > { %5807 = vmatprep.subr.bf16.mxu0 %v5806_v41 }
 0xd14   : > { %5809 = vmatpush3.bf16.msra.mxu0 %v5806_v41  ;;  %v3798_v41 = vld [vmem:[%s7818_s4 + $0x2a8] sm:$0xff] }
 0xd2e   : > { %v1924_v43 = vpop.f32.mrb[24].mxu0 }
 0xd2f   : > { %v1928_v44 = vpack.c.bf16 %v1924_v43, %v1924_v43  ;;  %v4881_v45 = vpop.f32.mrb[25].mxu0  ;;  %v3788_v43 = vld [vmem:[%s7817_s3 + $0x2d8] sm:$0xff] }
 0xd30   : > { %v3789_v45 = vld [vmem:[%s7817_s3 + $0x2e0] sm:$0xff] }
 0xd31   : > { %4955 = vmatmul.mubr.msk.bf16.vlgmr.msra.gmra.mrb[36].mxu1 %vm594_vm1, %v1928_v44  ;;  %v5810_v44 = vpack.c.bf16 %v3788_v43, %v3787_v42  ;;  %v5814_v47 = vpack.c.bf16 %v3790_v46, %v3789_v45  ;;  %v5830_v42 = vpack.c.bf16 %v3798_v41, %v3797_v40  ;;  %v3799_v43 = vld [vmem:[%s7818_s4 + $0x2b0] sm:$0xff]  ;;  %v3801_v46 = vld [vmem:[%s7818_s4 + $0x2c0] sm:$0xff] }
 0xd32   : > { %4960 = vmatprep.mubr.msk.bf16.mxu1 %vm6219_vm0, %v6220_v11  ;;  %v3811_v41 = vld [vmem:[%s7816_s2 + $0x300] sm:$0xff] }
 0xd33   : > { %5811 = vmatprep.subr.bf16.mxu0 %v5810_v44 }
 0xd34   : > { %5813 = vmatpush3.bf16.msra.mxu0 %v5810_v44  ;;  %v3800_v44 = vld [vmem:[%s7818_s4 + $0x2b8] sm:$0xff] }
 0xd35   : > { %5815 = vmatprep.subr.bf16.mxu0 %v5814_v47  ;;  %v5834_v45 = vpack.c.bf16 %v3800_v44, %v3799_v43 }
 0xd38   : > { %5817 = vmatpush3.bf16.msra.mxu0 %v5814_v47  ;;  %v3802_v47 = vld [vmem:[%s7818_s4 + $0x2c8] sm:$0xff] }
 0xd39   : > { %5819 = vmatprep.subr.bf16.mxu0 %v5818_v50  ;;  %v5838_v48 = vpack.c.bf16 %v3802_v47, %v3801_v46  ;;  %v3813_v47 = vld [vmem:[%s7816_s2 + $0x310] sm:$0xff] }
 0xd3c   : > { %5821 = vmatpush3.bf16.msra.mxu0 %v5818_v50  ;;  %v3804_v50 = vld [vmem:[%s7818_s4 + $0x2d8] sm:$0xff] }
 0xd3d   : > { %5069 = vmatprep.subr.bf16.mxu0 %v6220_v11 }
 0xd3f   : > { %5032 = vmatmul.mubr.f32.vlgmr.msra.gmra.mrb[28].mxu0 %v7034_v27 }
 0xd40   : > { %5071 = vmatprep.mubr.msk.bf16.mxu0 %vm6219_vm0, %v6220_v11 }
 0xd4e   : > { %v4951_v28 = vpop.f32.mrb[26].mxu0 }
 0xd4f   : > { %v2105_v30 = vpop.f32.mrb[27].mxu0 }
 0xd50   : > { %v2114_v51 = vpack.c.bf16 %v4951_v28, %v2105_v30 }
 0xd52   : > { %4959 = vmatpush3.bf16.msra.mxu1 %v2114_v51 }
 0xd53   : > { %5766 = vmatprep.subr.bf16.mxu1 %v6218_v5 }
 0xe04   : > { %v2155_v9 = vpop.f32.mrb[36].mxu1 }
 0xe05   : > { %v4956_v10 = vpop.f32.mrb[37].mxu1  ;;  %v2161_v13 = vsel %vm641_vm2, %v2155_v9, -inf }
 0xe06   : > { %2162 = vmax.xlane.f32.xlu0 %v2161_v13  ;;  %v2158_v14 = vpop.f32.mrb[38].mxu1  ;;  %v3772_v10 = vld [vmem:[%s7816_s2 + $0x2d8] sm:$0xff] }
 0xe07   : > { %v4957_v15 = vpop.f32.mrb[39].mxu1  ;;  %v3773_v14 = vld [vmem:[%s7816_s2 + $0x2e0] sm:$0xff] }
 0xe08   : > { %v3774_v15 = vld [vmem:[%s7816_s2 + $0x2e8] sm:$0xff] }
 0xe93   : > { %v2163_v16 = vpop.xlane.xlu0 %2162 }
 0xe94   : > { %v2164_v17 = vsub.f32 %v2155_v9, %v2163_v16  ;;  %v3771_v9 = vld [vmem:[%s7816_s2 + $0x2d0] sm:$0xff]  ;;  %v5785_v16 = vpack.c.bf16 %v3774_v15, %v3773_v14 }
 0xe95   : > { %v5782_v13 = vpack.c.bf16 %v3772_v10, %v3771_v9  ;;  %v3829_v10 = vld [vmem:[%s7817_s3 + $0x310] sm:$0xff] }
 0xe96   : > { %v2165_v18 = vmul.f32 1.442695, %v2164_v17  ;;  %v3775_v17 = vld [vmem:[%s7816_s2 + $0x2f0] sm:$0xff] }
 0xe98   : > { %6117 = vpow2.f32 %v2165_v18  ;;  %v3776_v18 = vld [vmem:[%s7816_s2 + $0x2f8] sm:$0xff] }
 0xea2   : > { %v6118_v19 = vpop.eup %6117 }
 0xea3   : > { %v2167_v20 = vsel %vm641_vm2, %v6118_v19, 0.0 }
 0xea4   : > { %2168 = vadd.xlane.f32.xlu1 %v2167_v20  ;;  %v5033_v20 = vpop.f32.mrb[28].mxu0 }
 0xea5   : > { %v2393_v21 = vpop.f32.mrb[29].mxu0 }
 0xea6   : > { %v2402_v22 = vpack.c.bf16 %v5033_v20, %v2393_v21  ;;  %v3833_v21 = vld [vmem:[%s7817_s3 + $0x330] sm:$0xff] }
 0xea8   : > { %v2500_v23 = vsel %vm594_vm1, %v2402_v22, 0  ;;  %v3834_v22 = vld [vmem:[%s7817_s3 + $0x338] sm:$0xff] }
 0xea9   : > { %5070 = vmatpush3.bf16.xpose.msra.mxu0 %v2500_v23  ;;  %v5890_v23 = vpack.c.bf16 %v3834_v22, %v3833_v21  ;;  %v3845_v21 = vld [vmem:[%s7818_s4 + $0x310] sm:$0xff] }
 0xeaa   : > { %5075 = vmatprep.subr.bf16.mxu0 %v6220_v11 }
 0xf31   : > { %v2169_v54 = vpop.xlane.xlu1 %2168 }
 0xf32   : > { %6119 = vrcp.f32 %v2169_v54  ;;  %v5842_v54 = vpack.c.bf16 %v3804_v50, %v3803_v49  ;;  %v3815_v50 = vld [vmem:[%s7816_s2 + $0x320] sm:$0xff] }
 0xf3c   : > { %v6120_v57 = vpop.eup %6119 }
 0xf3d   : > { %v2171_v24 = vmul.f32 %v6120_v57, %v6118_v19  ;;  %v5788_v19 = vpack.c.bf16 %v3776_v18, %v3775_v17  ;;  %v5846_v57 = vpack.c.bf16 %v3806_v56, %v3805_v55  ;;  %v3831_v18 = vld [vmem:[%s7817_s3 + $0x320] sm:$0xff]  ;;  %v3817_v56 = vld [vmem:[%s7816_s2 + $0x330] sm:$0xff] }
 0xf3f   : > { %v2172_v60 = vpack.c.bf16 %v2171_v24, %v2171_v24  ;;  %v3807_v24 = vld [vmem:[%s7818_s4 + $0x2f0] sm:$0xff] }
 0xf41   : > { %4961 = vmatmul.mubr.msk.bf16.vlgmr.msra.gmra.mrb[40].mxu1 %vm641_vm2, %v2172_v60 }
 0xf42   : > { %5768 = vmatpush3.bf16.msra.mxu1 %v5767_v59  ;;  %4996 = vmatprep.mubr.msk.f32.mxu1 %vm6219_vm0, %v6220_v11  ;;  %v3808_v59 = vld [vmem:[%s7818_s4 + $0x2f8] sm:$0xff] }
 0xf43   : > { %5769 = vmatprep.subr.bf16.mxu1 %v6218_v5  ;;  %v5850_v60 = vpack.c.bf16 %v3808_v59, %v3807_v24  ;;  %v3819_v59 = vld [vmem:[%s7816_s2 + $0x340] sm:$0xff] }
 0xf46   : > { %5771 = vmatpush3.bf16.msra.mxu1 %v5770_v52 }
 0xf47   : > { %5772 = vmatprep.subr.bf16.mxu1 %v6218_v5 }
 0xf4a   : > { %5774 = vmatpush3.bf16.msra.mxu1 %v5773_v1 }
 0xf4b   : > { %5775 = vmatprep.subr.bf16.mxu1 %v6218_v5 }
 0xf4e   : > { %5777 = vmatpush3.bf16.msra.mxu1 %v5776_v4 }
 0xf4f   : > { %5778 = vmatprep.subr.bf16.mxu1 %v6218_v5 }
 0xf52   : > { %5780 = vmatpush3.bf16.msra.mxu1 %v5779_v8  ;;  %v3828_v8 = vld [vmem:[%s7817_s3 + $0x308] sm:$0xff] }
 0xf53   : > { %5781 = vmatprep.subr.bf16.mxu1 %v6218_v5  ;;  %v5878_v9 = vpack.c.bf16 %v3828_v8, %v3827_v7 }
 0xf56   : > { %5783 = vmatpush3.bf16.msra.mxu1 %v5782_v13  ;;  %v3830_v13 = vld [vmem:[%s7817_s3 + $0x318] sm:$0xff] }
 0xf57   : > { %5784 = vmatprep.subr.bf16.mxu1 %v6218_v5  ;;  %v5882_v15 = vpack.c.bf16 %v3830_v13, %v3829_v10 }
 0xf5a   : > { %5786 = vmatpush3.bf16.msra.mxu1 %v5785_v16 }
 0xf5b   : > { %5787 = vmatprep.subr.bf16.mxu1 %v6218_v5 }
 0xf5e   : > { %5789 = vmatpush3.bf16.msra.mxu1 %v5788_v19  ;;  %v3832_v19 = vld [vmem:[%s7817_s3 + $0x328] sm:$0xff] }
 0xf5f   : > { %5823 = vmatprep.subr.bf16.mxu1 %v5822_v36  ;;  %v5886_v20 = vpack.c.bf16 %v3832_v19, %v3831_v18 }
 0xf61   : > { %4997 = vmatmul.mubr.f32.vlgmr.msra.gmra.mrb[34].mxu1 %v7152_v34 }
 0xf62   : > { %5066 = vmatprep.mubr.f32.mxu1 %v6975_v53  ;;  %5825 = vmatpush3.bf16.msra.mxu1 %v5822_v36  ;;  %v3841_v36 = vld [vmem:[%s7817_s3 + $0x370] sm:$0xff] }
 0xf63   : > { %5827 = vmatprep.subr.bf16.mxu1 %v5826_v38 }
 0xf66   : > { %5829 = vmatpush3.bf16.msra.mxu1 %v5826_v38  ;;  %v5906_v38 = vpack.c.bf16 %v3842_v37, %v3841_v36  ;;  %v3853_v37 = vld [vmem:[%s7818_s4 + $0x350] sm:$0xff] }
 0xf67   : > { %5831 = vmatprep.subr.bf16.mxu1 %v5830_v42 }
 0xf6a   : > { %5833 = vmatpush3.bf16.msra.mxu1 %v5830_v42  ;;  %v3812_v42 = vld [vmem:[%s7816_s2 + $0x308] sm:$0xff] }
 0xf6b   : > { %5835 = vmatprep.subr.bf16.mxu1 %v5834_v45 }
 0xf6e   : > { %5837 = vmatpush3.bf16.msra.mxu1 %v5834_v45  ;;  %v5855_v45 = vpack.c.bf16 %v3812_v42, %v3811_v41  ;;  %v3855_v41 = vld [vmem:[%s7818_s4 + $0x360] sm:$0xff]  ;;  %v3856_v42 = vld [vmem:[%s7818_s4 + $0x368] sm:$0xff] }
 0xf6f   : > { %5839 = vmatprep.subr.bf16.mxu1 %v5838_v48 }
 0xf72   : > { %5841 = vmatpush3.bf16.msra.mxu1 %v5838_v48  ;;  %v3814_v48 = vld [vmem:[%s7816_s2 + $0x318] sm:$0xff] }
 0xf73   : > { %5843 = vmatprep.subr.bf16.mxu1 %v5842_v54  ;;  %v5858_v49 = vpack.c.bf16 %v3814_v48, %v3813_v47  ;;  %v7557_v47 = vld [vmem:[%s6378_s22] sm:$0xff] }
 0xf76   : > { %5845 = vmatpush3.bf16.msra.mxu1 %v5842_v54  ;;  %v3816_v54 = vld [vmem:[%s7816_s2 + $0x328] sm:$0xff] }
 0xf77   : > { %5847 = vmatprep.subr.bf16.mxu1 %v5846_v57  ;;  %v5861_v55 = vpack.c.bf16 %v3816_v54, %v3815_v50 }
 0xf7a   : > { %5849 = vmatpush3.bf16.msra.mxu1 %v5846_v57  ;;  %v3818_v57 = vld [vmem:[%s7816_s2 + $0x338] sm:$0xff] }
 0xf7b   : > { %5851 = vmatprep.subr.bf16.mxu1 %v5850_v60  ;;  %v5864_v24 = vpack.c.bf16 %v3818_v57, %v3817_v56 }
 0xf7e   : > { %5853 = vmatpush3.bf16.msra.mxu1 %v5850_v60  ;;  %v3820_v60 = vld [vmem:[%s7816_s2 + $0x348] sm:$0xff] }
 0xf7f   : > { %5879 = vmatprep.subr.bf16.mxu1 %v5878_v9 }
 0xf81   : > { %5067 = vmatmul.mubr.f32.vlgmr.msra.gmra.mrb[44].mxu1 %v7034_v27 }
 0xf82   : > { %5148 = vmatprep.mubr.f32.mxu1 %v6975_v53  ;;  %5881 = vmatpush3.bf16.msra.mxu1 %v5878_v9 }
 0xf83   : > { %5883 = vmatprep.subr.bf16.mxu1 %v5882_v15 }
 0xf86   : > { %5885 = vmatpush3.bf16.msra.mxu1 %v5882_v15 }
 0xf87   : > { %5887 = vmatprep.subr.bf16.mxu1 %v5886_v20 }
 0xf8a   : > { %5889 = vmatpush3.bf16.msra.mxu1 %v5886_v20  ;;  %v3844_v20 = vld [vmem:[%s7818_s4 + $0x308] sm:$0xff] }
 0xf8b   : > { %5891 = vmatprep.subr.bf16.mxu1 %v5890_v23 }
 0xf8e   : > { %5893 = vmatpush3.bf16.msra.mxu1 %v5890_v23  ;;  %v3846_v23 = vld [vmem:[%s7818_s4 + $0x318] sm:$0xff] }
0x1014   : > { %v7330_v25 = vpop.f32.mrb[40].mxu1 }
0x1015   : > { %v4962_v26 = vpop.f32.mrb[41].mxu1 }
0x1016   : > { %v2213_v28 = vpop.f32.mrb[42].mxu1  ;;  %v3835_v26 = vld [vmem:[%s7817_s3 + $0x340] sm:$0xff] }
0x1017   : > { %v4963_v29 = vpop.f32.mrb[43].mxu1  ;;  %v3836_v28 = vld [vmem:[%s7817_s3 + $0x348] sm:$0xff] }
0x1018   : > { %v5894_v29 = vpack.c.bf16 %v3836_v28, %v3835_v26  ;;  %v5914_v26 = vpack.c.bf16 %v3846_v23, %v3845_v21  ;;  %v3847_v28 = vld [vmem:[%s7818_s4 + $0x320] sm:$0xff]  ;;  %v3892_v23 = vld [vmem:[%s7817_s3 + $0x3f8] sm:$0xff] }
0x101a   : > { %5895 = vmatprep.subr.bf16.mxu1 %v5894_v29 }
0x101b   : > { %5897 = vmatpush3.bf16.msra.mxu1 %v5894_v29  ;;  %v3848_v29 = vld [vmem:[%s7818_s4 + $0x328] sm:$0xff] }
0x1034   : > { %v2305_v30 = vpop.f32.mrb[34].mxu1 }
0x1035   : > { %v2309_v51 = vpack.c.bf16 %v2305_v30, %v2305_v30  ;;  %v4998_v31 = vpop.f32.mrb[35].mxu1  ;;  %v3837_v30 = vld [vmem:[%s7817_s3 + $0x350] sm:$0xff] }
0x1037   : > { %5072 = vmatmul.mubr.msk.bf16.vlgmr.msra.gmra.mrb[32].mxu0 %vm594_vm1, %v2309_v51  ;;  %v3838_v51 = vld [vmem:[%s7817_s3 + $0x358] sm:$0xff] }
0x1038   : > { %5077 = vmatprep.mubr.msk.bf16.mxu0 %vm6219_vm0, %v6220_v11  ;;  %v5898_v31 = vpack.c.bf16 %v3838_v51, %v3837_v30  ;;  %v5918_v30 = vpack.c.bf16 %v3848_v29, %v3847_v28  ;;  %v3849_v51 = vld [vmem:[%s7818_s4 + $0x330] sm:$0xff]  ;;  %v7613_v28 = vld [vmem:[%s6378_s22 + $0x8] sm:$0xff]  ;;  %s6226_s22 = smov 24  }
0x103a   : > { %5899 = vmatprep.subr.bf16.mxu1 %v5898_v31 }
0x103b   : > { %5901 = vmatpush3.bf16.msra.mxu1 %v5898_v31  ;;  %v3850_v31 = vld [vmem:[%s7818_s4 + $0x338] sm:$0xff] }
0x103c   : > { %5903 = vmatprep.subr.bf16.mxu1 %v5902_v35  ;;  %v5922_v32 = vpack.c.bf16 %v3850_v31, %v3849_v51  ;;  %v3862_v51 = vld [vmem:[%s7816_s2 + $0x388] sm:$0xff] }
0x103f   : > { %5905 = vmatpush3.bf16.msra.mxu1 %v5902_v35  ;;  %v3852_v35 = vld [vmem:[%s7818_s4 + $0x348] sm:$0xff] }
0x1040   : > { %5907 = vmatprep.subr.bf16.mxu1 %v5906_v38  ;;  %v5926_v36 = vpack.c.bf16 %v3852_v35, %v3851_v33 }
0x1043   : > { %5909 = vmatpush3.bf16.msra.mxu1 %v5906_v38  ;;  %v3854_v38 = vld [vmem:[%s7818_s4 + $0x358] sm:$0xff] }
0x1044   : > { %5186 = vmatprep.subr.bf16.mxu1 %v6220_v11 }
0x1046   : > { %5149 = vmatmul.mubr.f32.vlgmr.msra.gmra.mrb[46].mxu1 %v7034_v27 }
0x1047   : > { %5188 = vmatprep.mubr.msk.bf16.mxu1 %vm6219_vm0, %v6220_v11 }
0x1054   : > { %v5068_v14 = vpop.f32.mrb[44].mxu1 }
0x1055   : > { %v2486_v16 = vpop.f32.mrb[45].mxu1 }
0x1056   : > { %v2495_v17 = vpack.c.bf16 %v5068_v14, %v2486_v16 }
0x1058   : > { %5076 = vmatpush3.bf16.msra.mxu0 %v2495_v17 }
0x1059   : > { %5854 = vmatprep.subr.bf16.mxu0 %v6218_v5 }
0x110a   : > { %v2536_v61 = vpop.f32.mrb[32].mxu0 }
0x110b   : > { %v5073_v62 = vpop.f32.mrb[33].mxu0  ;;  %v2542_v52 = vsel %vm641_vm2, %v2536_v61, -inf }
0x110c   : > { %2543 = vmax.xlane.f32.xlu0 %v2542_v52  ;;  %v2539_v63 = vpop.f32.mrb[34].mxu0  ;;  %v3821_v62 = vld [vmem:[%s7816_s2 + $0x350] sm:$0xff]  ;;  %v3822_v52 = vld [vmem:[%s7816_s2 + $0x358] sm:$0xff] }
0x110d   : > { %v5074_v0 = vpop.f32.mrb[35].mxu0  ;;  %v5870_v63 = vpack.c.bf16 %v3822_v52, %v3821_v62  ;;  %v3879_v52 = vld [vmem:[%s7817_s3 + $0x390] sm:$0xff] }
0x110e   : > { %v3823_v0 = vld [vmem:[%s7816_s2 + $0x360] sm:$0xff] }
0x1119   : > { %v5150_v7 = vpop.f32.mrb[46].mxu1 }
0x111a   : > { %v2774_v8 = vpop.f32.mrb[47].mxu1 }
0x111b   : > { %v2783_v9 = vpack.c.bf16 %v5150_v7, %v2774_v8  ;;  %v3883_v8 = vld [vmem:[%s7817_s3 + $0x3b0] sm:$0xff] }
0x111d   : > { %v2881_v10 = vsel %vm594_vm1, %v2783_v9, 0  ;;  %v3884_v9 = vld [vmem:[%s7817_s3 + $0x3b8] sm:$0xff] }
0x111e   : > { %5187 = vmatpush3.bf16.xpose.msra.mxu1 %v2881_v10  ;;  %v5978_v10 = vpack.c.bf16 %v3884_v9, %v3883_v8  ;;  %v3895_v8 = vld [vmem:[%s7818_s4 + $0x390] sm:$0xff] }
0x111f   : > { %5192 = vmatprep.subr.bf16.mxu1 %v6220_v11 }
0x1199   : > { %v2544_v1 = vpop.xlane.xlu0 %2543 }
0x119a   : > { %v2545_v2 = vsub.f32 %v2536_v61, %v2544_v1  ;;  %v5867_v61 = vpack.c.bf16 %v3820_v60, %v3819_v59  ;;  %v3824_v1 = vld [vmem:[%s7816_s2 + $0x368] sm:$0xff] }
0x119c   : > { %v2546_v3 = vmul.f32 1.442695, %v2545_v2  ;;  %v5873_v2 = vpack.c.bf16 %v3824_v1, %v3823_v0 }
0x119e   : > { %6121 = vpow2.f32 %v2546_v3  ;;  %v3825_v3 = vld [vmem:[%s7816_s2 + $0x370] sm:$0xff] }
0x11a8   : > { %v6122_v4 = vpop.eup %6121 }
0x11a9   : > { %v2548_v6 = vsel %vm641_vm2, %v6122_v4, 0.0 }
0x11aa   : > { %2549 = vadd.xlane.f32.xlu1 %v2548_v6 }
0x1237   : > { %v2550_v40 = vpop.xlane.xlu1 %2549 }
0x1238   : > { %6123 = vrcp.f32 %v2550_v40  ;;  %v5930_v40 = vpack.c.bf16 %v3854_v38, %v3853_v37  ;;  %v3864_v37 = vld [vmem:[%s7816_s2 + $0x398] sm:$0xff] }
0x1242   : > { %v6124_v43 = vpop.eup %6123 }
0x1243   : > { %v2552_v44 = vmul.f32 %v6124_v43, %v6122_v4  ;;  %v3826_v4 = vld [vmem:[%s7816_s2 + $0x378] sm:$0xff]  ;;  %v5934_v43 = vpack.c.bf16 %v3856_v42, %v3855_v41  ;;  %v3866_v41 = vld [vmem:[%s7816_s2 + $0x3a8] sm:$0xff] }
0x1244   : > { %v5876_v6 = vpack.c.bf16 %v3826_v4, %v3825_v3  ;;  %v3881_v4 = vld [vmem:[%s7817_s3 + $0x3a0] sm:$0xff] }
0x1245   : > { %v2553_v46 = vpack.c.bf16 %v2552_v44, %v2552_v44  ;;  %v3857_v44 = vld [vmem:[%s7818_s4 + $0x370] sm:$0xff] }
0x1247   : > { %5078 = vmatmul.mubr.msk.bf16.vlgmr.msra.gmra.mrb[36].mxu0 %vm641_vm2, %v2553_v46 }
0x1248   : > { %5856 = vmatpush3.bf16.msra.mxu0 %v5855_v45  ;;  %5113 = vmatprep.mubr.msk.f32.mxu0 %vm6219_vm0, %v6220_v11  ;;  %v3858_v45 = vld [vmem:[%s7818_s4 + $0x378] sm:$0xff] }
0x1249   : > { %5857 = vmatprep.subr.bf16.mxu0 %v6218_v5  ;;  %v5938_v46 = vpack.c.bf16 %v3858_v45, %v3857_v44  ;;  %v3868_v44 = vld [vmem:[%s7816_s2 + $0x3b8] sm:$0xff] }
0x124c   : > { %5859 = vmatpush3.bf16.msra.mxu0 %v5858_v49 }
0x124d   : > { %5860 = vmatprep.subr.bf16.mxu0 %v6218_v5 }
0x1250   : > { %5862 = vmatpush3.bf16.msra.mxu0 %v5861_v55 }
0x1251   : > { %5863 = vmatprep.subr.bf16.mxu0 %v6218_v5 }
0x1254   : > { %5865 = vmatpush3.bf16.msra.mxu0 %v5864_v24 }
0x1255   : > { %5866 = vmatprep.subr.bf16.mxu0 %v6218_v5 }
0x1258   : > { %5868 = vmatpush3.bf16.msra.mxu0 %v5867_v61  ;;  %v3878_v61 = vld [vmem:[%s7817_s3 + $0x388] sm:$0xff] }
0x1259   : > { %5869 = vmatprep.subr.bf16.mxu0 %v6218_v5 }
0x125c   : > { %5871 = vmatpush3.bf16.msra.mxu0 %v5870_v63  ;;  %v3880_v63 = vld [vmem:[%s7817_s3 + $0x398] sm:$0xff] }
0x125d   : > { %5872 = vmatprep.subr.bf16.mxu0 %v6218_v5  ;;  %v5970_v1 = vpack.c.bf16 %v3880_v63, %v3879_v52 }
0x1260   : > { %5874 = vmatpush3.bf16.msra.mxu0 %v5873_v2 }
0x1261   : > { %5875 = vmatprep.subr.bf16.mxu0 %v6218_v5 }
0x1264   : > { %5877 = vmatpush3.bf16.msra.mxu0 %v5876_v6  ;;  %v3882_v6 = vld [vmem:[%s7817_s3 + $0x3a8] sm:$0xff] }
0x1265   : > { %v5974_v7 = vpack.c.bf16 %v3882_v6, %v3881_v4 }
0x1267   : > { %5114 = vmatmul.mubr.f32.vlgmr.msra.gmra.mrb[30].mxu0 %v7152_v34 }
0x1268   : > { %5183 = vmatprep.mubr.f32.mxu0 %v6975_v53  ;;  %v3843_v53 = vld [vmem:[%s7818_s4 + $0x300] sm:$0xff] }
0x1269   : > { %v5910_v22 = vpack.c.bf16 %v3844_v20, %v3843_v53  ;;  %v3889_v53 = vld [vmem:[%s7817_s3 + $0x3e0] sm:$0xff]  ;;  %v3890_v20 = vld [vmem:[%s7817_s3 + $0x3e8] sm:$0xff] }
0x126a   : > { %v5990_v21 = vpack.c.bf16 %v3890_v20, %v3889_v53  ;;  %v3901_v20 = vld [vmem:[%s7818_s4 + $0x3c0] sm:$0xff] }
0x126b   : > { %5911 = vmatprep.subr.bf16.mxu0 %v5910_v22 }
0x126c   : > { %5913 = vmatpush3.bf16.msra.mxu0 %v5910_v22  ;;  %v3891_v22 = vld [vmem:[%s7817_s3 + $0x3f0] sm:$0xff] }
0x126d   : > { %5915 = vmatprep.subr.bf16.mxu0 %v5914_v26 }
0x1270   : > { %5917 = vmatpush3.bf16.msra.mxu0 %v5914_v26  ;;  %v5994_v26 = vpack.c.bf16 %v3892_v23, %v3891_v22  ;;  %v3903_v23 = vld [vmem:[%s7818_s4 + $0x3d0] sm:$0xff] }
0x1271   : > { %5919 = vmatprep.subr.bf16.mxu0 %v5918_v30 }
0x1274   : > { %5921 = vmatpush3.bf16.msra.mxu0 %v5918_v30  ;;  %v3861_v30 = vld [vmem:[%s7816_s2 + $0x380] sm:$0xff] }
0x1275   : > { %5923 = vmatprep.subr.bf16.mxu0 %v5922_v32  ;;  %v5943_v33 = vpack.c.bf16 %v3862_v51, %v3861_v30  ;;  %v3905_v30 = vld [vmem:[%s7818_s4 + $0x3e0] sm:$0xff]  ;;  %v3906_v51 = vld [vmem:[%s7818_s4 + $0x3e8] sm:$0xff] }
0x1278   : > { %5925 = vmatpush3.bf16.msra.mxu0 %v5922_v32 }
0x1279   : > { %5927 = vmatprep.subr.bf16.mxu0 %v5926_v36 }
0x127c   : > { %5929 = vmatpush3.bf16.msra.mxu0 %v5926_v36  ;;  %v3863_v36 = vld [vmem:[%s7816_s2 + $0x390] sm:$0xff] }
0x127d   : > { %5931 = vmatprep.subr.bf16.mxu0 %v5930_v40  ;;  %v5946_v38 = vpack.c.bf16 %v3864_v37, %v3863_v36 }
0x1280   : > { %5933 = vmatpush3.bf16.msra.mxu0 %v5930_v40  ;;  %v3865_v40 = vld [vmem:[%s7816_s2 + $0x3a0] sm:$0xff] }
0x1281   : > { %5935 = vmatprep.subr.bf16.mxu0 %v5934_v43  ;;  %v5949_v42 = vpack.c.bf16 %v3866_v41, %v3865_v40 }
0x1284   : > { %5937 = vmatpush3.bf16.msra.mxu0 %v5934_v43  ;;  %v3867_v43 = vld [vmem:[%s7816_s2 + $0x3b0] sm:$0xff] }
0x1285   : > { %5939 = vmatprep.subr.bf16.mxu0 %v5938_v46  ;;  %v5952_v45 = vpack.c.bf16 %v3868_v44, %v3867_v43 }
0x1288   : > { %5941 = vmatpush3.bf16.msra.mxu0 %v5938_v46  ;;  %v3869_v46 = vld [vmem:[%s7816_s2 + $0x3c0] sm:$0xff] }
0x128b   : > { %5184 = vmatmul.mubr.f32.vlgmr.msra.gmra.mrb[40].mxu0 %v7034_v27  ;;  %v3877_v27 = vld [vmem:[%s7817_s3 + $0x380] sm:$0xff] }
0x128c   : > { %5265 = vmatprep.mubr.f32.mxu0 %v7557_v47  ;;  %v5966_v62 = vpack.c.bf16 %v3878_v61, %v3877_v27 }
0x128e   : > { %5967 = vmatprep.subr.bf16.mxu0 %v5966_v62 }
0x128f   : > { %5969 = vmatpush3.bf16.msra.mxu0 %v5966_v62 }
0x1290   : > { %5971 = vmatprep.subr.bf16.mxu0 %v5970_v1 }
0x1293   : > { %5973 = vmatpush3.bf16.msra.mxu0 %v5970_v1 }
0x1294   : > { %5975 = vmatprep.subr.bf16.mxu0 %v5974_v7 }
0x1297   : > { %5977 = vmatpush3.bf16.msra.mxu0 %v5974_v7 }
0x1298   : > { %5979 = vmatprep.subr.bf16.mxu0 %v5978_v10 }
0x129b   : > { %5981 = vmatpush3.bf16.msra.mxu0 %v5978_v10  ;;  %v3896_v10 = vld [vmem:[%s7818_s4 + $0x398] sm:$0xff] }
0x131a   : > { %v7502_v13 = vpop.f32.mrb[36].mxu0 }
0x131b   : > { %v5079_v14 = vpop.f32.mrb[37].mxu0 }
0x131c   : > { %v2594_v15 = vpop.f32.mrb[38].mxu0  ;;  %v3885_v14 = vld [vmem:[%s7817_s3 + $0x3c0] sm:$0xff] }
0x131d   : > { %v5080_v16 = vpop.f32.mrb[39].mxu0  ;;  %v3886_v15 = vld [vmem:[%s7817_s3 + $0x3c8] sm:$0xff] }
0x131e   : > { %v5982_v16 = vpack.c.bf16 %v3886_v15, %v3885_v14  ;;  %v6002_v14 = vpack.c.bf16 %v3896_v10, %v3895_v8  ;;  %v3897_v15 = vld [vmem:[%s7818_s4 + $0x3a0] sm:$0xff] }
0x1320   : > { %5983 = vmatprep.subr.bf16.mxu0 %v5982_v16 }
0x1321   : > { %5985 = vmatpush3.bf16.msra.mxu0 %v5982_v16  ;;  %v3898_v16 = vld [vmem:[%s7818_s4 + $0x3a8] sm:$0xff] }
0x133a   : > { %v2686_v17 = vpop.f32.mrb[30].mxu0 }
0x133b   : > { %v2690_v18 = vpack.c.bf16 %v2686_v17, %v2686_v17  ;;  %v5115_v19 = vpop.f32.mrb[31].mxu0  ;;  %v3887_v17 = vld [vmem:[%s7817_s3 + $0x3d0] sm:$0xff] }
0x133d   : > { %5189 = vmatmul.mubr.msk.bf16.vlgmr.msra.gmra.mrb[48].mxu1 %vm594_vm1, %v2690_v18  ;;  %v3888_v18 = vld [vmem:[%s7817_s3 + $0x3d8] sm:$0xff] }
0x133e   : > { %5194 = vmatprep.mubr.msk.bf16.mxu1 %vm6219_vm0, %v6220_v11  ;;  %v5986_v19 = vpack.c.bf16 %v3888_v18, %v3887_v17  ;;  %v6006_v17 = vpack.c.bf16 %v3898_v16, %v3897_v15  ;;  %v3899_v18 = vld [vmem:[%s7818_s4 + $0x3b0] sm:$0xff] }
0x1340   : > { %5987 = vmatprep.subr.bf16.mxu0 %v5986_v19 }
0x1341   : > { %5989 = vmatpush3.bf16.msra.mxu0 %v5986_v19  ;;  %v3900_v19 = vld [vmem:[%s7818_s4 + $0x3b8] sm:$0xff] }
0x1342   : > { %5991 = vmatprep.subr.bf16.mxu0 %v5990_v21  ;;  %v6010_v53 = vpack.c.bf16 %v3900_v19, %v3899_v18 }
0x1345   : > { %5993 = vmatpush3.bf16.msra.mxu0 %v5990_v21  ;;  %v3902_v21 = vld [vmem:[%s7818_s4 + $0x3c8] sm:$0xff] }
0x1346   : > { %5995 = vmatprep.subr.bf16.mxu0 %v5994_v26  ;;  %v6014_v22 = vpack.c.bf16 %v3902_v21, %v3901_v20 }
0x1349   : > { %5997 = vmatpush3.bf16.msra.mxu0 %v5994_v26  ;;  %v3904_v26 = vld [vmem:[%s7818_s4 + $0x3d8] sm:$0xff] }
0x134a   : > { %5303 = vmatprep.subr.bf16.mxu0 %v6220_v11 }
0x134c   : > { %5266 = vmatmul.mubr.f32.vlgmr.msra.gmra.mrb[42].mxu0 %v7613_v28 }
0x134d   : > { %5305 = vmatprep.mubr.msk.bf16.mxu0 %vm6219_vm0, %v6220_v11 }
0x135e   : > { %v5185_v0 = vpop.f32.mrb[40].mxu0 }
0x135f   : > { %v2867_v2 = vpop.f32.mrb[41].mxu0 }
0x1360   : > { %v2876_v3 = vpack.c.bf16 %v5185_v0, %v2867_v2 }
0x1362   : > { %5193 = vmatpush3.bf16.msra.mxu1 %v2876_v3 }
0x1363   : > { %5942 = vmatprep.subr.bf16.mxu1 %v6218_v5 }
0x1410   : > { %v2917_v48 = vpop.f32.mrb[48].mxu1 }
0x1411   : > { %v5190_v49 = vpop.f32.mrb[49].mxu1  ;;  %v2923_v50 = vsel %vm641_vm2, %v2917_v48, -inf }
0x1412   : > { %2924 = vmax.xlane.f32.xlu0 %v2923_v50  ;;  %v2920_v54 = vpop.f32.mrb[50].mxu1  ;;  %v3871_v50 = vld [vmem:[%s7816_s2 + $0x3d0] sm:$0xff] }
0x1413   : > { %v5191_v55 = vpop.f32.mrb[51].mxu1  ;;  %v3872_v54 = vld [vmem:[%s7816_s2 + $0x3d8] sm:$0xff] }
0x1414   : > { %v5958_v55 = vpack.c.bf16 %v3872_v54, %v3871_v50 }
0x141f   : > { %v5267_v61 = vpop.f32.mrb[42].mxu0 }
0x1420   : > { %v3155_v62 = vpop.f32.mrb[43].mxu0 }
0x1421   : > { %v3164_v52 = vpack.c.bf16 %v5267_v61, %v3155_v62  ;;  %v3369_v61 = vld [vmem:[%s7819_s5 + $0x18] sm:$0xff] }
0x1423   : > { %v3262_v63 = vsel %vm594_vm1, %v3164_v52, 0 }
0x1424   : > { %5304 = vmatpush3.bf16.xpose.msra.mxu0 %v3262_v63 }
0x1425   : > { %5309 = vmatprep.subr.bf16.mxu0 %v6220_v11 }
0x149f   : > { %v2925_v56 = vpop.xlane.xlu0 %2924 }
0x14a0   : > { %v2926_v57 = vsub.f32 %v2917_v48, %v2925_v56  ;;  %v3870_v48 = vld [vmem:[%s7816_s2 + $0x3c8] sm:$0xff]  ;;  %v3873_v56 = vld [vmem:[%s7816_s2 + $0x3e0] sm:$0xff] }
0x14a1   : > { %v5955_v49 = vpack.c.bf16 %v3870_v48, %v3869_v46 }
0x14a2   : > { %v2927_v24 = vmul.f32 1.442695, %v2926_v57  ;;  %v3874_v57 = vld [vmem:[%s7816_s2 + $0x3e8] sm:$0xff] }
0x14a4   : > { %6125 = vpow2.f32 %v2927_v24  ;;  %v5961_v24 = vpack.c.bf16 %v3874_v57, %v3873_v56 }
0x14ae   : > { %v6126_v59 = vpop.eup %6125 }
0x14af   : > { %v2929_v60 = vsel %vm641_vm2, %v6126_v59, 0.0 }
0x14b0   : > { %2930 = vadd.xlane.f32.xlu1 %v2929_v60  ;;  %v3876_v60 = vld [vmem:[%s7816_s2 + $0x3f8] sm:$0xff] }
0x153d   : > { %v2931_v29 = vpop.xlane.xlu1 %2930 }
0x153e   : > { %6127 = vrcp.f32 %v2931_v29  ;;  %v6018_v29 = vpack.c.bf16 %v3904_v26, %v3903_v23 }
0x1548   : > { %v6128_v31 = vpop.eup %6127 }
0x1549   : > { %v2933_v32 = vmul.f32 %v6128_v31, %v6126_v59  ;;  %v3875_v59 = vld [vmem:[%s7816_s2 + $0x3f0] sm:$0xff]  ;;  %v6022_v31 = vpack.c.bf16 %v3906_v51, %v3905_v30 }
0x154a   : > { %v5964_v27 = vpack.c.bf16 %v3876_v60, %v3875_v59  ;;  %v3367_v59 = vld [vmem:[%s7819_s5 + $0x8] sm:$0xff] }
0x154b   : > { %v2934_v35 = vpack.c.bf16 %v2933_v32, %v2933_v32  ;;  %v3907_v32 = vld [vmem:[%s7818_s4 + $0x3f0] sm:$0xff] }
0x154d   : > { %5195 = vmatmul.mubr.msk.bf16.vlgmr.msra.gmra.mrb[52].mxu1 %vm641_vm2, %v2934_v35 }
0x154e   : > { %5944 = vmatpush3.bf16.msra.mxu1 %v5943_v33  ;;  %5230 = vmatprep.mubr.msk.f32.mxu1 %vm6219_vm0, %v6220_v11  ;;  %v3908_v33 = vld [vmem:[%s7818_s4 + $0x3f8] sm:$0xff] }
0x154f   : > { %5945 = vmatprep.subr.bf16.mxu1 %v6218_v5  ;;  %v6026_v35 = vpack.c.bf16 %v3908_v33, %v3907_v32 }
0x1552   : > { %5947 = vmatpush3.bf16.msra.mxu1 %v5946_v38 }
0x1553   : > { %5948 = vmatprep.subr.bf16.mxu1 %v6218_v5 }
0x1556   : > { %5950 = vmatpush3.bf16.msra.mxu1 %v5949_v42 }
0x1557   : > { %5951 = vmatprep.subr.bf16.mxu1 %v6218_v5 }
0x155a   : > { %5953 = vmatpush3.bf16.msra.mxu1 %v5952_v45 }
0x155b   : > { %5954 = vmatprep.subr.bf16.mxu1 %v6218_v5 }
0x155e   : > { %5956 = vmatpush3.bf16.msra.mxu1 %v5955_v49 }
0x155f   : > { %5957 = vmatprep.subr.bf16.mxu1 %v6218_v5 }
0x1562   : > { %5959 = vmatpush3.bf16.msra.mxu1 %v5958_v55 }
0x1563   : > { %5960 = vmatprep.subr.bf16.mxu1 %v6218_v5 }
0x1566   : > { %5962 = vmatpush3.bf16.msra.mxu1 %v5961_v24  ;;  %v3366_v24 = vld [vmem:[%s7819_s5] sm:$0xff] }
0x1567   : > { %5963 = vmatprep.subr.bf16.mxu1 %v6218_v5  ;;  %v6031_v60 = vpack.c.bf16 %v3367_v59, %v3366_v24 }
0x156a   : > { %5965 = vmatpush3.bf16.msra.mxu1 %v5964_v27  ;;  %v3368_v27 = vld [vmem:[%s7819_s5 + $0x10] sm:$0xff] }
0x156d   : > { %5231 = vmatmul.mubr.f32.vlgmr.msra.gmra.mrb[56].mxu1 %v7152_v34  ;;  %v3893_v34 = vld [vmem:[%s7818_s4 + $0x380] sm:$0xff] }
0x156e   : > { %5300 = vmatprep.mubr.f32.mxu1 %v7557_v47  ;;  %v3894_v47 = vld [vmem:[%s7818_s4 + $0x388] sm:$0xff] }
0x156f   : > { %v5998_v9 = vpack.c.bf16 %v3894_v47, %v3893_v34 }
0x1571   : > { %5999 = vmatprep.subr.bf16.mxu1 %v5998_v9 }
0x1572   : > { %6001 = vmatpush3.bf16.msra.mxu1 %v5998_v9 }
0x1573   : > { %6003 = vmatprep.subr.bf16.mxu1 %v6002_v14 }
0x1576   : > { %6005 = vmatpush3.bf16.msra.mxu1 %v6002_v14 }
0x1577   : > { %6007 = vmatprep.subr.bf16.mxu1 %v6006_v17 }
0x157a   : > { %6009 = vmatpush3.bf16.msra.mxu1 %v6006_v17 }
0x157b   : > { %6011 = vmatprep.subr.bf16.mxu1 %v6010_v53 }
0x157e   : > { %6013 = vmatpush3.bf16.msra.mxu1 %v6010_v53 }
0x157f   : > { %6015 = vmatprep.subr.bf16.mxu1 %v6014_v22 }
0x1582   : > { %6017 = vmatpush3.bf16.msra.mxu1 %v6014_v22 }
0x1583   : > { %6019 = vmatprep.subr.bf16.mxu1 %v6018_v29 }
0x1586   : > { %6021 = vmatpush3.bf16.msra.mxu1 %v6018_v29 }
0x1587   : > { %6023 = vmatprep.subr.bf16.mxu1 %v6022_v31 }
0x158a   : > { %6025 = vmatpush3.bf16.msra.mxu1 %v6022_v31 }
0x158b   : > { %6027 = vmatprep.subr.bf16.mxu1 %v6026_v35 }
0x158e   : > { %6029 = vmatpush3.bf16.msra.mxu1 %v6026_v35 }
0x1591   : > { %5301 = vmatmul.mubr.f32.vlgmr.msra.gmra.mrb[58].mxu1 %v7613_v28 }
0x1620   : > { %v7680_v0 = vpop.f32.mrb[52].mxu1 }
0x1621   : > { %v5196_v1 = vpop.f32.mrb[53].mxu1 }
0x1622   : > { %v2975_v2 = vpop.f32.mrb[54].mxu1 }
0x1623   : > { %v5197_v3 = vpop.f32.mrb[55].mxu1 }
0x1640   : > { %v3067_v4 = vpop.f32.mrb[56].mxu1 }
0x1641   : > { %v3071_v6 = vpack.c.bf16 %v3067_v4, %v3067_v4  ;;  %v5232_v7 = vpop.f32.mrb[57].mxu1 }
0x1643   : > { %5306 = vmatmul.mubr.msk.bf16.vlgmr.msra.gmra.mrb[44].mxu0 %vm594_vm1, %v3071_v6 }
0x1644   : > { %5311 = vmatprep.mubr.msk.bf16.mxu0 %vm6219_vm0, %v6220_v11 }
0x1716   : > { %v3298_v36 = vpop.f32.mrb[44].mxu0 }
0x1717   : > { %v5307_v37 = vpop.f32.mrb[45].mxu0  ;;  %v3304_v38 = vsel %vm641_vm2, %v3298_v36, -inf }
0x1718   : > { %3305 = vmax.xlane.f32.xlu0 %v3304_v38  ;;  %v3301_v40 = vpop.f32.mrb[46].mxu0 }
0x1719   : > { %v5308_v41 = vpop.f32.mrb[47].mxu0 }
0x172e   : > { %1074 = vrot.lane.b32.xlu0 %v6803_v12, %s6221_s17  ;;  %v5302_v12 = vpop.f32.mrb[58].mxu1 }
0x172f   : > { %v3248_v48 = vpop.f32.mrb[59].mxu1 }
0x1732   : > { %2598 = vrot.lane.b32.xlu0 %v7502_v13, %s6222_s19  ;;  %v3257_v13 = vpack.c.bf16 %v5302_v12, %v3248_v48  ;;  %s6227_s19 = smov 28  }
0x1734   : > { %5310 = vmatpush3.bf16.msra.mxu0 %v3257_v13 }
0x1735   : > { %6030 = vmatprep.subr.bf16.mxu0 %v6218_v5 }
0x17a5   : > { %v3306_v42 = vpop.xlane.xlu0 %3305 }
0x17a6   : > { %v3307_v43 = vsub.f32 %v3298_v36, %v3306_v42 }
0x17a8   : > { %v3308_v44 = vmul.f32 1.442695, %v3307_v43 }
0x17a9   : > { %v1075_v45 = vpop.permute.xlu0 %1074 }
0x17aa   : > { %6129 = vpow2.f32 %v3308_v44  ;;  %1078 = vst.msk [vmem:[#allocation2] sm:$0xff] %vm1077_vm3, %v1075_v45 }
0x17b4   : > { %v6130_v28 = vpop.eup %6129 }
0x17b5   : > { %v3310_v46 = vsel %vm641_vm2, %v6130_v28, 0.0 }
0x17b6   : > { %3311 = vadd.xlane.f32.xlu1 %v3310_v46 }
0x17c7   : > { %1455 = vrot.lane.b32.xlu1 %v6980_v58, %s6223_s20  ;;  %s304_s20 = sand.u32 1, %s6200_s25  }
0x17c8   : > { %s3453_s18 = scalar_lea.sflag [#allocation4], %s304_s20 }
0x17cb   : > { %1836 = vrot.lane.b32.xlu1 %v7158_v39, %s6224_s21  ;;  %s3555_s21 = sshll.u32 %s304_s20, 3 }
0x17cc   : > { %s306_s10 = scalar_lea.vmem [#allocation3], %s3555_s21 }
0x17cd   : > { %s3467_s12 = sshll.u32 %s306_s10, 4  ;;  %s7769_s12 = int_to_ptr.vmem [resolvable:$true] %s3467_s12 }
0x17ce   : > { %s6138_s17 = scalar_lea.vmem %s7769_s12, 128 }
0x17cf   : > { %2217 = vrot.lane.b32.xlu1 %v7330_v25, %s6225_s30  ;;  %v2599_v25 = vpop.permute.xlu0 %2598  ;;  %p6139_p12 = scmp.ne.s32.totalorder %s7769_s12, %s6138_s17 }
0x17d1   : > { %p6140_p13 = pnand %p6139_p12, %p6309_p4 }
0x17d3   : > { %2979 = vrot.lane.b32.xlu1 %v7680_v0, %s6226_s22  ;;  %p6141_p0 = pneg %p6140_p13 }
0x1843   : > { %v3312_v49 = vpop.xlane.xlu1 %3311 }
0x1844   : > { %6131 = vrcp.f32 %v3312_v49 }
0x1847   : > { %v1456_v50 = vpop.permute.xlu1 %1455 }
0x1848   : > { %1459 = vst.msk [vmem:[#allocation2] sm:$0xff] %vm1458_vm4, %v1456_v50 }
0x184b   : > { %v1837_v58 = vpop.permute.xlu1 %1836 }
0x184c   : > { %1840 = vst.msk [vmem:[#allocation2] sm:$0xff] %vm1839_vm5, %v1837_v58 }
0x184e   : > { %v6132_v39 = vpop.eup %6131 }
0x184f   : > { %v3314_v54 = vmul.f32 %v6132_v39, %v6130_v28  ;;  %v2218_v55 = vpop.permute.xlu1 %2217 }
0x1850   : > { %2221 = vst.msk [vmem:[#allocation2] sm:$0xff] %vm2220_vm6, %v2218_v55 }
0x1851   : > { %2602 = vst.msk [vmem:[#allocation2] sm:$0xff] %vm2601_vm7, %v2599_v25  ;;  %v3315_v56 = vpack.c.bf16 %v3314_v54, %v3314_v54 }
0x1853   : > { %v2980_v57 = vpop.permute.xlu1 %2979  ;;  %5312 = vmatmul.mubr.msk.bf16.vlgmr.msra.gmra.mrb[48].mxu0 %vm641_vm2, %v3315_v56 }
0x1854   : > { %2983 = vst.msk [vmem:[#allocation2] sm:$0xff] %vm2982_vm8, %v2980_v57  ;;  %5323 = vmatprep.mubr.msk.f32.mxu0 %vm6219_vm0, %v6220_v11  ;;  %6032 = vmatpush3.bf16.msra.mxu0 %v6031_v60  ;;  %v6034_v11 = vpack.c.bf16 %v3369_v61, %v3368_v27 }
0x1855   : > { %6033 = vmatprep.subr.bf16.mxu0 %v6218_v5  ;;  %v3911_v5 = vld [vmem:[%s7820_s6] ss:$0 sm:$0xff] }
0x1858   : > { %6035 = vmatpush3.bf16.msra.mxu0 %v6034_v11 }
0x1926   : > { %v3353_v62 = vpop.f32.mrb[48].mxu0 }
0x1927   : > { %3360 = vrot.lane.b32.xlu0 %v3353_v62, %s6227_s19  ;;  %v5313_v52 = vpop.f32.mrb[49].mxu0  ;;  %s6142_s19 = sshll.u32 %s6228_s27, 4  ;;  %s6143_s19 = int_to_ptr.vmem [resolvable:$false] %s6142_s19 }
0x1928   : > { %v3356_v63 = vpop.f32.mrb[50].mxu0  ;;  %s6144_s21 = scalar_lea.vmem %s6143_s19, 256  ;;  %p6145_p1 = scmp.lt.s32.totalorder %s7769_s12, %s6143_s19 }
0x1929   : > { %v5314_v0 = vpop.f32.mrb[51].mxu0  ;;  %p6146_p2 = scmp.lt.s32.totalorder %s6144_s21, %s6138_s17 }
0x192b   : > { %p6147_p3 = por %p6146_p2, %p6145_p1 }
0x192d   : > { %p6148_p5 = pnand %p6147_p3, %p6141_p0 }
0x1999   : > { %v3361_v1 = vpop.permute.xlu0 %3360 }
0x199a   : > { %3364 = vst.msk [vmem:[#allocation2] sm:$0xff] %vm3363_vm9, %v3361_v1 }
0x19a1   : > { %v3365_v2 = vld [vmem:[#allocation2] sm:$0xff] }
0x19a2   : > { %5324 = vmatmul.mubr.msk.f32.vlgmr.msra.gmra.mrb[52].mxu0 %vm3377_vm10, %v3365_v2 }
0x1a75   : > { %v3447_v3 = vpop.f32.mrb[52].mxu0 }
0x1a76   : > { %v3448_v4 = vadd.f32 %v3911_v5, %v3447_v3  ;;  %v5325_v6 = vpop.f32.mrb[53].mxu0 }
0x1a78   : > { %3451 = vst [vmem:[%s306_s10] sm:$0xff] %v3448_v4 }
0x1a79   : > { %6151 = shalt.err (!%p6148_p5)
}
0x1a7a   : > { %s6152_s20 = scalar_lea.hbm %s7767_s15, 128  ;;  %s6156_s8 = scalar_lea.hbm %s7821_s7, 256 }
0x1a7b   : > { %p6153_p6 = scmp.ne.s32.totalorder %s7767_s15, %s6152_s20  ;;  %p6157_p10 = scmp.lt.u32.totalorder %s7767_s15, %s7821_s7 }
0x1a7c   : > { %p6158_p11 = scmp.lt.u32.totalorder %s6156_s8, %s6152_s20  ;;  %p6160_p13 = scmp.lt.u32.totalorder %s6152_s20, %s7767_s15 }
0x1a7d   : > { %p6154_p7 = pnand %p6153_p6, %p6309_p4 }
0x1a7e   : > { %p6159_p12 = por %p6158_p11, %p6157_p10 }
0x1a7f   : > { %p6155_p9 = pneg %p6154_p7 }
0x1a80   : > { %p6161_p0 = por %p6160_p13, %p6159_p12 }
0x1a82   : > { %p6162_p1 = pnand %p6161_p0, %p6155_p9 }
0x1a84   : > { %6165 = shalt.err (!%p6162_p1)
}
0x1a85   : > { %6036 = dma.vmem_to_hbm [thread:$0]  (%p6309_p4), %s7769_s12, 128, %s7767_s15, %s3453_s18  }
0x1a86 PF: > { %p6042_p2 = scmp.ge.s32.totalorder %s6216_s29, 2  ;;  %s3479_s16 = sand.u32 1, %s6196_s24  }
0x1a87   : > { %s3480_s17 = scalar_lea.sflag [#allocation4], %s3479_s16 }
0x1a88   : > { %p6039_p3 = pnand %p6042_p2, %p6316_p8 }
0x1a8a   : > { %6191 = dma.done.wait (!%p6039_p3), %s3480_s17, 128  }
0x1a8b   : > { %6193 = vsyncadd (!%p6039_p3), %s3480_s17, 4294967168  ;;  %s20_s29 = sadd.s32 1, %s6216_s29   ;;  %s7824_s24 = smov %s6200_s25 }
0x1a8c   : > { %p17_p5 = scmp.ge.s32.totalorder %s20_s29, 4   ;;  %s7825_s25 = smov %s6204_s26 }
0x1a8d   : > { %s7826_s26 = smov %s6322_s14  ;;  %s7827_s27 = smov %s6212_s28 }
0x1a8e   : > { %s7828_s28 = smov %s7830_s9  ;;  %19 = sbr.rel (!%p17_p5) target bundleno = 4 (0x4), region = 107 }
0x1a95   :  { %3485 = vsyncpa [#allocation4], 1 }
0x1a96   :  { %3487 = vsyncpa [#allocation4 + $0x1], 1 }

</bundles_post_ra>
